<compile_context>
chip_gen: v7x
topology: tpu7x:2x2x1
jax: 0.10.0
libtpu: 0.0.40
codegen_flags: <defaults>
</compile_context>

<pallas_src>
import jax
import jax.numpy as jnp
from jax.experimental import pallas as pl
from jax.experimental.pallas import tpu as pltpu

C1P = 32     # conv1 out-channels per quadrant group (10 real)
C2P = 32     # conv2 out-channels per pool-member group (20 real)
F1P = 128    # fc1 outputs (50 real)
F2P = 128    # fc2 outputs (10 real)


# ------------------------------ fused kernel -------------------------------

def _mnist_fused_kernel(xs_ref, w1_ref, b1_ref, w2_ref, b2_ref,
                        w1fc_ref, b1fc_ref, w2fc_ref, b2fc_ref,
                        logits_ref, e1_ref,
                        p1_ref, acc2_ref, p2_ref):
    f32 = jnp.float32
    bf16 = jnp.bfloat16
    bt = xs_ref.shape[1]

    # ---- conv1(5x5) + maxpool(2x2) + relu ----------------------------------
    # xs rows: (pool1 cell, batch); K = 64 = the cell's 8x8 input patch.
    # One K=64 bf16 dot per pool member; the pool max runs over vreg-aligned
    # 128-lane groups (quadrant(4) x 32ch), i.e. pure VPU work, no RMW scratch.
    xr = xs_ref[...].reshape(36 * bt, 64)
    mx = jnp.dot(xr, w1_ref[0], preferred_element_type=f32)
    for m in range(1, 4):
        mx = jnp.maximum(mx, jnp.dot(xr, w1_ref[m], preferred_element_type=f32))
    a1 = jnp.maximum(mx + b1_ref[...], 0.0)                     # (36*bt, 128)
    p1_ref[...] = a1.reshape(6, 6, bt, 4 * C1P).astype(bf16)

    # ---- conv2(5x5) + maxpool(2x2) + relu ----------------------------------
    # TODO(synk): Dropout2d after conv2 and F.dropout after fc1 are identity
    # (inference mode); training-mode stochastic dropout is not implemented.
    # 9 blocks over the 3x3 pool1-cell neighbourhood; rows = (ph*4+pw, b);
    # N = 128 = member(4) x 32 out-ch (20 real). Block reads slice only the
    # leading dims of p1_ref -> no relayout, no uninitialized reads.
    for blk in range(9):
        dbh, dbw = divmod(blk, 3)
        rows = p1_ref[pl.ds(dbh, 4), pl.ds(dbw, 4), :, :]
        rows = rows.reshape(16 * bt, 4 * C1P)
        contrib = jnp.dot(rows, w2_ref[blk], preferred_element_type=f32)
        if blk == 0:
            acc2_ref[...] = contrib
        else:
            acc2_ref[...] += contrib
    acc = acc2_ref[...]                                          # (16*bt, 128)
    mm = jnp.maximum(
        jnp.maximum(acc[:, 0 * C2P:1 * C2P], acc[:, 1 * C2P:2 * C2P]),
        jnp.maximum(acc[:, 2 * C2P:3 * C2P], acc[:, 3 * C2P:4 * C2P]))
    a2 = jnp.maximum(mm + b2_ref[...], 0.0).reshape(16, bt, C2P)
    for pos in range(16):                   # p2 lane layout: pos*32 + out-ch
        p2_ref[:, pl.ds(pos * C2P, C2P)] = a2[pos]

    # ---- fc1 + relu (single K=512 dot), fc2 ---------------------------------
    e1 = jnp.dot(p2_ref[...].astype(bf16), w1fc_ref[...],
                 preferred_element_type=f32)
    e1 = jnp.maximum(e1 + b1fc_ref[...], 0.0)                    # (bt, 128)
    e1_ref[...] = e1
    logits_ref[...] = (jnp.dot(e1.astype(bf16), w2fc_ref[...],
                               preferred_element_type=f32) + b2fc_ref[...])


# ------------------------- host-side weight folding ------------------------

def _build_fused_params(params):
    f32, bf16 = jnp.float32, jnp.bfloat16
    w1 = params["conv1_w"].astype(f32)     # (10, 1, 5, 5)
    b1 = params["conv1_b"].astype(f32)
    w2 = params["conv2_w"].astype(f32)     # (20, 10, 5, 5)
    b2 = params["conv2_b"].astype(f32)
    fw1 = params["fc1_w"].astype(f32)      # (50, 320)
    fb1 = params["fc1_b"].astype(f32)
    fw2 = params["fc2_w"].astype(f32)      # (10, 50)
    fb2 = params["fc2_b"].astype(f32)

    # conv1+pool1: one (64, 128) block per pool member m=(mh,mw).
    # K = dy*8+dx over the cell's 8x8 patch, N = quadrant(4) x C1P (10 real).
    w1k = jnp.transpose(w1[:, 0], (1, 2, 0))                    # (5,5,10)
    w1f = jnp.zeros((4, 8, 8, 4, C1P), f32)
    for m in range(4):
        mh, mw = divmod(m, 2)
        for q in range(4):
            sh, sw = divmod(q, 2)
            oy, ox = 2 * sh + mh, 2 * sw + mw
            w1f = w1f.at[m, oy:oy + 5, ox:ox + 5, q, :10].set(w1k)
    w1f = w1f.reshape(4, 64, 4 * C1P).astype(bf16)
    b1f = jnp.tile(jnp.pad(b1, (0, C1P - 10)), 4).reshape(1, 4 * C1P)

    # conv2+pool2: one (128, 128) block per (dbh, dbw) in 3x3 over pool1 cells.
    # K = quadrant(4) x C1P (10 real in-ch), N = member(4) x C2P (20 real).
    w2k = jnp.transpose(w2, (2, 3, 1, 0))                       # (5,5,10,20)
    w2f = jnp.zeros((9, 4, C1P, 4, C2P), f32)
    for m in range(4):
        mh, mw = divmod(m, 2)
        A = jnp.zeros((6, 6, 10, 20), f32).at[mh:mh + 5, mw:mw + 5].set(w2k)
        A = A.reshape(3, 2, 3, 2, 10, 20).transpose(0, 2, 1, 3, 4, 5)
        A = A.reshape(9, 4, 10, 20)                             # (blk,q,cin,cout)
        w2f = w2f.at[:, :, :10, m, :20].set(A)
    w2f = w2f.reshape(9, 4 * C1P, 4 * C2P).astype(bf16)
    b2f = jnp.pad(b2, (0, C2P - 20)).reshape(1, C2P)

    # fc1: K = pos*32 + out-ch (PyTorch NCHW flatten index = ch*16 + pos).
    wf1 = jnp.transpose(fw1.reshape(50, 20, 16), (2, 1, 0))     # (pos, ch, out)
    w1fc = jnp.zeros((16, C2P, F1P), f32).at[:, :20, :50].set(wf1)
    w1fc = w1fc.reshape(16 * C2P, F1P).astype(bf16)
    b1fc = jnp.pad(fb1, (0, F1P - 50)).reshape(1, F1P)

    # fc2
    w2fc = jnp.zeros((F1P, F2P), f32).at[:50, :10].set(fw2.T).astype(bf16)
    b2fc = jnp.pad(fb2, (0, F2P - 10)).reshape(1, F2P)

    return w1f, b1f, w2f, b2f, w1fc, b1fc, w2fc, b2fc


def _conv1_patches(x_nchw):
    # (N,1,28,28) -> (36, N, 64): one 8x8 input patch (stride 4) per pool1
    # cell, laid out (cell, batch, patch) so batch stays the sublane dim.
    n = x_nchw.shape[0]
    x = x_nchw.reshape(n, 28, 28)
    idx = 4 * jnp.arange(6)[:, None] + jnp.arange(8)[None, :]   # (6, 8)
    p = x[:, idx[:, :, None, None], idx[None, None, :, :]]      # (n,6,8,6,8)
    return jnp.transpose(p, (1, 3, 0, 2, 4)).reshape(36, n, 64)


# --------------------------------- forward ---------------------------------

def mnist_net_forward(params, x_nchw, *, block_batch=64):
    """Matches MNIST_Net.forward in eval mode; returns (logits, e1)."""
    assert x_nchw.shape[1:] == (1, 28, 28), "MNIST_Net expects (N, 1, 28, 28)"
    n = x_nchw.shape[0]
    bb = min(block_batch, ((n + 15) // 16) * 16)
    bb = max(16, (bb // 16) * 16)
    grid_n = pl.cdiv(n, bb)
    n_pad = grid_n * bb

    xs = _conv1_patches(x_nchw.astype(jnp.float32)).astype(jnp.bfloat16)
    if n_pad != n:
        xs = jnp.pad(xs, ((0, 0), (0, n_pad - n), (0, 0)))

    w1f, b1f, w2f, b2f, w1fc, b1fc, w2fc, b2fc = _build_fused_params(params)

    c2 = lambda i: (0, 0)
    c3 = lambda i: (0, 0, 0)
    logits_p, e1_p = pl.pallas_call(
        _mnist_fused_kernel,
        out_shape=(jax.ShapeDtypeStruct((n_pad, F2P), jnp.float32),
                   jax.ShapeDtypeStruct((n_pad, F1P), jnp.float32)),
        grid_spec=pltpu.PrefetchScalarGridSpec(
            num_scalar_prefetch=0,
            grid=(grid_n,),
            in_specs=[
                pl.BlockSpec((36, bb, 64), lambda i: (0, i, 0)),    # patches
                pl.BlockSpec((4, 64, 4 * C1P), c3),                 # conv1 w
                pl.BlockSpec((1, 4 * C1P), c2),                     # conv1 b
                pl.BlockSpec((9, 4 * C1P, 4 * C2P), c3),            # conv2 w
                pl.BlockSpec((1, C2P), c2),                         # conv2 b
                pl.BlockSpec((16 * C2P, F1P), c2),                  # fc1 w
                pl.BlockSpec((1, F1P), c2),                         # fc1 b
                pl.BlockSpec((F1P, F2P), c2),                       # fc2 w
                pl.BlockSpec((1, F2P), c2),                         # fc2 b
            ],
            out_specs=[
                pl.BlockSpec((bb, F2P), lambda i: (i, 0)),
                pl.BlockSpec((bb, F1P), lambda i: (i, 0)),
            ],
            scratch_shapes=[
                pltpu.VMEM((6, 6, bb, 4 * C1P), jnp.bfloat16),   # pool1 map
                pltpu.VMEM((16 * bb, 4 * C2P), jnp.float32),     # conv2 acc
                pltpu.VMEM((bb, 16 * C2P), jnp.float32),         # pool2 map
            ]),
        compiler_params=pltpu.CompilerParams(
            dimension_semantics=("parallel",),
            vmem_limit_bytes=(32 if bb <= 64 else 48) * 1024 * 1024),
    )(xs, w1f, b1f, w2f, b2f, w1fc, b1fc, w2fc, b2fc)

    return logits_p[:n, :10], e1_p[:n, :50]


# ------------------------- reference / init / demo --------------------------

def mnist_net_reference(params, x):
    """Pure-JAX (XLA) reference of MNIST_Net.forward in eval mode."""
    dn = ("NCHW", "OIHW", "NCHW")

    def pool2(y):
        n, c, h, w = y.shape
        return y.reshape(n, c, h // 2, 2, w // 2, 2).max(axis=(3, 5))

    y = jax.lax.conv_general_dilated(x, params["conv1_w"], (1, 1), "VALID",
                                     dimension_numbers=dn)
    y = jnp.maximum(pool2(y + params["conv1_b"][None, :, None, None]), 0.0)
    y = jax.lax.conv_general_dilated(y, params["conv2_w"], (1, 1), "VALID",
                                     dimension_numbers=dn)
    y = jnp.maximum(pool2(y + params["conv2_b"][None, :, None, None]), 0.0)
    xf = y.reshape(y.shape[0], 320)
    e1 = jnp.maximum(xf @ params["fc1_w"].T + params["fc1_b"], 0.0)
    logits = e1 @ params["fc2_w"].T + params["fc2_b"]
    return logits, e1


def init_params(key):
    ks = jax.random.split(key, 8)

    def u(k, shape, fan_in):
        bound = 1.0 / jnp.sqrt(jnp.float32(fan_in))
        return jax.random.uniform(k, shape, jnp.float32, -bound, bound)

    return {
        "conv1_w": u(ks[0], (10, 1, 5, 5), 1 * 5 * 5),
        "conv1_b": u(ks[1], (10,), 1 * 5 * 5),
        "conv2_w": u(ks[2], (20, 10, 5, 5), 10 * 5 * 5),
        "conv2_b": u(ks[3], (20,), 10 * 5 * 5),
        "fc1_w": u(ks[4], (50, 320), 320),
        "fc1_b": u(ks[5], (50,), 320),
        "fc2_w": u(ks[6], (10, 50), 50),
        "fc2_b": u(ks[7], (10,), 50),
    }


if __name__ == "__main__":
    key = jax.random.PRNGKey(0)
    pkey, xkey = jax.random.split(key)
    params = init_params(pkey)
    # MNIST-shaped input (28x28 required so the flatten yields 320 features).
    x = jax.random.normal(xkey, (12, 1, 28, 28), jnp.float32)

    logits, e1 = jax.jit(mnist_net_forward)(params, x)
    jax.block_until_ready((logits, e1))

    assert logits.shape == (12, 10) and logits.dtype == jnp.float32
    assert e1.shape == (12, 50) and e1.dtype == jnp.float32

    ref_logits, ref_e1 = jax.jit(mnist_net_reference)(params, x)
    assert float(jnp.max(jnp.abs(logits - ref_logits))) < 5e-2
    assert float(jnp.max(jnp.abs(e1 - ref_e1))) < 5e-2

    print("KERNEL_OK")
</pallas_src>

<mosaic_0001>
module attributes {stable_mosaic.version = 11 : i64} {
  func.func @_mnist_fused_kernel(%arg0: i32, %arg1: memref<36x16x64xbf16, #tpu.memory_space<vmem>>, %arg2: memref<4x64x128xbf16, #tpu.memory_space<vmem>>, %arg3: memref<1x128xf32, #tpu.memory_space<vmem>>, %arg4: memref<9x128x128xbf16, #tpu.memory_space<vmem>>, %arg5: memref<1x32xf32, #tpu.memory_space<vmem>>, %arg6: memref<512x128xbf16, #tpu.memory_space<vmem>>, %arg7: memref<1x128xf32, #tpu.memory_space<vmem>>, %arg8: memref<128x128xbf16, #tpu.memory_space<vmem>>, %arg9: memref<1x128xf32, #tpu.memory_space<vmem>>, %arg10: memref<16x128xf32, #tpu.memory_space<vmem>>, %arg11: memref<16x128xf32, #tpu.memory_space<vmem>>, %arg12: memref<6x6x16x128xbf16, #tpu.memory_space<vmem>>, %arg13: memref<256x128xf32, #tpu.memory_space<vmem>>, %arg14: memref<16x512xf32, #tpu.memory_space<vmem>>) attributes {dimension_semantics = [#tpu.dimension_semantics<parallel>], iteration_bounds = array<i64: 1>, scalar_prefetch = 0 : i64, scratch_operands = 3 : i64, tpu.core_type = #tpu.core_type<tc>, window_params = [{transform_indices = @transform_0, window_bounds = array<i64: 36, 16, 64>}, {pipeline_mode = #tpu.pipeline_mode<synchronous>, transform_indices = @transform_1, window_bounds = array<i64: 4, 64, 128>}, {pipeline_mode = #tpu.pipeline_mode<synchronous>, transform_indices = @transform_2, window_bounds = array<i64: 1, 128>}, {pipeline_mode = #tpu.pipeline_mode<synchronous>, transform_indices = @transform_3, window_bounds = array<i64: 9, 128, 128>}, {pipeline_mode = #tpu.pipeline_mode<synchronous>, transform_indices = @transform_4, window_bounds = array<i64: 1, 32>}, {pipeline_mode = #tpu.pipeline_mode<synchronous>, transform_indices = @transform_5, window_bounds = array<i64: 512, 128>}, {pipeline_mode = #tpu.pipeline_mode<synchronous>, transform_indices = @transform_6, window_bounds = array<i64: 1, 128>}, {pipeline_mode = #tpu.pipeline_mode<synchronous>, transform_indices = @transform_7, window_bounds = array<i64: 128, 128>}, {pipeline_mode = #tpu.pipeline_mode<synchronous>, transform_indices = @transform_8, window_bounds = array<i64: 1, 128>}, {transform_indices = @transform_9, window_bounds = array<i64: 16, 128>}, {transform_indices = @transform_10, window_bounds = array<i64: 16, 128>}]} {
    %c0 = arith.constant 0 : index
    %c0_0 = arith.constant 0 : index
    %c0_1 = arith.constant 0 : index
    %0 = vector.load %arg1[%c0, %c0_0, %c0_1] : memref<36x16x64xbf16, #tpu.memory_space<vmem>>, vector<36x16x64xbf16>
    %1 = vector.shape_cast %0 : vector<36x16x64xbf16> to vector<576x64xbf16>
    %c0_2 = arith.constant 0 : index
    %c0_3 = arith.constant 0 : index
    %c0_4 = arith.constant 0 : index
    %2 = vector.load %arg2[%c0_2, %c0_3, %c0_4] : memref<4x64x128xbf16, #tpu.memory_space<vmem>>, vector<1x64x128xbf16>
    %3 = vector.shape_cast %2 : vector<1x64x128xbf16> to vector<64x128xbf16>
    %cst = arith.constant dense<0.000000e+00> : vector<576x128xf32>
    %4 = tpu.matmul %1, %3, %cst {dimension_numbers = #tpu.dot_dimension_numbers<[1], [0], [0], [1], [0, 0, 1, 1], [], []>} : vector<576x64xbf16>, vector<64x128xbf16>, vector<576x128xf32> -> vector<576x128xf32>
    %c1 = arith.constant 1 : index
    %c0_5 = arith.constant 0 : index
    %c0_6 = arith.constant 0 : index
    %5 = vector.load %arg2[%c1, %c0_5, %c0_6] : memref<4x64x128xbf16, #tpu.memory_space<vmem>>, vector<1x64x128xbf16>
    %6 = vector.shape_cast %5 : vector<1x64x128xbf16> to vector<64x128xbf16>
    %cst_7 = arith.constant dense<0.000000e+00> : vector<576x128xf32>
    %7 = tpu.matmul %1, %6, %cst_7 {dimension_numbers = #tpu.dot_dimension_numbers<[1], [0], [0], [1], [0, 0, 1, 1], [], []>} : vector<576x64xbf16>, vector<64x128xbf16>, vector<576x128xf32> -> vector<576x128xf32>
    %8 = arith.maximumf %4, %7 : vector<576x128xf32>
    %c2 = arith.constant 2 : index
    %c0_8 = arith.constant 0 : index
    %c0_9 = arith.constant 0 : index
    %9 = vector.load %arg2[%c2, %c0_8, %c0_9] : memref<4x64x128xbf16, #tpu.memory_space<vmem>>, vector<1x64x128xbf16>
    %10 = vector.shape_cast %9 : vector<1x64x128xbf16> to vector<64x128xbf16>
    %cst_10 = arith.constant dense<0.000000e+00> : vector<576x128xf32>
    %11 = tpu.matmul %1, %10, %cst_10 {dimension_numbers = #tpu.dot_dimension_numbers<[1], [0], [0], [1], [0, 0, 1, 1], [], []>} : vector<576x64xbf16>, vector<64x128xbf16>, vector<576x128xf32> -> vector<576x128xf32>
    %12 = arith.maximumf %8, %11 : vector<576x128xf32>
    %c3 = arith.constant 3 : index
    %c0_11 = arith.constant 0 : index
    %c0_12 = arith.constant 0 : index
    %13 = vector.load %arg2[%c3, %c0_11, %c0_12] : memref<4x64x128xbf16, #tpu.memory_space<vmem>>, vector<1x64x128xbf16>
    %14 = vector.shape_cast %13 : vector<1x64x128xbf16> to vector<64x128xbf16>
    %cst_13 = arith.constant dense<0.000000e+00> : vector<576x128xf32>
    %15 = tpu.matmul %1, %14, %cst_13 {dimension_numbers = #tpu.dot_dimension_numbers<[1], [0], [0], [1], [0, 0, 1, 1], [], []>} : vector<576x64xbf16>, vector<64x128xbf16>, vector<576x128xf32> -> vector<576x128xf32>
    %16 = arith.maximumf %12, %15 : vector<576x128xf32>
    %c0_14 = arith.constant 0 : index
    %c0_15 = arith.constant 0 : index
    %17 = vector.load %arg3[%c0_14, %c0_15] : memref<1x128xf32, #tpu.memory_space<vmem>>, vector<1x128xf32>
    %18 = vector.broadcast %17 : vector<1x128xf32> to vector<576x128xf32>
    %19 = arith.addf %16, %18 : vector<576x128xf32>
    %cst_16 = arith.constant 0.000000e+00 : f32
    %20 = vector.broadcast %cst_16 : f32 to vector<576x128xf32>
    %21 = arith.maximumf %19, %20 : vector<576x128xf32>
    %22 = vector.shape_cast %21 : vector<576x128xf32> to vector<6x6x16x128xf32>
    %23 = arith.truncf %22 : vector<6x6x16x128xf32> to vector<6x6x16x128xbf16>
    %c0_17 = arith.constant 0 : index
    %c0_18 = arith.constant 0 : index
    %c0_19 = arith.constant 0 : index
    %c0_20 = arith.constant 0 : index
    %24 = vector.load %arg12[%c0_17, %c0_18, %c0_19, %c0_20] : memref<6x6x16x128xbf16, #tpu.memory_space<vmem>>, vector<6x6x16x128xbf16>
    tpu.vector_store %arg12[%c0_17, %c0_18, %c0_19, %c0_20], %23 {strides = array<i32>} : memref<6x6x16x128xbf16, #tpu.memory_space<vmem>>, vector<6x6x16x128xbf16>,
    %c0_21 = arith.constant 0 : index
    %c0_22 = arith.constant 0 : index
    %c0_23 = arith.constant 0 : index
    %c0_24 = arith.constant 0 : index
    %25 = vector.load %arg12[%c0_21, %c0_22, %c0_23, %c0_24] : memref<6x6x16x128xbf16, #tpu.memory_space<vmem>>, vector<4x4x16x128xbf16>
    %26 = vector.shape_cast %25 : vector<4x4x16x128xbf16> to vector<256x128xbf16>
    %c0_25 = arith.constant 0 : index
    %c0_26 = arith.constant 0 : index
    %c0_27 = arith.constant 0 : index
    %27 = vector.load %arg4[%c0_25, %c0_26, %c0_27] : memref<9x128x128xbf16, #tpu.memory_space<vmem>>, vector<1x128x128xbf16>
    %28 = vector.shape_cast %27 : vector<1x128x128xbf16> to vector<128x128xbf16>
    %cst_28 = arith.constant dense<0.000000e+00> : vector<256x128xf32>
    %29 = tpu.matmul %26, %28, %cst_28 {dimension_numbers = #tpu.dot_dimension_numbers<[1], [0], [0], [1], [0, 0, 1, 1], [], []>} : vector<256x128xbf16>, vector<128x128xbf16>, vector<256x128xf32> -> vector<256x128xf32>
    %c0_29 = arith.constant 0 : index
    %c0_30 = arith.constant 0 : index
    %30 = vector.load %arg13[%c0_29, %c0_30] : memref<256x128xf32, #tpu.memory_space<vmem>>, vector<256x128xf32>
    tpu.vector_store %arg13[%c0_29, %c0_30], %29 {strides = array<i32>} : memref<256x128xf32, #tpu.memory_space<vmem>>, vector<256x128xf32>,
    %c0_31 = arith.constant 0 : index
    %c1_32 = arith.constant 1 : index
    %c0_33 = arith.constant 0 : index
    %c0_34 = arith.constant 0 : index
    %31 = vector.load %arg12[%c0_31, %c1_32, %c0_33, %c0_34] : memref<6x6x16x128xbf16, #tpu.memory_space<vmem>>, vector<4x4x16x128xbf16>
    %32 = vector.shape_cast %31 : vector<4x4x16x128xbf16> to vector<256x128xbf16>
    %c1_35 = arith.constant 1 : index
    %c0_36 = arith.constant 0 : index
    %c0_37 = arith.constant 0 : index
    %33 = vector.load %arg4[%c1_35, %c0_36, %c0_37] : memref<9x128x128xbf16, #tpu.memory_space<vmem>>, vector<1x128x128xbf16>
    %34 = vector.shape_cast %33 : vector<1x128x128xbf16> to vector<128x128xbf16>
    %cst_38 = arith.constant dense<0.000000e+00> : vector<256x128xf32>
    %35 = tpu.matmul %32, %34, %cst_38 {dimension_numbers = #tpu.dot_dimension_numbers<[1], [0], [0], [1], [0, 0, 1, 1], [], []>} : vector<256x128xbf16>, vector<128x128xbf16>, vector<256x128xf32> -> vector<256x128xf32>
    %c0_39 = arith.constant 0 : index
    %c0_40 = arith.constant 0 : index
    %36 = vector.load %arg13[%c0_39, %c0_40] : memref<256x128xf32, #tpu.memory_space<vmem>>, vector<256x128xf32>
    %37 = arith.addf %36, %35 : vector<256x128xf32>
    %c0_41 = arith.constant 0 : index
    %c0_42 = arith.constant 0 : index
    %38 = vector.load %arg13[%c0_41, %c0_42] : memref<256x128xf32, #tpu.memory_space<vmem>>, vector<256x128xf32>
    tpu.vector_store %arg13[%c0_41, %c0_42], %37 {strides = array<i32>} : memref<256x128xf32, #tpu.memory_space<vmem>>, vector<256x128xf32>,
    %c0_43 = arith.constant 0 : index
    %c2_44 = arith.constant 2 : index
    %c0_45 = arith.constant 0 : index
    %c0_46 = arith.constant 0 : index
    %39 = vector.load %arg12[%c0_43, %c2_44, %c0_45, %c0_46] : memref<6x6x16x128xbf16, #tpu.memory_space<vmem>>, vector<4x4x16x128xbf16>
    %40 = vector.shape_cast %39 : vector<4x4x16x128xbf16> to vector<256x128xbf16>
    %c2_47 = arith.constant 2 : index
    %c0_48 = arith.constant 0 : index
    %c0_49 = arith.constant 0 : index
    %41 = vector.load %arg4[%c2_47, %c0_48, %c0_49] : memref<9x128x128xbf16, #tpu.memory_space<vmem>>, vector<1x128x128xbf16>
    %42 = vector.shape_cast %41 : vector<1x128x128xbf16> to vector<128x128xbf16>
    %cst_50 = arith.constant dense<0.000000e+00> : vector<256x128xf32>
    %43 = tpu.matmul %40, %42, %cst_50 {dimension_numbers = #tpu.dot_dimension_numbers<[1], [0], [0], [1], [0, 0, 1, 1], [], []>} : vector<256x128xbf16>, vector<128x128xbf16>, vector<256x128xf32> -> vector<256x128xf32>
    %c0_51 = arith.constant 0 : index
    %c0_52 = arith.constant 0 : index
    %44 = vector.load %arg13[%c0_51, %c0_52] : memref<256x128xf32, #tpu.memory_space<vmem>>, vector<256x128xf32>
    %45 = arith.addf %44, %43 : vector<256x128xf32>
    %c0_53 = arith.constant 0 : index
    %c0_54 = arith.constant 0 : index
    %46 = vector.load %arg13[%c0_53, %c0_54] : memref<256x128xf32, #tpu.memory_space<vmem>>, vector<256x128xf32>
    tpu.vector_store %arg13[%c0_53, %c0_54], %45 {strides = array<i32>} : memref<256x128xf32, #tpu.memory_space<vmem>>, vector<256x128xf32>,
    %c1_55 = arith.constant 1 : index
    %c0_56 = arith.constant 0 : index
    %c0_57 = arith.constant 0 : index
    %c0_58 = arith.constant 0 : index
    %47 = vector.load %arg12[%c1_55, %c0_56, %c0_57, %c0_58] : memref<6x6x16x128xbf16, #tpu.memory_space<vmem>>, vector<4x4x16x128xbf16>
    %48 = vector.shape_cast %47 : vector<4x4x16x128xbf16> to vector<256x128xbf16>
    %c3_59 = arith.constant 3 : index
    %c0_60 = arith.constant 0 : index
    %c0_61 = arith.constant 0 : index
    %49 = vector.load %arg4[%c3_59, %c0_60, %c0_61] : memref<9x128x128xbf16, #tpu.memory_space<vmem>>, vector<1x128x128xbf16>
    %50 = vector.shape_cast %49 : vector<1x128x128xbf16> to vector<128x128xbf16>
    %cst_62 = arith.constant dense<0.000000e+00> : vector<256x128xf32>
    %51 = tpu.matmul %48, %50, %cst_62 {dimension_numbers = #tpu.dot_dimension_numbers<[1], [0], [0], [1], [0, 0, 1, 1], [], []>} : vector<256x128xbf16>, vector<128x128xbf16>, vector<256x128xf32> -> vector<256x128xf32>
    %c0_63 = arith.constant 0 : index
    %c0_64 = arith.constant 0 : index
    %52 = vector.load %arg13[%c0_63, %c0_64] : memref<256x128xf32, #tpu.memory_space<vmem>>, vector<256x128xf32>
    %53 = arith.addf %52, %51 : vector<256x128xf32>
    %c0_65 = arith.constant 0 : index
    %c0_66 = arith.constant 0 : index
    %54 = vector.load %arg13[%c0_65, %c0_66] : memref<256x128xf32, #tpu.memory_space<vmem>>, vector<256x128xf32>
    tpu.vector_store %arg13[%c0_65, %c0_66], %53 {strides = array<i32>} : memref<256x128xf32, #tpu.memory_space<vmem>>, vector<256x128xf32>,
    %c1_67 = arith.constant 1 : index
    %c1_68 = arith.constant 1 : index
    %c0_69 = arith.constant 0 : index
    %c0_70 = arith.constant 0 : index
    %55 = vector.load %arg12[%c1_67, %c1_68, %c0_69, %c0_70] : memref<6x6x16x128xbf16, #tpu.memory_space<vmem>>, vector<4x4x16x128xbf16>
    %56 = vector.shape_cast %55 : vector<4x4x16x128xbf16> to vector<256x128xbf16>
    %c4 = arith.constant 4 : index
    %c0_71 = arith.constant 0 : index
    %c0_72 = arith.constant 0 : index
    %57 = vector.load %arg4[%c4, %c0_71, %c0_72] : memref<9x128x128xbf16, #tpu.memory_space<vmem>>, vector<1x128x128xbf16>
    %58 = vector.shape_cast %57 : vector<1x128x128xbf16> to vector<128x128xbf16>
    %cst_73 = arith.constant dense<0.000000e+00> : vector<256x128xf32>
    %59 = tpu.matmul %56, %58, %cst_73 {dimension_numbers = #tpu.dot_dimension_numbers<[1], [0], [0], [1], [0, 0, 1, 1], [], []>} : vector<256x128xbf16>, vector<128x128xbf16>, vector<256x128xf32> -> vector<256x128xf32>
    %c0_74 = arith.constant 0 : index
    %c0_75 = arith.constant 0 : index
    %60 = vector.load %arg13[%c0_74, %c0_75] : memref<256x128xf32, #tpu.memory_space<vmem>>, vector<256x128xf32>
    %61 = arith.addf %60, %59 : vector<256x128xf32>
    %c0_76 = arith.constant 0 : index
    %c0_77 = arith.constant 0 : index
    %62 = vector.load %arg13[%c0_76, %c0_77] : memref<256x128xf32, #tpu.memory_space<vmem>>, vector<256x128xf32>
    tpu.vector_store %arg13[%c0_76, %c0_77], %61 {strides = array<i32>} : memref<256x128xf32, #tpu.memory_space<vmem>>, vector<256x128xf32>,
    %c1_78 = arith.constant 1 : index
    %c2_79 = arith.constant 2 : index
    %c0_80 = arith.constant 0 : index
    %c0_81 = arith.constant 0 : index
    %63 = vector.load %arg12[%c1_78, %c2_79, %c0_80, %c0_81] : memref<6x6x16x128xbf16, #tpu.memory_space<vmem>>, vector<4x4x16x128xbf16>
    %64 = vector.shape_cast %63 : vector<4x4x16x128xbf16> to vector<256x128xbf16>
    %c5 = arith.constant 5 : index
    %c0_82 = arith.constant 0 : index
    %c0_83 = arith.constant 0 : index
    %65 = vector.load %arg4[%c5, %c0_82, %c0_83] : memref<9x128x128xbf16, #tpu.memory_space<vmem>>, vector<1x128x128xbf16>
    %66 = vector.shape_cast %65 : vector<1x128x128xbf16> to vector<128x128xbf16>
    %cst_84 = arith.constant dense<0.000000e+00> : vector<256x128xf32>
    %67 = tpu.matmul %64, %66, %cst_84 {dimension_numbers = #tpu.dot_dimension_numbers<[1], [0], [0], [1], [0, 0, 1, 1], [], []>} : vector<256x128xbf16>, vector<128x128xbf16>, vector<256x128xf32> -> vector<256x128xf32>
    %c0_85 = arith.constant 0 : index
    %c0_86 = arith.constant 0 : index
    %68 = vector.load %arg13[%c0_85, %c0_86] : memref<256x128xf32, #tpu.memory_space<vmem>>, vector<256x128xf32>
    %69 = arith.addf %68, %67 : vector<256x128xf32>
    %c0_87 = arith.constant 0 : index
    %c0_88 = arith.constant 0 : index
    %70 = vector.load %arg13[%c0_87, %c0_88] : memref<256x128xf32, #tpu.memory_space<vmem>>, vector<256x128xf32>
    tpu.vector_store %arg13[%c0_87, %c0_88], %69 {strides = array<i32>} : memref<256x128xf32, #tpu.memory_space<vmem>>, vector<256x128xf32>,
    %c2_89 = arith.constant 2 : index
    %c0_90 = arith.constant 0 : index
    %c0_91 = arith.constant 0 : index
    %c0_92 = arith.constant 0 : index
    %71 = vector.load %arg12[%c2_89, %c0_90, %c0_91, %c0_92] : memref<6x6x16x128xbf16, #tpu.memory_space<vmem>>, vector<4x4x16x128xbf16>
    %72 = vector.shape_cast %71 : vector<4x4x16x128xbf16> to vector<256x128xbf16>
    %c6 = arith.constant 6 : index
    %c0_93 = arith.constant 0 : index
    %c0_94 = arith.constant 0 : index
    %73 = vector.load %arg4[%c6, %c0_93, %c0_94] : memref<9x128x128xbf16, #tpu.memory_space<vmem>>, vector<1x128x128xbf16>
    %74 = vector.shape_cast %73 : vector<1x128x128xbf16> to vector<128x128xbf16>
    %cst_95 = arith.constant dense<0.000000e+00> : vector<256x128xf32>
    %75 = tpu.matmul %72, %74, %cst_95 {dimension_numbers = #tpu.dot_dimension_numbers<[1], [0], [0], [1], [0, 0, 1, 1], [], []>} : vector<256x128xbf16>, vector<128x128xbf16>, vector<256x128xf32> -> vector<256x128xf32>
    %c0_96 = arith.constant 0 : index
    %c0_97 = arith.constant 0 : index
    %76 = vector.load %arg13[%c0_96, %c0_97] : memref<256x128xf32, #tpu.memory_space<vmem>>, vector<256x128xf32>
    %77 = arith.addf %76, %75 : vector<256x128xf32>
    %c0_98 = arith.constant 0 : index
    %c0_99 = arith.constant 0 : index
    %78 = vector.load %arg13[%c0_98, %c0_99] : memref<256x128xf32, #tpu.memory_space<vmem>>, vector<256x128xf32>
    tpu.vector_store %arg13[%c0_98, %c0_99], %77 {strides = array<i32>} : memref<256x128xf32, #tpu.memory_space<vmem>>, vector<256x128xf32>,
    %c2_100 = arith.constant 2 : index
    %c1_101 = arith.constant 1 : index
    %c0_102 = arith.constant 0 : index
    %c0_103 = arith.constant 0 : index
    %79 = vector.load %arg12[%c2_100, %c1_101, %c0_102, %c0_103] : memref<6x6x16x128xbf16, #tpu.memory_space<vmem>>, vector<4x4x16x128xbf16>
    %80 = vector.shape_cast %79 : vector<4x4x16x128xbf16> to vector<256x128xbf16>
    %c7 = arith.constant 7 : index
    %c0_104 = arith.constant 0 : index
    %c0_105 = arith.constant 0 : index
    %81 = vector.load %arg4[%c7, %c0_104, %c0_105] : memref<9x128x128xbf16, #tpu.memory_space<vmem>>, vector<1x128x128xbf16>
    %82 = vector.shape_cast %81 : vector<1x128x128xbf16> to vector<128x128xbf16>
    %cst_106 = arith.constant dense<0.000000e+00> : vector<256x128xf32>
    %83 = tpu.matmul %80, %82, %cst_106 {dimension_numbers = #tpu.dot_dimension_numbers<[1], [0], [0], [1], [0, 0, 1, 1], [], []>} : vector<256x128xbf16>, vector<128x128xbf16>, vector<256x128xf32> -> vector<256x128xf32>
    %c0_107 = arith.constant 0 : index
    %c0_108 = arith.constant 0 : index
    %84 = vector.load %arg13[%c0_107, %c0_108] : memref<256x128xf32, #tpu.memory_space<vmem>>, vector<256x128xf32>
    %85 = arith.addf %84, %83 : vector<256x128xf32>
    %c0_109 = arith.constant 0 : index
    %c0_110 = arith.constant 0 : index
    %86 = vector.load %arg13[%c0_109, %c0_110] : memref<256x128xf32, #tpu.memory_space<vmem>>, vector<256x128xf32>
    tpu.vector_store %arg13[%c0_109, %c0_110], %85 {strides = array<i32>} : memref<256x128xf32, #tpu.memory_space<vmem>>, vector<256x128xf32>,
    %c2_111 = arith.constant 2 : index
    %c2_112 = arith.constant 2 : index
    %c0_113 = arith.constant 0 : index
    %c0_114 = arith.constant 0 : index
    %87 = vector.load %arg12[%c2_111, %c2_112, %c0_113, %c0_114] : memref<6x6x16x128xbf16, #tpu.memory_space<vmem>>, vector<4x4x16x128xbf16>
    %88 = vector.shape_cast %87 : vector<4x4x16x128xbf16> to vector<256x128xbf16>
    %c8 = arith.constant 8 : index
    %c0_115 = arith.constant 0 : index
    %c0_116 = arith.constant 0 : index
    %89 = vector.load %arg4[%c8, %c0_115, %c0_116] : memref<9x128x128xbf16, #tpu.memory_space<vmem>>, vector<1x128x128xbf16>
    %90 = vector.shape_cast %89 : vector<1x128x128xbf16> to vector<128x128xbf16>
    %cst_117 = arith.constant dense<0.000000e+00> : vector<256x128xf32>
    %91 = tpu.matmul %88, %90, %cst_117 {dimension_numbers = #tpu.dot_dimension_numbers<[1], [0], [0], [1], [0, 0, 1, 1], [], []>} : vector<256x128xbf16>, vector<128x128xbf16>, vector<256x128xf32> -> vector<256x128xf32>
    %c0_118 = arith.constant 0 : index
    %c0_119 = arith.constant 0 : index
    %92 = vector.load %arg13[%c0_118, %c0_119] : memref<256x128xf32, #tpu.memory_space<vmem>>, vector<256x128xf32>
    %93 = arith.addf %92, %91 : vector<256x128xf32>
    %c0_120 = arith.constant 0 : index
    %c0_121 = arith.constant 0 : index
    %94 = vector.load %arg13[%c0_120, %c0_121] : memref<256x128xf32, #tpu.memory_space<vmem>>, vector<256x128xf32>
    tpu.vector_store %arg13[%c0_120, %c0_121], %93 {strides = array<i32>} : memref<256x128xf32, #tpu.memory_space<vmem>>, vector<256x128xf32>,
    %c0_122 = arith.constant 0 : index
    %c0_123 = arith.constant 0 : index
    %95 = vector.load %arg13[%c0_122, %c0_123] : memref<256x128xf32, #tpu.memory_space<vmem>>, vector<256x128xf32>
    %96 = vector.extract_strided_slice %95 {offsets = [0, 0], sizes = [256, 32], strides = [1, 1]} : vector<256x128xf32> to vector<256x32xf32>
    %97 = vector.extract_strided_slice %95 {offsets = [0, 32], sizes = [256, 32], strides = [1, 1]} : vector<256x128xf32> to vector<256x32xf32>
    %98 = arith.maximumf %96, %97 : vector<256x32xf32>
    %99 = vector.extract_strided_slice %95 {offsets = [0, 64], sizes = [256, 32], strides = [1, 1]} : vector<256x128xf32> to vector<256x32xf32>
    %100 = vector.extract_strided_slice %95 {offsets = [0, 96], sizes = [256, 32], strides = [1, 1]} : vector<256x128xf32> to vector<256x32xf32>
    %101 = arith.maximumf %99, %100 : vector<256x32xf32>
    %102 = arith.maximumf %98, %101 : vector<256x32xf32>
    %c0_124 = arith.constant 0 : index
    %c0_125 = arith.constant 0 : index
    %103 = vector.load %arg5[%c0_124, %c0_125] : memref<1x32xf32, #tpu.memory_space<vmem>>, vector<1x32xf32>
    %104 = vector.broadcast %103 : vector<1x32xf32> to vector<256x32xf32>
    %105 = arith.addf %102, %104 : vector<256x32xf32>
    %cst_126 = arith.constant 0.000000e+00 : f32
    %106 = vector.broadcast %cst_126 : f32 to vector<256x32xf32>
    %107 = arith.maximumf %105, %106 : vector<256x32xf32>
    %108 = vector.shape_cast %107 : vector<256x32xf32> to vector<16x16x32xf32>
    %109 = vector.extract_strided_slice %108 {offsets = [0, 0, 0], sizes = [1, 16, 32], strides = [1, 1, 1]} : vector<16x16x32xf32> to vector<1x16x32xf32>
    %110 = vector.shape_cast %109 : vector<1x16x32xf32> to vector<16x32xf32>
    %c0_127 = arith.constant 0 : index
    %c0_128 = arith.constant 0 : index
    %111 = vector.load %arg14[%c0_127, %c0_128] : memref<16x512xf32, #tpu.memory_space<vmem>>, vector<16x32xf32>
    tpu.vector_store %arg14[%c0_127, %c0_128], %110 {strides = array<i32>} : memref<16x512xf32, #tpu.memory_space<vmem>>, vector<16x32xf32>,
    %112 = vector.extract_strided_slice %108 {offsets = [1, 0, 0], sizes = [1, 16, 32], strides = [1, 1, 1]} : vector<16x16x32xf32> to vector<1x16x32xf32>
    %113 = vector.shape_cast %112 : vector<1x16x32xf32> to vector<16x32xf32>
    %c0_129 = arith.constant 0 : index
    %c32 = arith.constant 32 : index
    %114 = vector.load %arg14[%c0_129, %c32] : memref<16x512xf32, #tpu.memory_space<vmem>>, vector<16x32xf32>
    tpu.vector_store %arg14[%c0_129, %c32], %113 {strides = array<i32>} : memref<16x512xf32, #tpu.memory_space<vmem>>, vector<16x32xf32>,
    %115 = vector.extract_strided_slice %108 {offsets = [2, 0, 0], sizes = [1, 16, 32], strides = [1, 1, 1]} : vector<16x16x32xf32> to vector<1x16x32xf32>
    %116 = vector.shape_cast %115 : vector<1x16x32xf32> to vector<16x32xf32>
    %c0_130 = arith.constant 0 : index
    %c64 = arith.constant 64 : index
    %117 = vector.load %arg14[%c0_130, %c64] : memref<16x512xf32, #tpu.memory_space<vmem>>, vector<16x32xf32>
    tpu.vector_store %arg14[%c0_130, %c64], %116 {strides = array<i32>} : memref<16x512xf32, #tpu.memory_space<vmem>>, vector<16x32xf32>,
    %118 = vector.extract_strided_slice %108 {offsets = [3, 0, 0], sizes = [1, 16, 32], strides = [1, 1, 1]} : vector<16x16x32xf32> to vector<1x16x32xf32>
    %119 = vector.shape_cast %118 : vector<1x16x32xf32> to vector<16x32xf32>
    %c0_131 = arith.constant 0 : index
    %c96 = arith.constant 96 : index
    %120 = vector.load %arg14[%c0_131, %c96] : memref<16x512xf32, #tpu.memory_space<vmem>>, vector<16x32xf32>
    tpu.vector_store %arg14[%c0_131, %c96], %119 {strides = array<i32>} : memref<16x512xf32, #tpu.memory_space<vmem>>, vector<16x32xf32>,
    %121 = vector.extract_strided_slice %108 {offsets = [4, 0, 0], sizes = [1, 16, 32], strides = [1, 1, 1]} : vector<16x16x32xf32> to vector<1x16x32xf32>
    %122 = vector.shape_cast %121 : vector<1x16x32xf32> to vector<16x32xf32>
    %c0_132 = arith.constant 0 : index
    %c128 = arith.constant 128 : index
    %123 = vector.load %arg14[%c0_132, %c128] : memref<16x512xf32, #tpu.memory_space<vmem>>, vector<16x32xf32>
    tpu.vector_store %arg14[%c0_132, %c128], %122 {strides = array<i32>} : memref<16x512xf32, #tpu.memory_space<vmem>>, vector<16x32xf32>,
    %124 = vector.extract_strided_slice %108 {offsets = [5, 0, 0], sizes = [1, 16, 32], strides = [1, 1, 1]} : vector<16x16x32xf32> to vector<1x16x32xf32>
    %125 = vector.shape_cast %124 : vector<1x16x32xf32> to vector<16x32xf32>
    %c0_133 = arith.constant 0 : index
    %c160 = arith.constant 160 : index
    %126 = vector.load %arg14[%c0_133, %c160] : memref<16x512xf32, #tpu.memory_space<vmem>>, vector<16x32xf32>
    tpu.vector_store %arg14[%c0_133, %c160], %125 {strides = array<i32>} : memref<16x512xf32, #tpu.memory_space<vmem>>, vector<16x32xf32>,
    %127 = vector.extract_strided_slice %108 {offsets = [6, 0, 0], sizes = [1, 16, 32], strides = [1, 1, 1]} : vector<16x16x32xf32> to vector<1x16x32xf32>
    %128 = vector.shape_cast %127 : vector<1x16x32xf32> to vector<16x32xf32>
    %c0_134 = arith.constant 0 : index
    %c192 = arith.constant 192 : index
    %129 = vector.load %arg14[%c0_134, %c192] : memref<16x512xf32, #tpu.memory_space<vmem>>, vector<16x32xf32>
    tpu.vector_store %arg14[%c0_134, %c192], %128 {strides = array<i32>} : memref<16x512xf32, #tpu.memory_space<vmem>>, vector<16x32xf32>,
    %130 = vector.extract_strided_slice %108 {offsets = [7, 0, 0], sizes = [1, 16, 32], strides = [1, 1, 1]} : vector<16x16x32xf32> to vector<1x16x32xf32>
    %131 = vector.shape_cast %130 : vector<1x16x32xf32> to vector<16x32xf32>
    %c0_135 = arith.constant 0 : index
    %c224 = arith.constant 224 : index
    %132 = vector.load %arg14[%c0_135, %c224] : memref<16x512xf32, #tpu.memory_space<vmem>>, vector<16x32xf32>
    tpu.vector_store %arg14[%c0_135, %c224], %131 {strides = array<i32>} : memref<16x512xf32, #tpu.memory_space<vmem>>, vector<16x32xf32>,
    %133 = vector.extract_strided_slice %108 {offsets = [8, 0, 0], sizes = [1, 16, 32], strides = [1, 1, 1]} : vector<16x16x32xf32> to vector<1x16x32xf32>
    %134 = vector.shape_cast %133 : vector<1x16x32xf32> to vector<16x32xf32>
    %c0_136 = arith.constant 0 : index
    %c256 = arith.constant 256 : index
    %135 = vector.load %arg14[%c0_136, %c256] : memref<16x512xf32, #tpu.memory_space<vmem>>, vector<16x32xf32>
    tpu.vector_store %arg14[%c0_136, %c256], %134 {strides = array<i32>} : memref<16x512xf32, #tpu.memory_space<vmem>>, vector<16x32xf32>,
    %136 = vector.extract_strided_slice %108 {offsets = [9, 0, 0], sizes = [1, 16, 32], strides = [1, 1, 1]} : vector<16x16x32xf32> to vector<1x16x32xf32>
    %137 = vector.shape_cast %136 : vector<1x16x32xf32> to vector<16x32xf32>
    %c0_137 = arith.constant 0 : index
    %c288 = arith.constant 288 : index
    %138 = vector.load %arg14[%c0_137, %c288] : memref<16x512xf32, #tpu.memory_space<vmem>>, vector<16x32xf32>
    tpu.vector_store %arg14[%c0_137, %c288], %137 {strides = array<i32>} : memref<16x512xf32, #tpu.memory_space<vmem>>, vector<16x32xf32>,
    %139 = vector.extract_strided_slice %108 {offsets = [10, 0, 0], sizes = [1, 16, 32], strides = [1, 1, 1]} : vector<16x16x32xf32> to vector<1x16x32xf32>
    %140 = vector.shape_cast %139 : vector<1x16x32xf32> to vector<16x32xf32>
    %c0_138 = arith.constant 0 : index
    %c320 = arith.constant 320 : index
    %141 = vector.load %arg14[%c0_138, %c320] : memref<16x512xf32, #tpu.memory_space<vmem>>, vector<16x32xf32>
    tpu.vector_store %arg14[%c0_138, %c320], %140 {strides = array<i32>} : memref<16x512xf32, #tpu.memory_space<vmem>>, vector<16x32xf32>,
    %142 = vector.extract_strided_slice %108 {offsets = [11, 0, 0], sizes = [1, 16, 32], strides = [1, 1, 1]} : vector<16x16x32xf32> to vector<1x16x32xf32>
    %143 = vector.shape_cast %142 : vector<1x16x32xf32> to vector<16x32xf32>
    %c0_139 = arith.constant 0 : index
    %c352 = arith.constant 352 : index
    %144 = vector.load %arg14[%c0_139, %c352] : memref<16x512xf32, #tpu.memory_space<vmem>>, vector<16x32xf32>
    tpu.vector_store %arg14[%c0_139, %c352], %143 {strides = array<i32>} : memref<16x512xf32, #tpu.memory_space<vmem>>, vector<16x32xf32>,
    %145 = vector.extract_strided_slice %108 {offsets = [12, 0, 0], sizes = [1, 16, 32], strides = [1, 1, 1]} : vector<16x16x32xf32> to vector<1x16x32xf32>
    %146 = vector.shape_cast %145 : vector<1x16x32xf32> to vector<16x32xf32>
    %c0_140 = arith.constant 0 : index
    %c384 = arith.constant 384 : index
    %147 = vector.load %arg14[%c0_140, %c384] : memref<16x512xf32, #tpu.memory_space<vmem>>, vector<16x32xf32>
    tpu.vector_store %arg14[%c0_140, %c384], %146 {strides = array<i32>} : memref<16x512xf32, #tpu.memory_space<vmem>>, vector<16x32xf32>,
    %148 = vector.extract_strided_slice %108 {offsets = [13, 0, 0], sizes = [1, 16, 32], strides = [1, 1, 1]} : vector<16x16x32xf32> to vector<1x16x32xf32>
    %149 = vector.shape_cast %148 : vector<1x16x32xf32> to vector<16x32xf32>
    %c0_141 = arith.constant 0 : index
    %c416 = arith.constant 416 : index
    %150 = vector.load %arg14[%c0_141, %c416] : memref<16x512xf32, #tpu.memory_space<vmem>>, vector<16x32xf32>
    tpu.vector_store %arg14[%c0_141, %c416], %149 {strides = array<i32>} : memref<16x512xf32, #tpu.memory_space<vmem>>, vector<16x32xf32>,
    %151 = vector.extract_strided_slice %108 {offsets = [14, 0, 0], sizes = [1, 16, 32], strides = [1, 1, 1]} : vector<16x16x32xf32> to vector<1x16x32xf32>
    %152 = vector.shape_cast %151 : vector<1x16x32xf32> to vector<16x32xf32>
    %c0_142 = arith.constant 0 : index
    %c448 = arith.constant 448 : index
    %153 = vector.load %arg14[%c0_142, %c448] : memref<16x512xf32, #tpu.memory_space<vmem>>, vector<16x32xf32>
    tpu.vector_store %arg14[%c0_142, %c448], %152 {strides = array<i32>} : memref<16x512xf32, #tpu.memory_space<vmem>>, vector<16x32xf32>,
    %154 = vector.extract_strided_slice %108 {offsets = [15, 0, 0], sizes = [1, 16, 32], strides = [1, 1, 1]} : vector<16x16x32xf32> to vector<1x16x32xf32>
    %155 = vector.shape_cast %154 : vector<1x16x32xf32> to vector<16x32xf32>
    %c0_143 = arith.constant 0 : index
    %c480 = arith.constant 480 : index
    %156 = vector.load %arg14[%c0_143, %c480] : memref<16x512xf32, #tpu.memory_space<vmem>>, vector<16x32xf32>
    tpu.vector_store %arg14[%c0_143, %c480], %155 {strides = array<i32>} : memref<16x512xf32, #tpu.memory_space<vmem>>, vector<16x32xf32>,
    %c0_144 = arith.constant 0 : index
    %c0_145 = arith.constant 0 : index
    %157 = vector.load %arg14[%c0_144, %c0_145] : memref<16x512xf32, #tpu.memory_space<vmem>>, vector<16x512xf32>
    %158 = arith.truncf %157 : vector<16x512xf32> to vector<16x512xbf16>
    %c0_146 = arith.constant 0 : index
    %c0_147 = arith.constant 0 : index
    %159 = vector.load %arg6[%c0_146, %c0_147] : memref<512x128xbf16, #tpu.memory_space<vmem>>, vector<512x128xbf16>
    %cst_148 = arith.constant dense<0.000000e+00> : vector<16x128xf32>
    %160 = tpu.matmul %158, %159, %cst_148 {dimension_numbers = #tpu.dot_dimension_numbers<[1], [0], [0], [1], [0, 0, 1, 1], [], []>} : vector<16x512xbf16>, vector<512x128xbf16>, vector<16x128xf32> -> vector<16x128xf32>
    %c0_149 = arith.constant 0 : index
    %c0_150 = arith.constant 0 : index
    %161 = vector.load %arg7[%c0_149, %c0_150] : memref<1x128xf32, #tpu.memory_space<vmem>>, vector<1x128xf32>
    %162 = vector.broadcast %161 : vector<1x128xf32> to vector<16x128xf32>
    %163 = arith.addf %160, %162 : vector<16x128xf32>
    %cst_151 = arith.constant 0.000000e+00 : f32
    %164 = vector.broadcast %cst_151 : f32 to vector<16x128xf32>
    %165 = arith.maximumf %163, %164 : vector<16x128xf32>
    %c0_152 = arith.constant 0 : index
    %c0_153 = arith.constant 0 : index
    %166 = vector.load %arg11[%c0_152, %c0_153] : memref<16x128xf32, #tpu.memory_space<vmem>>, vector<16x128xf32>
    tpu.vector_store %arg11[%c0_152, %c0_153], %165 {strides = array<i32>} : memref<16x128xf32, #tpu.memory_space<vmem>>, vector<16x128xf32>,
    %167 = arith.truncf %165 : vector<16x128xf32> to vector<16x128xbf16>
    %c0_154 = arith.constant 0 : index
    %c0_155 = arith.constant 0 : index
    %168 = vector.load %arg8[%c0_154, %c0_155] : memref<128x128xbf16, #tpu.memory_space<vmem>>, vector<128x128xbf16>
    %cst_156 = arith.constant dense<0.000000e+00> : vector<16x128xf32>
    %169 = tpu.matmul %167, %168, %cst_156 {dimension_numbers = #tpu.dot_dimension_numbers<[1], [0], [0], [1], [0, 0, 1, 1], [], []>} : vector<16x128xbf16>, vector<128x128xbf16>, vector<16x128xf32> -> vector<16x128xf32>
    %c0_157 = arith.constant 0 : index
    %c0_158 = arith.constant 0 : index
    %170 = vector.load %arg9[%c0_157, %c0_158] : memref<1x128xf32, #tpu.memory_space<vmem>>, vector<1x128xf32>
    %171 = vector.broadcast %170 : vector<1x128xf32> to vector<16x128xf32>
    %172 = arith.addf %169, %171 : vector<16x128xf32>
    %c0_159 = arith.constant 0 : index
    %c0_160 = arith.constant 0 : index
    %173 = vector.load %arg10[%c0_159, %c0_160] : memref<16x128xf32, #tpu.memory_space<vmem>>, vector<16x128xf32>
    tpu.vector_store %arg10[%c0_159, %c0_160], %172 {strides = array<i32>} : memref<16x128xf32, #tpu.memory_space<vmem>>, vector<16x128xf32>,
    return
  }
  func.func @transform_0(%arg0: i32) -> (i32, i32, i32) {
    %c0_i32 = arith.constant 0 : i32
    %c0_i32_0 = arith.constant 0 : i32
    %c0_i32_1 = arith.constant 0 : i32
    return %c0_i32, %arg0, %c0_i32_0 : i32, i32, i32
  }
  func.func @transform_1(%arg0: i32) -> (i32, i32, i32) {
    %c0_i32 = arith.constant 0 : i32
    %c0_i32_0 = arith.constant 0 : i32
    %c0_i32_1 = arith.constant 0 : i32
    %c0_i32_2 = arith.constant 0 : i32
    return %c0_i32, %c0_i32_0, %c0_i32_1 : i32, i32, i32
  }
  func.func @transform_2(%arg0: i32) -> (i32, i32) {
    %c0_i32 = arith.constant 0 : i32
    %c0_i32_0 = arith.constant 0 : i32
    %c0_i32_1 = arith.constant 0 : i32
    return %c0_i32, %c0_i32_0 : i32, i32
  }
  func.func @transform_3(%arg0: i32) -> (i32, i32, i32) {
    %c0_i32 = arith.constant 0 : i32
    %c0_i32_0 = arith.constant 0 : i32
    %c0_i32_1 = arith.constant 0 : i32
    %c0_i32_2 = arith.constant 0 : i32
    return %c0_i32, %c0_i32_0, %c0_i32_1 : i32, i32, i32
  }
  func.func @transform_4(%arg0: i32) -> (i32, i32) {
    %c0_i32 = arith.constant 0 : i32
    %c0_i32_0 = arith.constant 0 : i32
    %c0_i32_1 = arith.constant 0 : i32
    return %c0_i32, %c0_i32_0 : i32, i32
  }
  func.func @transform_5(%arg0: i32) -> (i32, i32) {
    %c0_i32 = arith.constant 0 : i32
    %c0_i32_0 = arith.constant 0 : i32
    %c0_i32_1 = arith.constant 0 : i32
    return %c0_i32, %c0_i32_0 : i32, i32
  }
  func.func @transform_6(%arg0: i32) -> (i32, i32) {
    %c0_i32 = arith.constant 0 : i32
    %c0_i32_0 = arith.constant 0 : i32
    %c0_i32_1 = arith.constant 0 : i32
    return %c0_i32, %c0_i32_0 : i32, i32
  }
  func.func @transform_7(%arg0: i32) -> (i32, i32) {
    %c0_i32 = arith.constant 0 : i32
    %c0_i32_0 = arith.constant 0 : i32
    %c0_i32_1 = arith.constant 0 : i32
    return %c0_i32, %c0_i32_0 : i32, i32
  }
  func.func @transform_8(%arg0: i32) -> (i32, i32) {
    %c0_i32 = arith.constant 0 : i32
    %c0_i32_0 = arith.constant 0 : i32
    %c0_i32_1 = arith.constant 0 : i32
    return %c0_i32, %c0_i32_0 : i32, i32
  }
  func.func @transform_9(%arg0: i32) -> (i32, i32) {
    %c0_i32 = arith.constant 0 : i32
    %c0_i32_0 = arith.constant 0 : i32
    return %arg0, %c0_i32 : i32, i32
  }
  func.func @transform_10(%arg0: i32) -> (i32, i32) {
    %c0_i32 = arith.constant 0 : i32
    %c0_i32_0 = arith.constant 0 : i32
    return %arg0, %c0_i32 : i32, i32
  }
}

</mosaic_0001>

<bundles_post_ra>
// kernel: tile.8
= control target key start
LH: loop header
LB: loop body
LE: loop exit
PB: predicated region body
PF: predicated region fallthrough
CT: control target
= control target key end

     0   :  { %s22_s0 = inlined_call_operand.vmem [shape: f32[32], index: 0, kind: input, shape index: {}]   ;;  %s23_s1 = inlined_call_operand.vmem [shape: f32[4,32], index: 1, kind: output, shape index: {}]  }
   0x1   :  { %v4_v0 = vld [vmem:[%s22_s0] ss:$0 sm:$0xff] }
   0x2   :  { %5 = vst [vmem:[%s23_s1] sm:$0xf] %v4_v0 }

// kernel: tile.9
= control target key start
LH: loop header
LB: loop body
LE: loop exit
PB: predicated region body
PF: predicated region fallthrough
CT: control target
= control target key end

     0   :  { %vm7_vm0 = vcmask 261120   ;;  %s37_s8 = smov 32   ;;  %s38_s9 = smov 64   ;;  %vm13_vm1 = vcmask 1048320   ;;  %vm19_vm2 = vcmask 785920   ;;  %vm25_vm3 = vcmask 523520   ;;  %s55_s0 = inlined_call_operand.vmem [shape: f32[4,32], index: 0, kind: input, shape index: {}]   ;;  %s56_s1 = inlined_call_operand.vmem [shape: f32[1,128], index: 1, kind: output, shape index: {}]  }
   0x1   :  { %v4_v0 = vld [vmem:[%s55_s0] sm:$0xf]  ;;  %s36_s0 = smov 96  }
   0x2   :  { %5 = vst [vmem:[#allocation1] sm:$0xf] %v4_v0 }
   0x9   :  { %v10_v1 = vld [vmem:[#allocation1 + $0x3] sm:$0x1]   ;;  %v22_v2 = vld [vmem:[#allocation1 + $0x1] sm:$0x1]   ;;  %v6_v3 = vld [vmem:[#allocation1] sm:$0x1]  }
   0xa   :  { %11 = vrot.lane.b32.xlu0 %v10_v1, %s36_s0  ;;  %23 = vrot.lane.b32.xlu1 %v22_v2, %s37_s8  ;;  %v16_v4 = vld [vmem:[#allocation1 + $0x2] sm:$0x1]   ;;  %8 = vst.msk [vmem:[#allocation0] sm:$0x1] %vm7_vm0, %v6_v3  }
   0xe   :  { %17 = vrot.lane.b32.xlu0 %v16_v4, %s38_s9 }
  0x7c   :  { %v12_v5 = vpop.permute.xlu0 %11   ;;  %v24_v6 = vpop.permute.xlu1 %23  }
  0x7d   :  { %14 = vst.msk [vmem:[#allocation0] sm:$0x1] %vm13_vm1, %v12_v5  }
  0x80   :  { %v18_v7 = vpop.permute.xlu0 %17  }
  0x81   :  { %20 = vst.msk [vmem:[#allocation0] sm:$0x1] %vm19_vm2, %v18_v7  }
  0x82   :  { %26 = vst.msk [vmem:[#allocation0] sm:$0x1] %vm25_vm3, %v24_v6  }
  0x89   :  { %v30_v8 = vld [vmem:[#allocation0] sm:$0x1] }
  0x8a   :  { %32 = vst [vmem:[%s56_s1] sm:$0x1] %v30_v8 }

// kernel: mnist_net_forward.1
= control target key start
LH: loop header
LB: loop body
LE: loop exit
PB: predicated region body
PF: predicated region fallthrough
CT: control target
= control target key end

     0   :  { %16 = vsyncpa [#allocation6], 0  ;;  %vm321_vm0 = vcmask 523264   ;;  %s10992_s0 = inlined_call_operand.vmem [shape: bf16[36,16,64], index: 0, kind: input, shape index: {}]   ;;  %s10993_s1 = inlined_call_operand.vmem [shape: bf16[4,64,128], index: 1, kind: input, shape index: {}]   ;;  %s10994_s2 = inlined_call_operand.vmem [shape: f32[1,128], index: 2, kind: input, shape index: {}]   ;;  %s10995_s3 = inlined_call_operand.vmem [shape: bf16[9,128,128], index: 3, kind: input, shape index: {}]   ;;  %s10996_s4 = inlined_call_operand.vmem [shape: f32[1,32], index: 4, kind: input, shape index: {}]   ;;  %s10997_s5 = inlined_call_operand.vmem [shape: bf16[512,128], index: 5, kind: input, shape index: {}]   ;;  %s10998_s6 = inlined_call_operand.vmem [shape: f32[1,128], index: 6, kind: input, shape index: {}]   ;;  %s10999_s7 = inlined_call_operand.vmem [shape: bf16[128,128], index: 7, kind: input, shape index: {}]   ;;  %s11000_s8 = inlined_call_operand.vmem [shape: f32[1,128], index: 8, kind: input, shape index: {}]   ;;  %s11001_s9 = inlined_call_operand.hbm [shape: f32[16,128], index: 9, kind: output, shape index: {0}]   ;;  %s11002_s10 = inlined_call_operand.hbm [shape: f32[16,128], index: 10, kind: output, shape index: {1}]  }
   0x1   :  { %v8238_v0 = vld [vmem:[%s10993_s1] sm:$0xff]   ;;  %v8239_v1 = vld [vmem:[%s10993_s1 + $0x8] sm:$0xff]   ;;  %v8240_v2 = vld [vmem:[%s10993_s1 + $0x10] sm:$0xff]  }
   0x2   :  { %7193 = vmatprep.subr.bf16.mxu1 %v8238_v0  ;;  %v8543_v3 = vld [vmem:[%s10992_s0] sm:$0xff]   ;;  %v8241_v4 = vld [vmem:[%s10993_s1 + $0x18] sm:$0xff]   ;;  %v8558_v6 = vld [vmem:[%s10992_s0 + $0x8] sm:$0xff]  }
   0x3   :  { %7194 = vmatpush3.bf16.msra.mxu1 %v8238_v0  ;;  %7201 = vmatprep.mubr.msk.bf16.mxu1 %vm321_vm0, %v8543_v3  ;;  %v8244_v5 = vld [vmem:[%s10993_s1 + $0x20] sm:$0xff]   ;;  %v8563_v7 = vld [vmem:[%s10992_s0 + $0x10] sm:$0xff]   ;;  %v8253_v8 = vld [vmem:[%s10993_s1 + $0x28] sm:$0xff]  }
   0x4   :  { %7195 = vmatprep.subr.bf16.mxu1 %v8239_v1  ;;  %7361 = vmatprep.mubr.msk.bf16.mxu0 %vm321_vm0, %v8543_v3  ;;  %v8575_v9 = vld [vmem:[%s10992_s0 + $0x18] sm:$0xff]   ;;  %v8580_v10 = vld [vmem:[%s10992_s0 + $0x20] sm:$0xff]   ;;  %v8264_v11 = vld [vmem:[%s10993_s1 + $0x30] sm:$0xff]  }
   0x5   :  { %v8592_v12 = vld [vmem:[%s10992_s0 + $0x28] sm:$0xff]   ;;  %v8597_v13 = vld [vmem:[%s10992_s0 + $0x30] sm:$0xff]   ;;  %v8273_v14 = vld [vmem:[%s10993_s1 + $0x38] sm:$0xff]  }
   0x6   :  { %v8609_v15 = vld [vmem:[%s10992_s0 + $0x38] sm:$0xff]   ;;  %v8614_v16 = vld [vmem:[%s10992_s0 + $0x40] sm:$0xff]   ;;  %v8628_v18 = vld [vmem:[%s10993_s1 + $0x48] sm:$0xff]  }
   0x7   :  { %7196 = vmatpush3.bf16.msra.mxu1 %v8239_v1  ;;  %v8621_v17 = vld [vmem:[%s10993_s1 + $0x40] sm:$0xff]   ;;  %v8635_v19 = vld [vmem:[%s10992_s0 + $0x48] sm:$0xff]   ;;  %v8642_v20 = vld [vmem:[%s10993_s1 + $0x50] sm:$0xff]  }
   0x8   :  { %7197 = vmatprep.subr.bf16.mxu1 %v8240_v2  ;;  %7353 = vmatprep.subr.bf16.mxu0 %v8621_v17  ;;  %v8647_v21 = vld [vmem:[%s10992_s0 + $0x50] sm:$0xff]   ;;  %v8652_v22 = vld [vmem:[%s10993_s1 + $0x58] sm:$0xff]   ;;  %v8668_v24 = vld [vmem:[%s10992_s0 + $0x60] sm:$0xff]  }
   0x9   :  { %7354 = vmatpush3.bf16.msra.mxu0 %v8621_v17  ;;  %v8663_v23 = vld [vmem:[%s10992_s0 + $0x58] sm:$0xff]   ;;  %v8680_v25 = vld [vmem:[%s10992_s0 + $0x68] sm:$0xff]   ;;  %v8687_v26 = vld [vmem:[%s10992_s0 + $0x70] sm:$0xff]  }
   0xa   :  { %7355 = vmatprep.subr.bf16.mxu0 %v8628_v18  ;;  %v8698_v27 = vld [vmem:[%s10992_s0 + $0x78] sm:$0xff]   ;;  %v8705_v28 = vld [vmem:[%s10992_s0 + $0x80] sm:$0xff]   ;;  %v8716_v29 = vld [vmem:[%s10992_s0 + $0x88] sm:$0xff]  }
   0xb   :  { %7198 = vmatpush3.bf16.msra.mxu1 %v8240_v2  ;;  %11105 = vst [vmem:[#allocation11_spill] sm:$0xff] %v8716_v29  ;;  %v8723_v30 = vld [vmem:[%s10992_s0 + $0x90] sm:$0xff]   ;;  %v8734_v31 = vld [vmem:[%s10992_s0 + $0x98] sm:$0xff]   ;;  %v8741_v32 = vld [vmem:[%s10992_s0 + $0xa0] sm:$0xff]  }
   0xc   :  { %7199 = vmatprep.subr.bf16.mxu1 %v8241_v4  ;;  %11106 = vst [vmem:[#allocation12_spill] sm:$0xff] %v8723_v30  ;;  %11107 = vst [vmem:[#allocation13_spill] sm:$0xff] %v8734_v31  ;;  %v8750_v33 = vld [vmem:[%s10992_s0 + $0xa8] sm:$0xff]   ;;  %v8755_v34 = vld [vmem:[%s10992_s0 + $0xb0] sm:$0xff]  }
   0xd   :  { %7356 = vmatpush3.bf16.msra.mxu0 %v8628_v18  ;;  %11108 = vst [vmem:[#allocation14_spill] sm:$0xff] %v8741_v32  ;;  %11109 = vst [vmem:[#allocation15_spill] sm:$0xff] %v8750_v33  ;;  %v8764_v35 = vld [vmem:[%s10992_s0 + $0xb8] sm:$0xff]   ;;  %v8769_v36 = vld [vmem:[%s10992_s0 + $0xc0] sm:$0xff]  }
   0xe   :  { %7357 = vmatprep.subr.bf16.mxu0 %v8642_v20  ;;  %11110 = vst [vmem:[#allocation16_spill] sm:$0xff] %v8755_v34  ;;  %11111 = vst [vmem:[#allocation17_spill] sm:$0xff] %v8764_v35  ;;  %v8778_v37 = vld [vmem:[%s10992_s0 + $0xc8] sm:$0xff]   ;;  %v8783_v38 = vld [vmem:[%s10992_s0 + $0xd0] sm:$0xff]  }
   0xf   :  { %7200 = vmatpush3.bf16.msra.mxu1 %v8241_v4  ;;  %11112 = vst [vmem:[#allocation18_spill] sm:$0xff] %v8769_v36  ;;  %11113 = vst [vmem:[#allocation19_spill] sm:$0xff] %v8778_v37  ;;  %v8792_v39 = vld [vmem:[%s10992_s0 + $0xd8] sm:$0xff]   ;;  %v8797_v40 = vld [vmem:[%s10992_s0 + $0xe0] sm:$0xff]  }
  0x10   :  { %7273 = vmatprep.subr.bf16.mxu1 %v8244_v5  ;;  %11114 = vst [vmem:[#allocation20_spill] sm:$0xff] %v8783_v38 }
  0x11   :  { %7358 = vmatpush3.bf16.msra.mxu0 %v8642_v20 }
  0x12   :  { %7202 = vmatmul.mubr.msk.bf16.vlgmr.msra.gmra.mrb[0].mxu1 %vm321_vm0, %v8558_v6  ;;  %7359 = vmatprep.subr.bf16.mxu0 %v8652_v22 }
  0x13   :  { %7274 = vmatpush3.bf16.msra.mxu1 %v8244_v5  ;;  %7205 = vmatprep.mubr.msk.bf16.mxu1 %vm321_vm0, %v8563_v7 }
  0x14   :  { %7275 = vmatprep.subr.bf16.mxu1 %v8253_v8 }
  0x15   :  { %7360 = vmatpush3.bf16.msra.mxu0 %v8652_v22 }
  0x17   :  { %7276 = vmatpush3.bf16.msra.mxu1 %v8253_v8 }
  0x18   :  { %7277 = vmatprep.subr.bf16.mxu1 %v8264_v11  ;;  %7362 = vmatmul.mubr.msk.bf16.vlgmr.msra.gmra.mrb[0].mxu0 %vm321_vm0, %v8558_v6 }
  0x19   :  { %7365 = vmatprep.mubr.msk.bf16.mxu0 %vm321_vm0, %v8563_v7 }
  0x1a   :  { %7206 = vmatmul.mubr.msk.bf16.gmra.mrb[4].mxu1 %vm321_vm0, %v8575_v9 }
  0x1b   :  { %7209 = vmatprep.mubr.msk.bf16.mxu1 %vm321_vm0, %v8580_v10  ;;  %7278 = vmatpush3.bf16.msra.mxu1 %v8264_v11 }
  0x1c   :  { %7279 = vmatprep.subr.bf16.mxu1 %v8273_v14 }
  0x1f   :  { %7280 = vmatpush3.bf16.msra.mxu1 %v8273_v14 }
  0x20   :  { %7965 = vmatprep.subr.bf16.mxu1 %v8621_v17  ;;  %7366 = vmatmul.mubr.msk.bf16.gmra.mrb[4].mxu0 %vm321_vm0, %v8575_v9 }
  0x21   :  { %7369 = vmatprep.mubr.msk.bf16.mxu0 %vm321_vm0, %v8580_v10 }
  0x22   :  { %7210 = vmatmul.mubr.msk.bf16.gmra.mrb[8].mxu1 %vm321_vm0, %v8592_v12 }
  0x23   :  { %7213 = vmatprep.mubr.msk.bf16.mxu1 %vm321_vm0, %v8597_v13 }
  0x28   :  { %7370 = vmatmul.mubr.msk.bf16.gmra.mrb[8].mxu0 %vm321_vm0, %v8592_v12 }
  0x29   :  { %7373 = vmatprep.mubr.msk.bf16.mxu0 %vm321_vm0, %v8597_v13 }
  0x2a   :  { %7214 = vmatmul.mubr.msk.bf16.gmra.mrb[12].mxu1 %vm321_vm0, %v8609_v15 }
  0x2b   :  { %7217 = vmatprep.mubr.msk.bf16.mxu1 %vm321_vm0, %v8614_v16 }
  0x30   :  { %7374 = vmatmul.mubr.msk.bf16.gmra.mrb[12].mxu0 %vm321_vm0, %v8609_v15 }
  0x32   :  { %7218 = vmatmul.mubr.msk.bf16.gmra.mrb[16].mxu1 %vm321_vm0, %v8635_v19 }
  0x33   :  { %7221 = vmatprep.mubr.msk.bf16.mxu1 %vm321_vm0, %v8647_v21 }
  0x3a   :  { %7222 = vmatmul.mubr.msk.bf16.gmra.mrb[20].mxu1 %vm321_vm0, %v8663_v23 }
  0x3b   :  { %7225 = vmatprep.mubr.msk.bf16.mxu1 %vm321_vm0, %v8668_v24 }
  0x42   :  { %7226 = vmatmul.mubr.msk.bf16.gmra.mrb[24].mxu1 %vm321_vm0, %v8680_v25 }
  0x43   :  { %7229 = vmatprep.mubr.msk.bf16.mxu1 %vm321_vm0, %v8687_v26 }
  0x4a   :  { %7230 = vmatmul.mubr.msk.bf16.gmra.mrb[28].mxu1 %vm321_vm0, %v8698_v27 }
  0x4b   :  { %7233 = vmatprep.mubr.msk.bf16.mxu1 %vm321_vm0, %v8705_v28 }
  0x52   :  { %7234 = vmatmul.mubr.msk.bf16.gmra.mrb[32].mxu1 %vm321_vm0, %v8716_v29 }
  0x53   :  { %7237 = vmatprep.mubr.msk.bf16.mxu1 %vm321_vm0, %v8723_v30 }
  0x5a   :  { %7238 = vmatmul.mubr.msk.bf16.gmra.mrb[36].mxu1 %vm321_vm0, %v8734_v31 }
  0x5b   :  { %7241 = vmatprep.mubr.msk.bf16.mxu1 %vm321_vm0, %v8741_v32 }
  0x62   :  { %7242 = vmatmul.mubr.msk.bf16.gmra.mrb[40].mxu1 %vm321_vm0, %v8750_v33 }
  0x63   :  { %7245 = vmatprep.mubr.msk.bf16.mxu1 %vm321_vm0, %v8755_v34 }
  0x6a   :  { %7246 = vmatmul.mubr.msk.bf16.gmra.mrb[44].mxu1 %vm321_vm0, %v8764_v35 }
  0x6b   :  { %7249 = vmatprep.mubr.msk.bf16.mxu1 %vm321_vm0, %v8769_v36 }
  0x72   :  { %7250 = vmatmul.mubr.msk.bf16.gmra.mrb[48].mxu1 %vm321_vm0, %v8778_v37 }
  0x73   :  { %7253 = vmatprep.mubr.msk.bf16.mxu1 %vm321_vm0, %v8783_v38 }
  0x7a   :  { %7254 = vmatmul.mubr.msk.bf16.gmra.mrb[52].mxu1 %vm321_vm0, %v8792_v39 }
  0x7b   :  { %7257 = vmatprep.mubr.msk.bf16.mxu1 %vm321_vm0, %v8797_v40 }
  0x7c   :  { %17 = vsyncpa [#allocation8], 0  ;;  %v8806_v41 = vld [vmem:[%s10992_s0 + $0xe8] sm:$0xff]   ;;  %v8811_v42 = vld [vmem:[%s10992_s0 + $0xf0] sm:$0xff]   ;;  %s8468_s16 = smov 64   ;;  %vm5660_vm1 = vcmask 261120  }
  0x7d   :  { %v8820_v43 = vld [vmem:[%s10992_s0 + $0xf8] sm:$0xff]   ;;  %v8825_v44 = vld [vmem:[%s10992_s0 + $0x100] sm:$0xff]   ;;  %v8834_v45 = vld [vmem:[%s10992_s0 + $0x108] sm:$0xff]   ;;  %vm5671_vm2 = vcmask 523520   ;;  %vm5682_vm3 = vcmask 785920   ;;  %vm5693_vm4 = vcmask 1048320  }
  0x7e   :  { %11115 = vst [vmem:[#allocation21_spill] sm:$0xff] %v8834_v45  ;;  %v8839_v46 = vld [vmem:[%s10992_s0 + $0x110] sm:$0xff]   ;;  %v8848_v47 = vld [vmem:[%s10992_s0 + $0x118] sm:$0xff]   ;;  %v8874_v48 = vld [vmem:[%s10993_s1 + $0x60] sm:$0xff]   ;;  %vm8471_vm5 = vmmov 0  }
  0x7f   :  { %11116 = vst [vmem:[#allocation22_spill] sm:$0xff] %v8839_v46  ;;  %11117 = vst [vmem:[#allocation23_spill] sm:$0xff] %v8848_v47 }
  0x82   :  { %7258 = vmatmul.mubr.msk.bf16.gmra.mrb[56].mxu1 %vm321_vm0, %v8806_v41 }
  0x83   :  { %7261 = vmatprep.mubr.msk.bf16.mxu1 %vm321_vm0, %v8811_v42 }
  0x8a   :  { %7262 = vmatmul.mubr.msk.bf16.gmra.mrb[60].mxu1 %vm321_vm0, %v8820_v43 }
  0x8b   :  { %7265 = vmatprep.mubr.msk.bf16.mxu1 %vm321_vm0, %v8825_v44 }
  0x92   :  { %7266 = vmatmul.mubr.msk.bf16.gmra.mrb[64].mxu1 %vm321_vm0, %v8834_v45 }
  0x93   :  { %7269 = vmatprep.mubr.msk.bf16.mxu1 %vm321_vm0, %v8839_v46 }
  0x9a   :  { %7270 = vmatmul.mubr.msk.bf16.gmra.mrb[68].mxu1 %vm321_vm0, %v8848_v47 }
  0x9b   :  { %7281 = vmatprep.mubr.msk.bf16.mxu1 %vm321_vm0, %v8543_v3 }
  0xa2   :  { %7282 = vmatmul.mubr.msk.bf16.vlgmr.msra.gmra.mrb[72].mxu1 %vm321_vm0, %v8558_v6 }
  0xa3   :  { %7969 = vmatpush3.bf16.msra.mxu1 %v8621_v17  ;;  %7285 = vmatprep.mubr.msk.bf16.mxu1 %vm321_vm0, %v8563_v7 }
  0xa4   :  { %7966 = vmatprep.subr.bf16.mxu1 %v8628_v18 }
  0xa7   :  { %7970 = vmatpush3.bf16.msra.mxu1 %v8628_v18 }
  0xa8   :  { %7967 = vmatprep.subr.bf16.mxu1 %v8642_v20 }
  0xaa   :  { %7286 = vmatmul.mubr.msk.bf16.gmra.mrb[76].mxu1 %vm321_vm0, %v8575_v9 }
  0xab   :  { %7289 = vmatprep.mubr.msk.bf16.mxu1 %vm321_vm0, %v8580_v10  ;;  %7971 = vmatpush3.bf16.msra.mxu1 %v8642_v20 }
  0xac   :  { %7968 = vmatprep.subr.bf16.mxu1 %v8652_v22 }
  0xaf   :  { %7972 = vmatpush3.bf16.msra.mxu1 %v8652_v22 }
  0xb0   :  { %7433 = vmatprep.subr.bf16.mxu1 %v8874_v48 }
  0xb2   :  { %7290 = vmatmul.mubr.msk.bf16.gmra.mrb[80].mxu1 %vm321_vm0, %v8592_v12 }
  0xb3   :  { %7293 = vmatprep.mubr.msk.bf16.mxu1 %vm321_vm0, %v8597_v13 }
  0xba   :  { %7294 = vmatmul.mubr.msk.bf16.gmra.mrb[84].mxu1 %vm321_vm0, %v8609_v15 }
  0xbb   :  { %7297 = vmatprep.mubr.msk.bf16.mxu1 %vm321_vm0, %v8614_v16 }
  0xc2   :  { %7298 = vmatmul.mubr.msk.bf16.gmra.mrb[88].mxu1 %vm321_vm0, %v8635_v19 }
  0xc3   :  { %7301 = vmatprep.mubr.msk.bf16.mxu1 %vm321_vm0, %v8647_v21 }
  0xca   :  { %7302 = vmatmul.mubr.msk.bf16.gmra.mrb[92].mxu1 %vm321_vm0, %v8663_v23 }
  0xcb   :  { %7305 = vmatprep.mubr.msk.bf16.mxu1 %vm321_vm0, %v8668_v24 }
  0xd2   :  { %7306 = vmatmul.mubr.msk.bf16.gmra.mrb[96].mxu1 %vm321_vm0, %v8680_v25 }
  0xd3   :  { %7309 = vmatprep.mubr.msk.bf16.mxu1 %vm321_vm0, %v8687_v26 }
  0xda   :  { %7310 = vmatmul.mubr.msk.bf16.gmra.mrb[100].mxu1 %vm321_vm0, %v8698_v27 }
  0xdb   :  { %7313 = vmatprep.mubr.msk.bf16.mxu1 %vm321_vm0, %v8705_v28 }
  0xe2   :  { %7314 = vmatmul.mubr.msk.bf16.gmra.mrb[104].mxu1 %vm321_vm0, %v8716_v29 }
  0xe3   :  { %7317 = vmatprep.mubr.msk.bf16.mxu1 %vm321_vm0, %v8723_v30 }
  0xe5   :  { %v8903_v49 = vpop.f32.mrb[0].mxu1 }
  0xe6   :  { %v8905_v50 = vpop.f32.mrb[1].mxu1 }
  0xe7   :  { %v8907_v51 = vpop.f32.mrb[2].mxu1 }
  0xe8   :  { %v8909_v52 = vpop.f32.mrb[3].mxu1 }
  0xea   :  { %7318 = vmatmul.mubr.msk.bf16.gmra.mrb[108].mxu1 %vm321_vm0, %v8734_v31 }
  0xeb   :  { %7321 = vmatprep.mubr.msk.bf16.mxu1 %vm321_vm0, %v8741_v32  ;;  %v8969_v8 = vpop.f32.mrb[0].mxu0 }
  0xec   :  { %v8973_v10 = vpop.f32.mrb[1].mxu0 }
  0xed   :  { %v8915_v53 = vpop.f32.mrb[4].mxu1  ;;  %v8975_v11 = vpop.f32.mrb[2].mxu0 }
  0xee   :  { %v8917_v54 = vpop.f32.mrb[5].mxu1  ;;  %v8979_v12 = vpop.f32.mrb[3].mxu0 }
  0xef   :  { %v8919_v55 = vpop.f32.mrb[6].mxu1 }
  0xf0   :  { %v8921_v56 = vpop.f32.mrb[7].mxu1 }
  0xf2   :  { %7322 = vmatmul.mubr.msk.bf16.gmra.mrb[112].mxu1 %vm321_vm0, %v8750_v33 }
  0xf3   :  { %7325 = vmatprep.mubr.msk.bf16.mxu1 %vm321_vm0, %v8755_v34  ;;  %v8989_v17 = vpop.f32.mrb[4].mxu0 }
  0xf4   :  { %v8993_v20 = vpop.f32.mrb[5].mxu0 }
  0xf5   :  { %v8927_v57 = vpop.f32.mrb[8].mxu1  ;;  %v8995_v22 = vpop.f32.mrb[6].mxu0 }
  0xf6   :  { %v8929_v58 = vpop.f32.mrb[9].mxu1 }
  0xf7   :  { %v8931_v59 = vpop.f32.mrb[10].mxu1 }
  0xf8   :  { %v8933_v60 = vpop.f32.mrb[11].mxu1 }
  0xfa   :  { %7326 = vmatmul.mubr.msk.bf16.gmra.mrb[116].mxu1 %vm321_vm0, %v8764_v35 }
  0xfb   :  { %7329 = vmatprep.mubr.msk.bf16.mxu1 %vm321_vm0, %v8769_v36 }
  0xfd   :  { %v8939_v61 = vpop.f32.mrb[12].mxu1 }
  0xfe   :  { %v8941_v62 = vpop.f32.mrb[13].mxu1 }
  0xff   :  { %v8943_v63 = vpop.f32.mrb[14].mxu1 }
 0x100   :  { %v8945_v0 = vpop.f32.mrb[15].mxu1 }
 0x102   :  { %7330 = vmatmul.mubr.msk.bf16.gmra.mrb[120].mxu1 %vm321_vm0, %v8778_v37 }
 0x103   :  { %7333 = vmatprep.mubr.msk.bf16.mxu1 %vm321_vm0, %v8783_v38 }
 0x105   :  { %v8951_v1 = vpop.f32.mrb[16].mxu1 }
 0x106   :  { %11118 = vst [vmem:[#allocation24_spill] sm:$0xff] %v8951_v1  ;;  %v8953_v2 = vpop.f32.mrb[17].mxu1 }
 0x107   :  { %11119 = vst [vmem:[#allocation25_spill] sm:$0xff] %v8953_v2  ;;  %v8955_v3 = vpop.f32.mrb[18].mxu1 }
 0x108   :  { %11120 = vst [vmem:[#allocation26_spill] sm:$0xff] %v8955_v3  ;;  %v8957_v4 = vpop.f32.mrb[19].mxu1 }
 0x109   :  { %11121 = vst [vmem:[#allocation27_spill] sm:$0xff] %v8957_v4 }
 0x10a   :  { %7334 = vmatmul.mubr.msk.bf16.gmra.mrb[124].mxu1 %vm321_vm0, %v8792_v39 }
 0x10b   :  { %7337 = vmatprep.mubr.msk.bf16.mxu1 %vm321_vm0, %v8797_v40 }
 0x10d   :  { %v8963_v5 = vpop.f32.mrb[20].mxu1 }
 0x10e   :  { %11122 = vst [vmem:[#allocation28_spill] sm:$0xff] %v8963_v5  ;;  %v8965_v6 = vpop.f32.mrb[21].mxu1 }
 0x10f   :  { %11123 = vst [vmem:[#allocation29_spill] sm:$0xff] %v8965_v6  ;;  %v8967_v7 = vpop.f32.mrb[22].mxu1 }
 0x110   :  { %11124 = vst [vmem:[#allocation30_spill] sm:$0xff] %v8967_v7  ;;  %v8971_v9 = vpop.f32.mrb[23].mxu1 }
 0x111   :  { %11125 = vst [vmem:[#allocation31_spill] sm:$0xff] %v8971_v9  ;;  %v8999_v9 = vpop.f32.mrb[7].mxu0 }
 0x112   :  { %7338 = vmatmul.mubr.msk.bf16.gmra.mrb[128].mxu1 %vm321_vm0, %v8806_v41  ;;  %v9009_v7 = vpop.f32.mrb[8].mxu0 }
 0x113   :  { %7341 = vmatprep.mubr.msk.bf16.mxu1 %vm321_vm0, %v8811_v42  ;;  %v9013_v6 = vpop.f32.mrb[9].mxu0 }
 0x114   :  { %v9015_v5 = vpop.f32.mrb[10].mxu0 }
 0x115   :  { %v8983_v13 = vpop.f32.mrb[24].mxu1  ;;  %v9019_v4 = vpop.f32.mrb[11].mxu0 }
 0x116   :  { %11126 = vst [vmem:[#allocation32_spill] sm:$0xff] %v8983_v13  ;;  %v8985_v14 = vpop.f32.mrb[25].mxu1  ;;  %v9029_v3 = vpop.f32.mrb[12].mxu0 }
 0x117   :  { %11127 = vst [vmem:[#allocation33_spill] sm:$0xff] %v8985_v14  ;;  %v8987_v15 = vpop.f32.mrb[26].mxu1  ;;  %v9033_v2 = vpop.f32.mrb[13].mxu0 }
 0x118   :  { %11128 = vst [vmem:[#allocation34_spill] sm:$0xff] %v8987_v15  ;;  %v8991_v18 = vpop.f32.mrb[27].mxu1  ;;  %v9035_v1 = vpop.f32.mrb[14].mxu0 }
 0x119   :  { %11129 = vst [vmem:[#allocation35_spill] sm:$0xff] %v8991_v18 }
 0x11a   :  { %7342 = vmatmul.mubr.msk.bf16.gmra.mrb[132].mxu1 %vm321_vm0, %v8820_v43 }
 0x11b   :  { %7345 = vmatprep.mubr.msk.bf16.mxu1 %vm321_vm0, %v8825_v44 }
 0x11d   :  { %v9003_v13 = vpop.f32.mrb[28].mxu1 }
 0x11e   :  { %11130 = vst [vmem:[#allocation36_spill] sm:$0xff] %v9003_v13  ;;  %v9005_v14 = vpop.f32.mrb[29].mxu1 }
 0x11f   :  { %11131 = vst [vmem:[#allocation37_spill] sm:$0xff] %v9005_v14  ;;  %v9007_v15 = vpop.f32.mrb[30].mxu1 }
 0x120   :  { %11132 = vst [vmem:[#allocation38_spill] sm:$0xff] %v9007_v15  ;;  %v9011_v18 = vpop.f32.mrb[31].mxu1 }
 0x121   :  { %11133 = vst [vmem:[#allocation39_spill] sm:$0xff] %v9011_v18 }
 0x122   :  { %7346 = vmatmul.mubr.msk.bf16.gmra.mrb[136].mxu1 %vm321_vm0, %v8834_v45  ;;  %v9039_v45 = vpop.f32.mrb[15].mxu0 }
 0x123   :  { %7349 = vmatprep.mubr.msk.bf16.mxu1 %vm321_vm0, %v8839_v46 }
 0x125   :  { %v9023_v13 = vpop.f32.mrb[32].mxu1 }
 0x126   :  { %11134 = vst [vmem:[#allocation40_spill] sm:$0xff] %v9023_v13  ;;  %v9025_v14 = vpop.f32.mrb[33].mxu1 }
 0x127   :  { %11135 = vst [vmem:[#allocation41_spill] sm:$0xff] %v9025_v14  ;;  %v9027_v15 = vpop.f32.mrb[34].mxu1 }
 0x128   :  { %11136 = vst [vmem:[#allocation42_spill] sm:$0xff] %v9027_v15  ;;  %v9031_v18 = vpop.f32.mrb[35].mxu1 }
 0x129   :  { %11137 = vst [vmem:[#allocation43_spill] sm:$0xff] %v9031_v18  ;;  %v8287_v18 = vld [vmem:[%s10993_s1 + $0x68] sm:$0xff]  }
 0x12a   :  { %7350 = vmatmul.mubr.msk.bf16.gmra.mrb[140].mxu1 %vm321_vm0, %v8848_v47 }
 0x12b   :  { %7377 = vmatprep.mubr.msk.bf16.mxu1 %vm321_vm0, %v8614_v16  ;;  %v8288_v16 = vld [vmem:[%s10993_s1 + $0x70] sm:$0xff]  }
 0x12d   :  { %v9043_v13 = vpop.f32.mrb[36].mxu1 }
 0x12e   :  { %11138 = vst [vmem:[#allocation44_spill] sm:$0xff] %v9043_v13  ;;  %v9045_v14 = vpop.f32.mrb[37].mxu1 }
 0x12f   :  { %11139 = vst [vmem:[#allocation45_spill] sm:$0xff] %v9045_v14  ;;  %v9047_v15 = vpop.f32.mrb[38].mxu1 }
 0x130   :  { %11140 = vst [vmem:[#allocation46_spill] sm:$0xff] %v9047_v15  ;;  %v9049_v46 = vpop.f32.mrb[39].mxu1 }
 0x131   :  { %11141 = vst [vmem:[#allocation47_spill] sm:$0xff] %v9049_v46 }
 0x132   :  { %7378 = vmatmul.mubr.msk.bf16.vlgmr.msra.gmra.mrb[144].mxu1 %vm321_vm0, %v8635_v19  ;;  %v8289_v19 = vld [vmem:[%s10993_s1 + $0x78] sm:$0xff]  }
 0x133   :  { %7434 = vmatpush3.bf16.msra.mxu1 %v8874_v48  ;;  %7381 = vmatprep.mubr.msk.bf16.mxu1 %vm321_vm0, %v8647_v21 }
 0x134   :  { %7435 = vmatprep.subr.bf16.mxu1 %v8287_v18 }
 0x135   :  { %v9062_v15 = vpop.f32.mrb[40].mxu1 }
 0x136   :  { %v9064_v46 = vpop.f32.mrb[41].mxu1 }
 0x137   :  { %11142 = vst [vmem:[#allocation48_spill] sm:$0xff] %v9064_v46  ;;  %v9066_v14 = vpop.f32.mrb[42].mxu1  ;;  %7436 = vmatpush3.bf16.msra.mxu1 %v8287_v18  ;;  %v8415_v46 = vld [vmem:[%s10992_s0 + $0x68] sm:$0xff]  }
 0x138   :  { %11143 = vst [vmem:[#allocation49_spill] sm:$0xff] %v9066_v14  ;;  %v9068_v13 = vpop.f32.mrb[43].mxu1  ;;  %7437 = vmatprep.subr.bf16.mxu1 %v8288_v16 }
 0x139   :  { %11144 = vst [vmem:[#allocation50_spill] sm:$0xff] %v9068_v13 }
 0x13a   :  { %7382 = vmatmul.mubr.msk.bf16.gmra.mrb[148].mxu1 %vm321_vm0, %v8663_v23 }
 0x13b   :  { %7385 = vmatprep.mubr.msk.bf16.mxu1 %vm321_vm0, %v8668_v24  ;;  %7438 = vmatpush3.bf16.msra.mxu1 %v8288_v16 }
 0x13c   :  { %7439 = vmatprep.subr.bf16.mxu1 %v8289_v19 }
 0x13d   :  { %v9077_v21 = vpop.f32.mrb[44].mxu1 }
 0x13e   :  { %11145 = vst [vmem:[#allocation51_spill] sm:$0xff] %v9077_v21  ;;  %v9079_v48 = vpop.f32.mrb[45].mxu1 }
 0x13f   :  { %11146 = vst [vmem:[#allocation52_spill] sm:$0xff] %v9079_v48  ;;  %v9081_v18 = vpop.f32.mrb[46].mxu1  ;;  %7440 = vmatpush3.bf16.msra.mxu1 %v8289_v19  ;;  %v8417_v48 = vld [vmem:[%s10992_s0 + $0x78] sm:$0xff]  }
 0x140   :  { %11147 = vst [vmem:[#allocation53_spill] sm:$0xff] %v9081_v18  ;;  %v9083_v13 = vpop.f32.mrb[47].mxu1 }
 0x141   :  { %11148 = vst [vmem:[#allocation54_spill] sm:$0xff] %v9083_v13 }
 0x142   :  { %7386 = vmatmul.mubr.msk.bf16.gmra.mrb[152].mxu1 %vm321_vm0, %v8680_v25 }
 0x143   :  { %7389 = vmatprep.mubr.msk.bf16.mxu1 %vm321_vm0, %v8687_v26 }
 0x145   :  { %v9089_v23 = vpop.f32.mrb[48].mxu1 }
 0x146   :  { %v9091_v24 = vpop.f32.mrb[49].mxu1 }
 0x147   :  { %11149 = vst [vmem:[#allocation55_spill] sm:$0xff] %v9091_v24  ;;  %v9093_v16 = vpop.f32.mrb[50].mxu1 }
 0x148   :  { %11150 = vst [vmem:[#allocation56_spill] sm:$0xff] %v9093_v16  ;;  %v9095_v21 = vpop.f32.mrb[51].mxu1 }
 0x149   :  { %11151 = vst [vmem:[#allocation57_spill] sm:$0xff] %v9095_v21 }
 0x14a   :  { %7390 = vmatmul.mubr.msk.bf16.gmra.mrb[156].mxu1 %vm321_vm0, %v8698_v27 }
 0x14b   :  { %7393 = vmatprep.mubr.msk.bf16.mxu1 %vm321_vm0, %v8705_v28 }
 0x14d   :  { %v9101_v19 = vpop.f32.mrb[52].mxu1 }
 0x14e   :  { %v9103_v25 = vpop.f32.mrb[53].mxu1 }
 0x14f   :  { %v9105_v13 = vpop.f32.mrb[54].mxu1 }
 0x150   :  { %11152 = vst [vmem:[#allocation58_spill] sm:$0xff] %v9105_v13  ;;  %v9107_v26 = vpop.f32.mrb[55].mxu1 }
 0x151   :  { %11153 = vst [vmem:[#allocation59_spill] sm:$0xff] %v9107_v26 }
 0x152   :  { %7394 = vmatmul.mubr.msk.bf16.gmra.mrb[160].mxu1 %vm321_vm0, %v8716_v29 }
 0x153   :  { %7397 = vmatprep.mubr.msk.bf16.mxu1 %vm321_vm0, %v8723_v30 }
 0x155   :  { %v9113_v21 = vpop.f32.mrb[56].mxu1 }
 0x156   :  { %11154 = vst [vmem:[#allocation60_spill] sm:$0xff] %v9113_v21  ;;  %v9115_v27 = vpop.f32.mrb[57].mxu1  ;;  %v11246_v21 = vld [vmem:[#allocation13_spill] sm:$0xff] }
 0x157   :  { %v9117_v16 = vpop.f32.mrb[58].mxu1 }
 0x158   :  { %11155 = vst [vmem:[#allocation61_spill] sm:$0xff] %v9117_v16  ;;  %v9119_v28 = vpop.f32.mrb[59].mxu1 }
 0x159   :  { %11156 = vst [vmem:[#allocation62_spill] sm:$0xff] %v9119_v28 }
 0x15a   :  { %7398 = vmatmul.mubr.msk.bf16.gmra.mrb[164].mxu1 %vm321_vm0, %v8734_v31 }
 0x15b   :  { %7401 = vmatprep.mubr.msk.bf16.mxu1 %vm321_vm0, %v8741_v32 }
 0x15d   :  { %v9125_v26 = vpop.f32.mrb[60].mxu1 }
 0x15e   :  { %11157 = vst [vmem:[#allocation63_spill] sm:$0xff] %v9125_v26  ;;  %v9127_v29 = vpop.f32.mrb[61].mxu1  ;;  %v11254_v26 = vld [vmem:[#allocation15_spill] sm:$0xff] }
 0x15f   :  { %11158 = vst [vmem:[#allocation64_spill] sm:$0xff] %v9127_v29  ;;  %v9129_v13 = vpop.f32.mrb[62].mxu1 }
 0x160   :  { %11159 = vst [vmem:[#allocation65_spill] sm:$0xff] %v9129_v13  ;;  %v9131_v30 = vpop.f32.mrb[63].mxu1 }
 0x161   :  { %11160 = vst [vmem:[#allocation66_spill] sm:$0xff] %v9131_v30 }
 0x162   :  { %7402 = vmatmul.mubr.msk.bf16.gmra.mrb[168].mxu1 %vm321_vm0, %v8750_v33 }
 0x163   :  { %7405 = vmatprep.mubr.msk.bf16.mxu1 %vm321_vm0, %v8755_v34 }
 0x165   :  { %v9137_v28 = vpop.f32.mrb[64].mxu1 }
 0x166   :  { %11161 = vst [vmem:[#allocation67_spill] sm:$0xff] %v9137_v28  ;;  %v9139_v31 = vpop.f32.mrb[65].mxu1  ;;  %v11263_v28 = vld [vmem:[#allocation17_spill] sm:$0xff] }
 0x167   :  { %11162 = vst [vmem:[#allocation68_spill] sm:$0xff] %v9139_v31  ;;  %v9141_v16 = vpop.f32.mrb[66].mxu1 }
 0x168   :  { %11163 = vst [vmem:[#allocation69_spill] sm:$0xff] %v9141_v16  ;;  %v9143_v32 = vpop.f32.mrb[67].mxu1 }
 0x169   :  { %11164 = vst [vmem:[#allocation70_spill] sm:$0xff] %v9143_v32 }
 0x16a   :  { %7406 = vmatmul.mubr.msk.bf16.gmra.mrb[172].mxu1 %vm321_vm0, %v8764_v35 }
 0x16b   :  { %7409 = vmatprep.mubr.msk.bf16.mxu1 %vm321_vm0, %v8769_v36 }
 0x16d   :  { %v9149_v30 = vpop.f32.mrb[68].mxu1 }
 0x16e   :  { %11165 = vst [vmem:[#allocation71_spill] sm:$0xff] %v9149_v30  ;;  %v9151_v33 = vpop.f32.mrb[69].mxu1 }
 0x16f   :  { %11166 = vst [vmem:[#allocation72_spill] sm:$0xff] %v9151_v33  ;;  %v9153_v13 = vpop.f32.mrb[70].mxu1 }
 0x170   :  { %11167 = vst [vmem:[#allocation73_spill] sm:$0xff] %v9153_v13  ;;  %v9155_v34 = vpop.f32.mrb[71].mxu1 }
 0x171   :  { %11168 = vst [vmem:[#allocation74_spill] sm:$0xff] %v9155_v34 }
 0x172   :  { %7410 = vmatmul.mubr.msk.bf16.gmra.mrb[176].mxu1 %vm321_vm0, %v8778_v37 }
 0x173   :  { %7413 = vmatprep.mubr.msk.bf16.mxu1 %vm321_vm0, %v8783_v38 }
 0x175   :  { %v7283_v32 = vpop.f32.mrb[72].mxu1 }
 0x176   :  { %v1107_v35 = vmax.f32 %v8903_v49, %v7283_v32  ;;  %v818_v16 = vpop.f32.mrb[73].mxu1 }
 0x177   :  { %v1105_v36 = vmax.f32 %v8905_v50, %v818_v16  ;;  %v7284_v31 = vpop.f32.mrb[74].mxu1 }
 0x178   :  { %v1108_v30 = vmax.f32 %v8907_v51, %v7284_v31  ;;  %v9165_v33 = vmax.f32 %v1107_v35, %v8969_v8  ;;  %v821_v13 = vpop.f32.mrb[75].mxu1 }
 0x179   :  { %v1106_v34 = vmax.f32 %v8909_v52, %v821_v13  ;;  %v9169_v37 = vmax.f32 %v1105_v36, %v8973_v10 }
 0x17a   :  { %11169 = vst [vmem:[#allocation75_spill] sm:$0xff] %v9165_v33  ;;  %v9172_v38 = vmax.f32 %v1108_v30, %v8975_v11  ;;  %7414 = vmatmul.mubr.msk.bf16.gmra.mrb[180].mxu1 %vm321_vm0, %v8792_v39 }
 0x17b   :  { %11170 = vst [vmem:[#allocation76_spill] sm:$0xff] %v9169_v37  ;;  %v9177_v32 = vmax.f32 %v1106_v34, %v8979_v12  ;;  %7417 = vmatprep.mubr.msk.bf16.mxu1 %vm321_vm0, %v8797_v40  ;;  %v8410_v37 = vld [vmem:[%s10992_s0 + $0x40] sm:$0xff]  }
 0x17c   :  { %11171 = vst [vmem:[#allocation77_spill] sm:$0xff] %v9172_v38 }
 0x17d   :  { %11172 = vst [vmem:[#allocation78_spill] sm:$0xff] %v9177_v32  ;;  %v7287_v31 = vpop.f32.mrb[76].mxu1 }
 0x17e   :  { %v1111_v35 = vmax.f32 %v8915_v53, %v7287_v31  ;;  %v834_v49 = vpop.f32.mrb[77].mxu1 }
 0x17f   :  { %v1109_v50 = vmax.f32 %v8917_v54, %v834_v49  ;;  %v7288_v36 = vpop.f32.mrb[78].mxu1 }
 0x180   :  { %v1112_v51 = vmax.f32 %v8919_v55, %v7288_v36  ;;  %v9185_v30 = vmax.f32 %v1111_v35, %v8989_v17  ;;  %v837_v52 = vpop.f32.mrb[79].mxu1  ;;  %v11184_v36 = vld [vmem:[#allocation21_spill] sm:$0xff] }
 0x181   :  { %v1110_v8 = vmax.f32 %v8921_v56, %v837_v52  ;;  %v9189_v34 = vmax.f32 %v1109_v50, %v8993_v20 }
 0x182   :  { %11173 = vst [vmem:[#allocation79_spill] sm:$0xff] %v9185_v30  ;;  %v9192_v10 = vmax.f32 %v1112_v51, %v8995_v22  ;;  %7418 = vmatmul.mubr.msk.bf16.gmra.mrb[184].mxu1 %vm321_vm0, %v8806_v41  ;;  %v8407_v30 = vld [vmem:[%s10992_s0 + $0x28] sm:$0xff]  }
 0x183   :  { %11174 = vst [vmem:[#allocation80_spill] sm:$0xff] %v9189_v34  ;;  %v9197_v53 = vmax.f32 %v1110_v8, %v8999_v9  ;;  %7421 = vmatprep.mubr.msk.bf16.mxu1 %vm321_vm0, %v8811_v42  ;;  %v11189_v8 = vld [vmem:[#allocation26_spill] sm:$0xff]  ;;  %v11203_v34 = vld [vmem:[#allocation39_spill] sm:$0xff] }
 0x184   :  { %11175 = vst [vmem:[#allocation81_spill] sm:$0xff] %v9192_v10 }
 0x185   :  { %11176 = vst [vmem:[#allocation82_spill] sm:$0xff] %v9197_v53  ;;  %v7291_v54 = vpop.f32.mrb[80].mxu1  ;;  %v8411_v53 = vld [vmem:[%s10992_s0 + $0x48] sm:$0xff]  }
 0x186   :  { %v1115_v55 = vmax.f32 %v8927_v57, %v7291_v54  ;;  %v850_v11 = vpop.f32.mrb[81].mxu1 }
 0x187   :  { %v1113_v56 = vmax.f32 %v8929_v58, %v850_v11  ;;  %v7292_v12 = vpop.f32.mrb[82].mxu1 }
 0x188   :  { %v1116_v13 = vmax.f32 %v8931_v59, %v7292_v12  ;;  %v9205_v17 = vmax.f32 %v1115_v55, %v9009_v7  ;;  %v853_v20 = vpop.f32.mrb[83].mxu1  ;;  %v11190_v55 = vld [vmem:[#allocation27_spill] sm:$0xff] }
 0x189   :  { %v1114_v22 = vmax.f32 %v8933_v60, %v853_v20  ;;  %v9209_v9 = vmax.f32 %v1113_v56, %v9013_v6  ;;  %v8402_v56 = vld [vmem:[%s10992_s0] sm:$0xff]  }
 0x18a   :  { %11177 = vst [vmem:[#allocation83_spill] sm:$0xff] %v9205_v17  ;;  %v9212_v16 = vmax.f32 %v1116_v13, %v9015_v5  ;;  %7422 = vmatmul.mubr.msk.bf16.gmra.mrb[188].mxu1 %vm321_vm0, %v8820_v43  ;;  %v11191_v13 = vld [vmem:[#allocation28_spill] sm:$0xff] }
 0x18b   :  { %11178 = vst [vmem:[#allocation84_spill] sm:$0xff] %v9209_v9  ;;  %v9217_v57 = vmax.f32 %v1114_v22, %v9019_v4  ;;  %7425 = vmatprep.mubr.msk.bf16.mxu1 %vm321_vm0, %v8825_v44  ;;  %v8408_v9 = vld [vmem:[%s10992_s0 + $0x30] sm:$0xff]  }
 0x18c   :  { %11179 = vst [vmem:[#allocation85_spill] sm:$0xff] %v9212_v16 }
 0x18d   :  { %11180 = vst [vmem:[#allocation86_spill] sm:$0xff] %v9217_v57  ;;  %v7295_v58 = vpop.f32.mrb[84].mxu1 }
 0x18e   :  { %v1119_v59 = vmax.f32 %v8939_v61, %v7295_v58  ;;  %v866_v7 = vpop.f32.mrb[85].mxu1  ;;  %v11192_v58 = vld [vmem:[#allocation29_spill] sm:$0xff] }
 0x18f   :  { %v1117_v60 = vmax.f32 %v8941_v62, %v866_v7  ;;  %v7296_v6 = vpop.f32.mrb[86].mxu1  ;;  %v11186_v62 = vld [vmem:[#allocation22_spill] sm:$0xff] }
 0x190   :  { %v1120_v31 = vmax.f32 %v8943_v63, %v7296_v6  ;;  %v9225_v5 = vmax.f32 %v1119_v59, %v9029_v3  ;;  %v869_v35 = vpop.f32.mrb[87].mxu1  ;;  %v11187_v3 = vld [vmem:[#allocation24_spill] sm:$0xff]  ;;  %v8404_v59 = vld [vmem:[%s10992_s0 + $0x10] sm:$0xff]  }
 0x191   :  { %v1118_v49 = vmax.f32 %v8945_v0, %v869_v35  ;;  %v9229_v4 = vmax.f32 %v1117_v60, %v9033_v2  ;;  %v11188_v2 = vld [vmem:[#allocation25_spill] sm:$0xff]  ;;  %v11193_v60 = vld [vmem:[#allocation30_spill] sm:$0xff]  ;;  %v11194_v35 = vld [vmem:[#allocation31_spill] sm:$0xff] }
 0x192   :  { %11181 = vst [vmem:[#allocation87_spill] sm:$0xff] %v9225_v5  ;;  %v9232_v50 = vmax.f32 %v1120_v31, %v9035_v1  ;;  %7426 = vmatmul.mubr.msk.bf16.gmra.mrb[192].mxu1 %vm321_vm0, %v11184_v36  ;;  %v11195_v6 = vld [vmem:[#allocation32_spill] sm:$0xff]  ;;  %v8405_v5 = vld [vmem:[%s10992_s0 + $0x18] sm:$0xff]   ;;  %v8406_v1 = vld [vmem:[%s10992_s0 + $0x20] sm:$0xff]  }
 0x193   :  { %11182 = vst [vmem:[#allocation88_spill] sm:$0xff] %v9229_v4  ;;  %v9237_v61 = vmax.f32 %v1118_v49, %v9039_v45  ;;  %7429 = vmatprep.mubr.msk.bf16.mxu1 %vm321_vm0, %v11186_v62  ;;  %v11196_v49 = vld [vmem:[#allocation33_spill] sm:$0xff]  ;;  %v11198_v4 = vld [vmem:[#allocation35_spill] sm:$0xff] }
 0x194   :  { %11183 = vst [vmem:[#allocation89_spill] sm:$0xff] %v9232_v50 }
 0x195   :  { %11185 = vst [vmem:[#allocation90_spill] sm:$0xff] %v9237_v61  ;;  %v9241_v63 = vpop.f32.mrb[88].mxu1  ;;  %v11199_v61 = vld [vmem:[#allocation36_spill] sm:$0xff] }
 0x196   :  { %v9245_v51 = vpop.f32.mrb[89].mxu1 }
 0x197   :  { %v9249_v52 = vpop.f32.mrb[90].mxu1 }
 0x198   :  { %v9253_v45 = vpop.f32.mrb[91].mxu1  ;;  %v11277_v29 = vmax.f32 %v11189_v8, %v9249_v52 }
 0x19a   :  { %7430 = vmatmul.mubr.msk.bf16.gmra.mrb[196].mxu1 %vm321_vm0, %v8848_v47  ;;  %v11212_v47 = vld [vmem:[#allocation44_spill] sm:$0xff] }
 0x19b   :  { %7441 = vmatprep.mubr.msk.bf16.mxu1 %vm321_vm0, %v8402_v56  ;;  %v8403_v56 = vld [vmem:[%s10992_s0 + $0x8] sm:$0xff]  }
 0x19d   :  { %v9263_v12 = vpop.f32.mrb[92].mxu1 }
 0x19e   :  { %v9267_v22 = vpop.f32.mrb[93].mxu1 }
 0x19f   :  { %v9271_v7 = vpop.f32.mrb[94].mxu1 }
 0x1a0   :  { %v9275_v31 = vpop.f32.mrb[95].mxu1 }
 0x1a2   :  { %7442 = vmatmul.mubr.msk.bf16.vlgmr.msra.gmra.mrb[200].mxu1 %vm321_vm0, %v8403_v56  ;;  %v11197_v56 = vld [vmem:[#allocation34_spill] sm:$0xff] }
 0x1a3   :  { %7445 = vmatprep.mubr.msk.bf16.mxu1 %vm321_vm0, %v8404_v59  ;;  %v11200_v59 = vld [vmem:[#allocation37_spill] sm:$0xff] }
 0x1a5   :  { %v9287_v20 = vpop.f32.mrb[96].mxu1 }
 0x1a6   :  { %v9291_v54 = vpop.f32.mrb[97].mxu1 }
 0x1a7   :  { %v9295_v0 = vpop.f32.mrb[98].mxu1 }
 0x1a8   :  { %v9299_v50 = vpop.f32.mrb[99].mxu1 }
 0x1aa   :  { %7446 = vmatmul.mubr.msk.bf16.gmra.mrb[204].mxu1 %vm321_vm0, %v8405_v5  ;;  %v11201_v5 = vld [vmem:[#allocation38_spill] sm:$0xff] }
 0x1ab   :  { %7449 = vmatprep.mubr.msk.bf16.mxu1 %vm321_vm0, %v8406_v1 }
 0x1ad   :  { %v9311_v11 = vpop.f32.mrb[100].mxu1 }
 0x1ae   :  { %v9315_v16 = vpop.f32.mrb[101].mxu1 }
 0x1af   :  { %v9319_v17 = vpop.f32.mrb[102].mxu1 }
 0x1b0   :  { %v9323_v10 = vpop.f32.mrb[103].mxu1 }
 0x1b1   :  { %11202 = vst [vmem:[#allocation24_spill] sm:$0xff] %v9323_v10  ;;  %v8409_v10 = vld [vmem:[%s10992_s0 + $0x38] sm:$0xff]  }
 0x1b2   :  { %7450 = vmatmul.mubr.msk.bf16.gmra.mrb[208].mxu1 %vm321_vm0, %v8407_v30 }
 0x1b3   :  { %7453 = vmatprep.mubr.msk.bf16.mxu1 %vm321_vm0, %v8408_v9  ;;  %v11214_v9 = vld [vmem:[#allocation45_spill] sm:$0xff] }
 0x1b5   :  { %v9335_v57 = vpop.f32.mrb[104].mxu1 }
 0x1b6   :  { %11204 = vst [vmem:[#allocation25_spill] sm:$0xff] %v9335_v57  ;;  %v9339_v38 = vpop.f32.mrb[105].mxu1 }
 0x1b7   :  { %11206 = vst [vmem:[#allocation26_spill] sm:$0xff] %v9339_v38  ;;  %v9343_v33 = vpop.f32.mrb[106].mxu1 }
 0x1b8   :  { %11208 = vst [vmem:[#allocation27_spill] sm:$0xff] %v9343_v33  ;;  %v9347_v62 = vpop.f32.mrb[107].mxu1 }
 0x1b9   :  { %11210 = vst [vmem:[#allocation28_spill] sm:$0xff] %v9347_v62  ;;  %v8412_v62 = vld [vmem:[%s10992_s0 + $0x50] sm:$0xff]  }
 0x1ba   :  { %7454 = vmatmul.mubr.msk.bf16.gmra.mrb[212].mxu1 %vm321_vm0, %v8409_v10 }
 0x1bb   :  { %7457 = vmatprep.mubr.msk.bf16.mxu1 %vm321_vm0, %v8410_v37  ;;  %v8414_v37 = vld [vmem:[%s10992_s0 + $0x60] sm:$0xff]  }
 0x1bd   :  { %v9359_v32 = vpop.f32.mrb[108].mxu1 }
 0x1be   :  { %v9363_v30 = vpop.f32.mrb[109].mxu1 }
 0x1bf   :  { %11213 = vst [vmem:[#allocation29_spill] sm:$0xff] %v9363_v30  ;;  %v9367_v36 = vpop.f32.mrb[110].mxu1  ;;  %v8413_v30 = vld [vmem:[%s10992_s0 + $0x58] sm:$0xff]  }
 0x1c0   :  { %11215 = vst [vmem:[#allocation30_spill] sm:$0xff] %v9367_v36  ;;  %v9371_v1 = vpop.f32.mrb[111].mxu1 }
 0x1c1   :  { %11217 = vst [vmem:[#allocation31_spill] sm:$0xff] %v9371_v1 }
 0x1c2   :  { %7458 = vmatmul.mubr.msk.bf16.gmra.mrb[216].mxu1 %vm321_vm0, %v8411_v53  ;;  %v11223_v53 = vld [vmem:[#allocation51_spill] sm:$0xff] }
 0x1c3   :  { %7461 = vmatprep.mubr.msk.bf16.mxu1 %vm321_vm0, %v8412_v62  ;;  %v8416_v62 = vld [vmem:[%s10992_s0 + $0x70] sm:$0xff]  }
 0x1c5   :  { %v9383_v33 = vpop.f32.mrb[112].mxu1 }
 0x1c6   :  { %v9387_v36 = vpop.f32.mrb[113].mxu1 }
 0x1c7   :  { %11219 = vst [vmem:[#allocation32_spill] sm:$0xff] %v9387_v36  ;;  %v9391_v1 = vpop.f32.mrb[114].mxu1  ;;  %v11238_v36 = vld [vmem:[#allocation11_spill] sm:$0xff] }
 0x1c8   :  { %11220 = vst [vmem:[#allocation33_spill] sm:$0xff] %v9391_v1  ;;  %v9395_v57 = vpop.f32.mrb[115].mxu1 }
 0x1c9   :  { %11221 = vst [vmem:[#allocation34_spill] sm:$0xff] %v9395_v57 }
 0x1ca   :  { %7462 = vmatmul.mubr.msk.bf16.gmra.mrb[220].mxu1 %vm321_vm0, %v8413_v30 }
 0x1cb   :  { %7465 = vmatprep.mubr.msk.bf16.mxu1 %vm321_vm0, %v8414_v37  ;;  %v8418_v37 = vld [vmem:[%s10992_s0 + $0x80] sm:$0xff]  }
 0x1cd   :  { %v9407_v38 = vpop.f32.mrb[116].mxu1 }
 0x1ce   :  { %v9411_v14 = vpop.f32.mrb[117].mxu1 }
 0x1cf   :  { %11224 = vst [vmem:[#allocation35_spill] sm:$0xff] %v9411_v14  ;;  %v9415_v57 = vpop.f32.mrb[118].mxu1  ;;  %v8291_v14 = vld [vmem:[%s10995_s3 + $0x8] sm:$0xff]  }
 0x1d0   :  { %11225 = vst [vmem:[#allocation36_spill] sm:$0xff] %v9415_v57  ;;  %v9419_v10 = vpop.f32.mrb[119].mxu1 }
 0x1d1   :  { %11226 = vst [vmem:[#allocation37_spill] sm:$0xff] %v9419_v10 }
 0x1d2   :  { %7466 = vmatmul.mubr.msk.bf16.gmra.mrb[224].mxu1 %vm321_vm0, %v8415_v46 }
 0x1d3   :  { %7469 = vmatprep.mubr.msk.bf16.mxu1 %vm321_vm0, %v8416_v62 }
 0x1d5   :  { %v9431_v1 = vpop.f32.mrb[120].mxu1 }
 0x1d6   :  { %v9435_v57 = vpop.f32.mrb[121].mxu1 }
 0x1d7   :  { %11228 = vst [vmem:[#allocation38_spill] sm:$0xff] %v9435_v57  ;;  %v9439_v10 = vpop.f32.mrb[122].mxu1  ;;  %v8292_v57 = vld [vmem:[%s10995_s3 + $0x10] sm:$0xff]  }
 0x1d8   :  { %11229 = vst [vmem:[#allocation39_spill] sm:$0xff] %v9439_v10  ;;  %v9443_v18 = vpop.f32.mrb[123].mxu1 }
 0x1d9   :  { %11231 = vst [vmem:[#allocation44_spill] sm:$0xff] %v9443_v18 }
 0x1da   :  { %7470 = vmatmul.mubr.msk.bf16.gmra.mrb[228].mxu1 %vm321_vm0, %v8417_v48 }
 0x1db   :  { %7473 = vmatprep.mubr.msk.bf16.mxu1 %vm321_vm0, %v8418_v37  ;;  %v8290_v37 = vld [vmem:[%s10995_s3] sm:$0xff]  }
 0x1dc   :  { %7513 = vmatprep.subr.bf16.mxu0 %v8290_v37 }
 0x1dd   :  { %v9455_v30 = vpop.f32.mrb[124].mxu1  ;;  %7514 = vmatpush3.bf16.msra.mxu0 %v8290_v37 }
 0x1de   :  { %11233 = vst [vmem:[#allocation45_spill] sm:$0xff] %v9455_v30  ;;  %v9459_v10 = vpop.f32.mrb[125].mxu1  ;;  %v11239_v30 = vld [vmem:[#allocation12_spill] sm:$0xff]  ;;  %7515 = vmatprep.subr.bf16.mxu0 %v8291_v14 }
 0x1df   :  { %v9463_v18 = vpop.f32.mrb[126].mxu1 }
 0x1e0   :  { %11234 = vst [vmem:[#allocation51_spill] sm:$0xff] %v9463_v18  ;;  %v9467_v46 = vpop.f32.mrb[127].mxu1  ;;  %v8294_v18 = vld [vmem:[%s10995_s3 + $0x20] sm:$0xff]  }
 0x1e1   :  { %11236 = vst [vmem:[#allocation91_spill] sm:$0xff] %v9467_v46  ;;  %7516 = vmatpush3.bf16.msra.mxu0 %v8291_v14  ;;  %v8293_v14 = vld [vmem:[%s10995_s3 + $0x18] sm:$0xff]  }
 0x1e2   :  { %7474 = vmatmul.mubr.msk.bf16.gmra.mrb[232].mxu1 %vm321_vm0, %v11238_v36  ;;  %7517 = vmatprep.subr.bf16.mxu0 %v8292_v57  ;;  %v11247_v36 = vld [vmem:[#allocation14_spill] sm:$0xff] }
 0x1e3   :  { %7477 = vmatprep.mubr.msk.bf16.mxu1 %vm321_vm0, %v11239_v30 }
 0x1e5   :  { %v9481_v62 = vpop.f32.mrb[128].mxu1  ;;  %7518 = vmatpush3.bf16.msra.mxu0 %v8292_v57 }
 0x1e6   :  { %11240 = vst [vmem:[#allocation11_spill] sm:$0xff] %v9481_v62  ;;  %v9485_v48 = vpop.f32.mrb[129].mxu1  ;;  %7519 = vmatprep.subr.bf16.mxu0 %v8293_v14 }
 0x1e7   :  { %11241 = vst [vmem:[#allocation12_spill] sm:$0xff] %v9485_v48  ;;  %v9489_v24 = vpop.f32.mrb[130].mxu1  ;;  %v11273_v48 = vld [vmem:[#allocation19_spill] sm:$0xff] }
 0x1e8   :  { %11242 = vst [vmem:[#allocation92_spill] sm:$0xff] %v9489_v24  ;;  %v9493_v46 = vpop.f32.mrb[131].mxu1 }
 0x1e9   :  { %11244 = vst [vmem:[#allocation93_spill] sm:$0xff] %v9493_v46  ;;  %7520 = vmatpush3.bf16.msra.mxu0 %v8293_v14  ;;  %v8295_v14 = vld [vmem:[%s10995_s3 + $0x28] sm:$0xff]  }
 0x1ea   :  { %7478 = vmatmul.mubr.msk.bf16.gmra.mrb[236].mxu1 %vm321_vm0, %v11246_v21  ;;  %7521 = vmatprep.subr.bf16.mxu0 %v8294_v18  ;;  %v11255_v21 = vld [vmem:[#allocation16_spill] sm:$0xff] }
 0x1eb   :  { %7481 = vmatprep.mubr.msk.bf16.mxu1 %vm321_vm0, %v11247_v36 }
 0x1ed   :  { %v9507_v37 = vpop.f32.mrb[132].mxu1  ;;  %7522 = vmatpush3.bf16.msra.mxu0 %v8294_v18  ;;  %v11274_v18 = vld [vmem:[#allocation20_spill] sm:$0xff] }
 0x1ee   :  { %11248 = vst [vmem:[#allocation13_spill] sm:$0xff] %v9507_v37  ;;  %v9511_v30 = vpop.f32.mrb[133].mxu1  ;;  %7523 = vmatprep.subr.bf16.mxu0 %v8295_v14 }
 0x1ef   :  { %11249 = vst [vmem:[#allocation14_spill] sm:$0xff] %v9511_v30  ;;  %v9515_v62 = vpop.f32.mrb[134].mxu1  ;;  %v8296_v30 = vld [vmem:[%s10995_s3 + $0x30] sm:$0xff]  }
 0x1f0   :  { %11250 = vst [vmem:[#allocation94_spill] sm:$0xff] %v9515_v62  ;;  %v9519_v46 = vpop.f32.mrb[135].mxu1 }
 0x1f1   :  { %11252 = vst [vmem:[#allocation95_spill] sm:$0xff] %v9519_v46  ;;  %7524 = vmatpush3.bf16.msra.mxu0 %v8295_v14  ;;  %v8297_v14 = vld [vmem:[%s10995_s3 + $0x38] sm:$0xff]  }
 0x1f2   :  { %7482 = vmatmul.mubr.msk.bf16.gmra.mrb[240].mxu1 %vm321_vm0, %v11254_v26  ;;  %7525 = vmatprep.subr.bf16.mxu0 %v8296_v30  ;;  %v11264_v26 = vld [vmem:[#allocation18_spill] sm:$0xff] }
 0x1f3   :  { %7485 = vmatprep.mubr.msk.bf16.mxu1 %vm321_vm0, %v11255_v21 }
 0x1f5   :  { %v9533_v36 = vpop.f32.mrb[136].mxu1  ;;  %7526 = vmatpush3.bf16.msra.mxu0 %v8296_v30 }
 0x1f6   :  { %11256 = vst [vmem:[#allocation15_spill] sm:$0xff] %v9533_v36  ;;  %v9537_v57 = vpop.f32.mrb[137].mxu1  ;;  %7527 = vmatprep.subr.bf16.mxu0 %v8297_v14  ;;  %v11268_v36 = vld [vmem:[#allocation72_spill] sm:$0xff] }
 0x1f7   :  { %11257 = vst [vmem:[#allocation16_spill] sm:$0xff] %v9537_v57  ;;  %v9541_v46 = vpop.f32.mrb[138].mxu1 }
 0x1f8   :  { %11259 = vst [vmem:[#allocation96_spill] sm:$0xff] %v9541_v46  ;;  %v9545_v24 = vpop.f32.mrb[139].mxu1  ;;  %v11266_v46 = vld [vmem:[#allocation71_spill] sm:$0xff] }
 0x1f9   :  { %11261 = vst [vmem:[#allocation97_spill] sm:$0xff] %v9545_v24  ;;  %7528 = vmatpush3.bf16.msra.mxu0 %v8297_v14 }
 0x1fa   :  { %7486 = vmatmul.mubr.msk.bf16.gmra.mrb[244].mxu1 %vm321_vm0, %v11263_v28  ;;  %v11275_v28 = vmax.f32 %v11187_v3, %v9241_v63  ;;  %v11279_v3 = vmax.f32 %v11191_v13, %v9263_v12  ;;  %v11283_v13 = vmax.f32 %v11195_v6, %v9287_v20  ;;  %v11287_v20 = vmax.f32 %v11199_v61, %v9311_v11  ;;  %v11290_v11 = vld [vmem:[#allocation24_spill] sm:$0xff] }
 0x1fb   :  { %7489 = vmatprep.mubr.msk.bf16.mxu1 %vm321_vm0, %v11264_v26  ;;  %v11276_v26 = vmax.f32 %v11188_v2, %v9245_v51  ;;  %v11280_v2 = vmax.f32 %v11192_v58, %v9267_v22 }
 0x1fd   :  { %v9559_v21 = vpop.f32.mrb[140].mxu1 }
 0x1fe   :  { %11265 = vst [vmem:[#allocation17_spill] sm:$0xff] %v9559_v21  ;;  %v9563_v57 = vpop.f32.mrb[141].mxu1 }
 0x1ff   :  { %11267 = vst [vmem:[#allocation18_spill] sm:$0xff] %v9563_v57  ;;  %v9567_v24 = vpop.f32.mrb[142].mxu1 }
 0x200   :  { %11269 = vst [vmem:[#allocation71_spill] sm:$0xff] %v9567_v24  ;;  %v9571_v62 = vpop.f32.mrb[143].mxu1 }
 0x201   :  { %11271 = vst [vmem:[#allocation72_spill] sm:$0xff] %v9571_v62 }
 0x202   :  { %7490 = vmatmul.mubr.msk.bf16.gmra.mrb[248].mxu1 %vm321_vm0, %v11273_v48 }
 0x203   :  { %7493 = vmatprep.mubr.msk.bf16.mxu1 %vm321_vm0, %v11274_v18  ;;  %v11278_v18 = vmax.f32 %v11190_v55, %v9253_v45  ;;  %v11281_v45 = vmax.f32 %v11193_v60, %v9271_v7  ;;  %v11284_v7 = vmax.f32 %v11196_v49, %v9291_v54  ;;  %v11288_v49 = vmax.f32 %v11200_v59, %v9315_v16  ;;  %v11292_v16 = vld [vmem:[#allocation21_spill] sm:$0xff]  ;;  %v11293_v59 = vld [vmem:[#allocation22_spill] sm:$0xff] }
 0x205   :  { %v7379_v21 = vpop.f32.mrb[144].mxu1 }
 0x206   :  { %v9582_v57 = vmax.f32 %v11275_v28, %v7379_v21  ;;  %v1308_v14 = vpop.f32.mrb[145].mxu1 }
 0x207   :  { %v9587_v24 = vmax.f32 %v11276_v26, %v1308_v14  ;;  %v7380_v30 = vpop.f32.mrb[146].mxu1 }
 0x208   :  { %v9592_v48 = vmax.f32 %v11277_v29, %v7380_v30  ;;  %v1311_v62 = vpop.f32.mrb[147].mxu1  ;;  %v11291_v30 = vmax.f32 %v11203_v34, %v11290_v11 }
 0x209   :  { %v9597_v37 = vmax.f32 %v11278_v18, %v1311_v62  ;;  %v11294_v18 = vld [vmem:[#allocation40_spill] sm:$0xff] }
 0x20a   :  { %7494 = vmatmul.mubr.msk.bf16.gmra.mrb[252].mxu1 %vm321_vm0, %v8792_v39 }
 0x20b   :  { %7497 = vmatprep.mubr.msk.bf16.mxu1 %vm321_vm0, %v8797_v40  ;;  %v11282_v40 = vmax.f32 %v11194_v35, %v9275_v31  ;;  %v11285_v35 = vmax.f32 %v11197_v56, %v9295_v0 }
 0x20d   :  { %v7383_v63 = vpop.f32.mrb[148].mxu1 }
 0x20e   :  { %v9606_v51 = vmax.f32 %v11279_v3, %v7383_v63  ;;  %v1324_v29 = vpop.f32.mrb[149].mxu1  ;;  %v11295_v63 = vld [vmem:[#allocation25_spill] sm:$0xff] }
 0x20f   :  { %v9611_v52 = vmax.f32 %v11280_v2, %v1324_v29  ;;  %v7384_v8 = vpop.f32.mrb[150].mxu1  ;;  %v11297_v29 = vld [vmem:[#allocation41_spill] sm:$0xff]  ;;  %v11298_v2 = vld [vmem:[#allocation26_spill] sm:$0xff] }
 0x210   :  { %v9616_v39 = vmax.f32 %v11281_v45, %v7384_v8  ;;  %v1327_v55 = vpop.f32.mrb[151].mxu1  ;;  %v11299_v34 = vmax.f32 %v11297_v29, %v11298_v2 }
 0x211   :  { %v9621_v62 = vmax.f32 %v11282_v40, %v1327_v55  ;;  %v11300_v55 = vld [vmem:[#allocation42_spill] sm:$0xff]  ;;  %v11301_v40 = vld [vmem:[#allocation27_spill] sm:$0xff] }
 0x212   :  { %7498 = vmatmul.mubr.msk.bf16.gmra.mrb[0].mxu1 %vm321_vm0, %v8806_v41 }
 0x213   :  { %7501 = vmatprep.mubr.msk.bf16.mxu1 %vm321_vm0, %v8811_v42  ;;  %v11286_v42 = vmax.f32 %v11198_v4, %v9299_v50 }
 0x215   :  { %v7387_v12 = vpop.f32.mrb[152].mxu1 }
 0x216   :  { %v9630_v22 = vmax.f32 %v11283_v13, %v7387_v12  ;;  %v1340_v58 = vpop.f32.mrb[153].mxu1  ;;  %v11302_v12 = vmax.f32 %v11300_v55, %v11301_v40 }
 0x217   :  { %v9635_v60 = vmax.f32 %v11284_v7, %v1340_v58  ;;  %v7388_v31 = vpop.f32.mrb[154].mxu1  ;;  %v11303_v7 = vld [vmem:[#allocation43_spill] sm:$0xff] }
 0x218   :  { %v9640_v41 = vmax.f32 %v11285_v35, %v7388_v31  ;;  %v1343_v21 = vpop.f32.mrb[155].mxu1  ;;  %v11304_v31 = vld [vmem:[#allocation28_spill] sm:$0xff] }
 0x219   :  { %v9645_v28 = vmax.f32 %v11286_v42, %v1343_v21  ;;  %v11305_v35 = vmax.f32 %v11303_v7, %v11304_v31  ;;  %v11306_v42 = vld [vmem:[#allocation23_spill] sm:$0xff]  ;;  %v11321_v7 = vld [vmem:[#allocation33_spill] sm:$0xff] }
 0x21a   :  { %7502 = vmatmul.mubr.msk.bf16.gmra.mrb[4].mxu1 %vm321_vm0, %v8820_v43  ;;  %v9664_v43 = vld [vmem:[%s10995_s3 + $0x40] sm:$0xff]  }
 0x21b   :  { %7505 = vmatprep.mubr.msk.bf16.mxu1 %vm321_vm0, %v8825_v44  ;;  %v11289_v44 = vmax.f32 %v11201_v5, %v9319_v17  ;;  %7561 = vmatprep.subr.bf16.mxu0 %v9664_v43  ;;  %v11296_v17 = vmax.f32 %v11294_v18, %v11295_v63  ;;  %v11313_v63 = vld [vmem:[#allocation47_spill] sm:$0xff] }
 0x21d   :  { %v7391_v54 = vpop.f32.mrb[156].mxu1 }
 0x21e   :  { %v9654_v6 = vmax.f32 %v11287_v20, %v7391_v54  ;;  %v1356_v0 = vpop.f32.mrb[157].mxu1  ;;  %v11307_v20 = vmax.f32 %v11212_v47, %v9359_v32  ;;  %v11316_v32 = vmax.f32 %v9062_v15, %v9383_v33  ;;  %v11326_v15 = vmax.f32 %v11223_v53, %v9407_v38 }
 0x21f   :  { %v9659_v56 = vmax.f32 %v11288_v49, %v1356_v0  ;;  %v7392_v4 = vpop.f32.mrb[158].mxu1  ;;  %v11336_v53 = vmax.f32 %v9089_v23, %v9431_v1  ;;  %v11346_v1 = vld [vmem:[#allocation45_spill] sm:$0xff] }
 0x220   :  { %v9669_v50 = vmax.f32 %v11289_v44, %v7392_v4  ;;  %v1359_v61 = vpop.f32.mrb[159].mxu1  ;;  %v11308_v4 = vld [vmem:[#allocation29_spill] sm:$0xff] }
 0x221   :  { %v9674_v26 = vmax.f32 %v11291_v30, %v1359_v61  ;;  %v11309_v44 = vmax.f32 %v11214_v9, %v11308_v4  ;;  %v11310_v30 = vld [vmem:[#allocation46_spill] sm:$0xff] }
 0x222   :  { %7506 = vmatmul.mubr.msk.bf16.gmra.mrb[8].mxu1 %vm321_vm0, %v11292_v16  ;;  %v11311_v16 = vld [vmem:[#allocation30_spill] sm:$0xff] }
 0x223   :  { %7509 = vmatprep.mubr.msk.bf16.mxu1 %vm321_vm0, %v11293_v59  ;;  %v11312_v59 = vmax.f32 %v11310_v30, %v11311_v16  ;;  %v11327_v30 = vld [vmem:[#allocation52_spill] sm:$0xff]  ;;  %v11328_v16 = vld [vmem:[#allocation35_spill] sm:$0xff] }
 0x225   :  { %v7395_v14 = vpop.f32.mrb[160].mxu1 }
 0x226   :  { %v9684_v5 = vmax.f32 %v11296_v17, %v7395_v14  ;;  %v1372_v3 = vpop.f32.mrb[161].mxu1  ;;  %v11314_v17 = vld [vmem:[#allocation31_spill] sm:$0xff] }
 0x227   :  { %v9689_v8 = vmax.f32 %v11299_v34, %v1372_v3  ;;  %v7396_v45 = vpop.f32.mrb[162].mxu1  ;;  %v11315_v3 = vmax.f32 %v11313_v63, %v11314_v17  ;;  %v11317_v34 = vld [vmem:[#allocation48_spill] sm:$0xff]  ;;  %v11330_v17 = vld [vmem:[#allocation53_spill] sm:$0xff] }
 0x228   :  { %v9694_v13 = vmax.f32 %v11302_v12, %v7396_v45  ;;  %v1375_v58 = vpop.f32.mrb[163].mxu1  ;;  %v11318_v45 = vld [vmem:[#allocation32_spill] sm:$0xff] }
 0x229   :  { %v9699_v21 = vmax.f32 %v11305_v35, %v1375_v58  ;;  %v11319_v55 = vmax.f32 %v11317_v34, %v11318_v45  ;;  %v11320_v58 = vld [vmem:[#allocation49_spill] sm:$0xff]  ;;  %v11333_v34 = vld [vmem:[#allocation54_spill] sm:$0xff] }
 0x22a   :  { %7510 = vmatmul.mubr.msk.bf16.gmra.mrb[12].mxu1 %vm321_vm0, %v11306_v42  ;;  %v11322_v31 = vmax.f32 %v11320_v58, %v11321_v7  ;;  %v11334_v45 = vld [vmem:[#allocation37_spill] sm:$0xff] }
 0x22d   :  { %v7399_v54 = vpop.f32.mrb[164].mxu1 }
 0x22e   :  { %v9706_v0 = vmax.f32 %v11307_v20, %v7399_v54  ;;  %v1388_v49 = vpop.f32.mrb[165].mxu1  ;;  %v11323_v54 = vld [vmem:[#allocation50_spill] sm:$0xff] }
 0x22f   :  { %v9711_v61 = vmax.f32 %v11309_v44, %v1388_v49  ;;  %v7400_v11 = vpop.f32.mrb[166].mxu1  ;;  %v11324_v20 = vld [vmem:[#allocation34_spill] sm:$0xff] }
 0x230   :  { %v9716_v14 = vmax.f32 %v11312_v59, %v7400_v11  ;;  %v1391_v18 = vpop.f32.mrb[167].mxu1  ;;  %v11325_v49 = vmax.f32 %v11323_v54, %v11324_v20  ;;  %v11329_v59 = vmax.f32 %v11327_v30, %v11328_v16 }
 0x231   :  { %v9721_v29 = vmax.f32 %v11315_v3, %v1391_v18  ;;  %v11331_v3 = vld [vmem:[#allocation36_spill] sm:$0xff] }
 0x235   :  { %v7403_v47 = vpop.f32.mrb[168].mxu1 }
 0x236   :  { %v9726_v2 = vmax.f32 %v11316_v32, %v7403_v47  ;;  %v1404_v9 = vpop.f32.mrb[169].mxu1  ;;  %v11332_v47 = vmax.f32 %v11330_v17, %v11331_v3 }
 0x237   :  { %v9731_v40 = vmax.f32 %v11319_v55, %v1404_v9  ;;  %v7404_v12 = vpop.f32.mrb[170].mxu1  ;;  %v11335_v55 = vmax.f32 %v11333_v34, %v11334_v45  ;;  %v11348_v45 = vmax.f32 %v9103_v25, %v9459_v10  ;;  %v11360_v10 = vld [vmem:[#allocation12_spill] sm:$0xff] }
 0x238   :  { %v9736_v35 = vmax.f32 %v11322_v31, %v7404_v12  ;;  %v1407_v42 = vpop.f32.mrb[171].mxu1  ;;  %v11337_v31 = vld [vmem:[#allocation55_spill] sm:$0xff] }
 0x239   :  { %v9741_v4 = vmax.f32 %v11325_v49, %v1407_v42  ;;  %v11338_v42 = vld [vmem:[#allocation38_spill] sm:$0xff] }
 0x23a   :  { %v11339_v54 = vmax.f32 %v11337_v31, %v11338_v42 }
 0x23d   :  { %v7407_v33 = vpop.f32.mrb[172].mxu1 }
 0x23e   :  { %v9746_v44 = vmax.f32 %v11326_v15, %v7407_v33  ;;  %v1420_v11 = vpop.f32.mrb[173].mxu1  ;;  %v11340_v33 = vld [vmem:[#allocation56_spill] sm:$0xff]  ;;  %v11341_v15 = vld [vmem:[#allocation39_spill] sm:$0xff] }
 0x23f   :  { %v9751_v18 = vmax.f32 %v11329_v59, %v1420_v11  ;;  %v7408_v63 = vpop.f32.mrb[174].mxu1  ;;  %v11342_v11 = vmax.f32 %v11340_v33, %v11341_v15  ;;  %v11343_v59 = vld [vmem:[#allocation57_spill] sm:$0xff]  ;;  %v11353_v33 = vld [vmem:[#allocation91_spill] sm:$0xff] }
 0x240   :  { %v9756_v32 = vmax.f32 %v11332_v47, %v7408_v63  ;;  %v1423_v9 = vpop.f32.mrb[175].mxu1  ;;  %v11344_v63 = vld [vmem:[#allocation44_spill] sm:$0xff]  ;;  %v11347_v47 = vmax.f32 %v9101_v19, %v11346_v1 }
 0x241   :  { %v9761_v12 = vmax.f32 %v11335_v55, %v1423_v9  ;;  %v11345_v17 = vmax.f32 %v11343_v59, %v11344_v63  ;;  %v11357_v59 = vld [vmem:[#allocation11_spill] sm:$0xff] }
 0x245   :  { %v7411_v38 = vpop.f32.mrb[176].mxu1 }
 0x246   :  { %v9766_v58 = vmax.f32 %v11336_v53, %v7411_v38  ;;  %v1436_v7 = vpop.f32.mrb[177].mxu1  ;;  %v11349_v53 = vld [vmem:[#allocation58_spill] sm:$0xff] }
 0x247   :  { %v9771_v20 = vmax.f32 %v11339_v54, %v1436_v7  ;;  %v7412_v49 = vpop.f32.mrb[178].mxu1  ;;  %v11350_v7 = vld [vmem:[#allocation51_spill] sm:$0xff] }
 0x248   :  { %v9776_v30 = vmax.f32 %v11342_v11, %v7412_v49  ;;  %v1439_v16 = vpop.f32.mrb[179].mxu1  ;;  %v11351_v31 = vmax.f32 %v11349_v53, %v11350_v7  ;;  %v11352_v49 = vld [vmem:[#allocation59_spill] sm:$0xff] }
 0x249   :  { %v9781_v3 = vmax.f32 %v11345_v17, %v1439_v16  ;;  %v11354_v15 = vmax.f32 %v11352_v49, %v11353_v33  ;;  %v11356_v16 = vld [vmem:[#allocation60_spill] sm:$0xff] }
 0x24a   :  { %v11358_v63 = vmax.f32 %v11356_v16, %v11357_v59  ;;  %v11372_v16 = vld [vmem:[#allocation13_spill] sm:$0xff] }
 0x24d   :  { %v7415_v23 = vpop.f32.mrb[180].mxu1 }
 0x24e   :  { %v9786_v9 = vmax.f32 %v11347_v47, %v7415_v23  ;;  %v1452_v34 = vpop.f32.mrb[181].mxu1  ;;  %v11361_v23 = vmax.f32 %v9115_v27, %v11360_v10  ;;  %v11376_v10 = vld [vmem:[#allocation14_spill] sm:$0xff] }
 0x24f   :  { %v9791_v55 = vmax.f32 %v11348_v45, %v1452_v34  ;;  %v7416_v38 = vpop.f32.mrb[182].mxu1  ;;  %v11363_v34 = vld [vmem:[#allocation61_spill] sm:$0xff]  ;;  %v11364_v45 = vld [vmem:[#allocation92_spill] sm:$0xff] }
 0x250   :  { %v9796_v42 = vmax.f32 %v11351_v31, %v7416_v38  ;;  %v1455_v54 = vpop.f32.mrb[183].mxu1  ;;  %v11365_v38 = vmax.f32 %v11363_v34, %v11364_v45  ;;  %v11367_v31 = vld [vmem:[#allocation62_spill] sm:$0xff]  ;;  %v11379_v34 = vld [vmem:[#allocation65_spill] sm:$0xff] }
 0x251   :  { %v9801_v11 = vmax.f32 %v11354_v15, %v1455_v54  ;;  %v11368_v54 = vld [vmem:[#allocation93_spill] sm:$0xff]  ;;  %v11380_v45 = vld [vmem:[#allocation94_spill] sm:$0xff] }
 0x252   :  { %v11369_v49 = vmax.f32 %v11367_v31, %v11368_v54  ;;  %v11383_v31 = vld [vmem:[#allocation66_spill] sm:$0xff]  ;;  %v11384_v54 = vld [vmem:[#allocation95_spill] sm:$0xff] }
 0x253   :  { %11355 = vst [vmem:[#allocation19_spill] sm:$0xff] %v9801_v11 }
 0x255   :  { %v7419_v19 = vpop.f32.mrb[184].mxu1 }
 0x256   :  { %v9806_v17 = vmax.f32 %v11358_v63, %v7419_v19  ;;  %v1468_v25 = vpop.f32.mrb[185].mxu1  ;;  %v11371_v19 = vld [vmem:[#allocation63_spill] sm:$0xff] }
 0x257   :  { %v9811_v1 = vmax.f32 %v11361_v23, %v1468_v25  ;;  %v7420_v47 = vpop.f32.mrb[186].mxu1  ;;  %v11373_v59 = vmax.f32 %v11371_v19, %v11372_v16  ;;  %v11375_v25 = vld [vmem:[#allocation64_spill] sm:$0xff]  ;;  %v11387_v19 = vld [vmem:[#allocation67_spill] sm:$0xff] }
 0x258   :  { %11359 = vst [vmem:[#allocation20_spill] sm:$0xff] %v9806_v17  ;;  %v9816_v53 = vmax.f32 %v11365_v38, %v7420_v47  ;;  %v1471_v7 = vpop.f32.mrb[187].mxu1  ;;  %v11377_v23 = vmax.f32 %v11375_v25, %v11376_v10  ;;  %v11381_v38 = vmax.f32 %v11379_v34, %v11380_v45  ;;  %v11388_v16 = vld [vmem:[#allocation15_spill] sm:$0xff]  ;;  %v11391_v25 = vld [vmem:[#allocation68_spill] sm:$0xff]  ;;  %v11395_v34 = vld [vmem:[#allocation69_spill] sm:$0xff] }
 0x259   :  { %11362 = vst [vmem:[#allocation24_spill] sm:$0xff] %v9811_v1  ;;  %v9821_v33 = vmax.f32 %v11369_v49, %v1471_v7  ;;  %v11385_v49 = vmax.f32 %v11383_v31, %v11384_v54  ;;  %v11392_v10 = vld [vmem:[#allocation16_spill] sm:$0xff]  ;;  %v11399_v31 = vld [vmem:[#allocation70_spill] sm:$0xff]  ;;  %v11400_v54 = vld [vmem:[#allocation97_spill] sm:$0xff] }
 0x25a   :  { %11366 = vst [vmem:[#allocation21_spill] sm:$0xff] %v9816_v53  ;;  %v11396_v45 = vld [vmem:[#allocation96_spill] sm:$0xff] }
 0x25b   :  { %11370 = vst [vmem:[#allocation22_spill] sm:$0xff] %v9821_v33 }
 0x25d   :  { %v7423_v15 = vpop.f32.mrb[188].mxu1 }
 0x25e   :  { %v9826_v63 = vmax.f32 %v11373_v59, %v7423_v15  ;;  %v1484_v27 = vpop.f32.mrb[189].mxu1  ;;  %v11389_v59 = vmax.f32 %v11387_v19, %v11388_v16  ;;  %v11403_v19 = vld [vmem:[#allocation17_spill] sm:$0xff] }
 0x25f   :  { %v9831_v1 = vmax.f32 %v11377_v23, %v1484_v27  ;;  %v7424_v47 = vpop.f32.mrb[190].mxu1  ;;  %v11393_v23 = vmax.f32 %v11391_v25, %v11392_v10  ;;  %v11404_v16 = vmax.f32 %v11266_v46, %v11403_v19  ;;  %v11406_v25 = vld [vmem:[#allocation18_spill] sm:$0xff] }
 0x260   :  { %11374 = vst [vmem:[#allocation40_spill] sm:$0xff] %v9826_v63  ;;  %v9836_v53 = vmax.f32 %v11381_v38, %v7424_v47  ;;  %v1487_v7 = vpop.f32.mrb[191].mxu1  ;;  %v11397_v38 = vmax.f32 %v11395_v34, %v11396_v45  ;;  %v11407_v10 = vmax.f32 %v11268_v36, %v11406_v25  ;;  %v11409_v34 = vld [vmem:[#allocation73_spill] sm:$0xff]  ;;  %v11410_v45 = vld [vmem:[#allocation71_spill] sm:$0xff] }
 0x261   :  { %11378 = vst [vmem:[#allocation25_spill] sm:$0xff] %v9831_v1  ;;  %v9841_v33 = vmax.f32 %v11385_v49, %v1487_v7  ;;  %v11401_v49 = vmax.f32 %v11399_v31, %v11400_v54  ;;  %v11413_v31 = vld [vmem:[#allocation74_spill] sm:$0xff]  ;;  %v11414_v54 = vld [vmem:[#allocation72_spill] sm:$0xff]  ;;  %v11417_v36 = vld [vmem:[#allocation75_spill] sm:$0xff] }
 0x262   :  { %11382 = vst [vmem:[#allocation41_spill] sm:$0xff] %v9836_v53 }
 0x263   :  { %11386 = vst [vmem:[#allocation26_spill] sm:$0xff] %v9841_v33 }
 0x265   :  { %v7427_v15 = vpop.f32.mrb[192].mxu1 }
 0x266   :  { %v9846_v63 = vmax.f32 %v11389_v59, %v7427_v15  ;;  %v1500_v27 = vpop.f32.mrb[193].mxu1 }
 0x267   :  { %v9851_v1 = vmax.f32 %v11393_v23, %v1500_v27  ;;  %v7428_v47 = vpop.f32.mrb[194].mxu1 }
 0x268   :  { %11390 = vst [vmem:[#allocation42_spill] sm:$0xff] %v9846_v63  ;;  %v9856_v53 = vmax.f32 %v11397_v38, %v7428_v47  ;;  %v1503_v7 = vpop.f32.mrb[195].mxu1  ;;  %v11411_v38 = vmax.f32 %v11409_v34, %v11410_v45  ;;  %v11419_v34 = vld [vmem:[#allocation77_spill] sm:$0xff] }
 0x269   :  { %11394 = vst [vmem:[#allocation27_spill] sm:$0xff] %v9851_v1  ;;  %v9861_v33 = vmax.f32 %v11401_v49, %v1503_v7  ;;  %v11415_v49 = vmax.f32 %v11413_v31, %v11414_v54  ;;  %v11420_v31 = vld [vmem:[#allocation78_spill] sm:$0xff] }
 0x26a   :  { %11398 = vst [vmem:[#allocation43_spill] sm:$0xff] %v9856_v53 }
 0x26b   :  { %11402 = vst [vmem:[#allocation28_spill] sm:$0xff] %v9861_v33 }
 0x26d   :  { %v7431_v15 = vpop.f32.mrb[196].mxu1 }
 0x26e   :  { %v9866_v59 = vmax.f32 %v11404_v16, %v7431_v15  ;;  %v1516_v27 = vpop.f32.mrb[197].mxu1  ;;  %v9886_v15 = vld [vmem:[%s10994_s2] ss:$0 sm:$0xff] }
 0x26f   :  { %v9871_v23 = vmax.f32 %v11407_v10, %v1516_v27  ;;  %v7432_v47 = vpop.f32.mrb[198].mxu1  ;;  %v11418_v27 = vld [vmem:[#allocation76_spill] sm:$0xff] }
 0x270   :  { %11405 = vst [vmem:[#allocation23_spill] sm:$0xff] %v9866_v59  ;;  %v9876_v53 = vmax.f32 %v11411_v38, %v7432_v47  ;;  %v1519_v7 = vpop.f32.mrb[199].mxu1 }
 0x271   :  { %11408 = vst [vmem:[#allocation29_spill] sm:$0xff] %v9871_v23  ;;  %v9881_v33 = vmax.f32 %v11415_v49, %v1519_v7 }
 0x272   :  { %11412 = vst [vmem:[#allocation46_spill] sm:$0xff] %v9876_v53 }
 0x273   :  { %11416 = vst [vmem:[#allocation30_spill] sm:$0xff] %v9881_v33 }
 0x275   :  { %v7443_v46 = vpop.f32.mrb[200].mxu1 }
 0x276   :  { %v1959_v19 = vmax.f32 %v11417_v36, %v7443_v46  ;;  %v1670_v16 = vpop.f32.mrb[201].mxu1 }
 0x277   :  { %v1957_v25 = vmax.f32 %v11418_v27, %v1670_v16  ;;  %v7444_v10 = vpop.f32.mrb[202].mxu1  ;;  %v11421_v27 = vld [vmem:[#allocation79_spill] sm:$0xff] }
 0x278   :  { %v2038_v47 = vadd.f32 %v9886_v15, %v1959_v19  ;;  %v1960_v45 = vmax.f32 %v11419_v34, %v7444_v10  ;;  %v1673_v38 = vpop.f32.mrb[203].mxu1  ;;  %v11422_v10 = vld [vmem:[#allocation80_spill] sm:$0xff] }
 0x279   :  { %v2036_v7 = vadd.f32 %v9886_v15, %v1957_v25  ;;  %v1958_v54 = vmax.f32 %v11420_v31, %v1673_v38  ;;  %v11423_v31 = vld [vmem:[#allocation81_spill] sm:$0xff] }
 0x27a   :  { %v2039_v49 = vadd.f32 %v9886_v15, %v1960_v45  ;;  %v2110_v53 = vmax.f32 %v2038_v47, 0.0  ;;  %v8299_v47 = vld [vmem:[%s10995_s3 + $0x48] sm:$0xff]  }
 0x27b   :  { %v2037_v33 = vadd.f32 %v9886_v15, %v1958_v54  ;;  %v2108_v46 = vmax.f32 %v2036_v7, 0.0  ;;  %v8300_v54 = vld [vmem:[%s10995_s3 + $0x50] sm:$0xff]  }
 0x27c   :  { %v2111_v23 = vmax.f32 %v2039_v49, 0.0 }
 0x27d   :  { %v2109_v36 = vmax.f32 %v2037_v33, 0.0  ;;  %v7447_v59 = vpop.f32.mrb[204].mxu1 }
 0x27e   :  { %v9896_v16 = vpack.c.bf16 %v2111_v23, %v2110_v53  ;;  %v1963_v19 = vmax.f32 %v11421_v27, %v7447_v59  ;;  %v1686_v1 = vpop.f32.mrb[205].mxu1  ;;  %v11424_v53 = vld [vmem:[#allocation82_spill] sm:$0xff] }
 0x27f   :  { %v1961_v34 = vmax.f32 %v11422_v10, %v1686_v1  ;;  %v7448_v63 = vpop.f32.mrb[206].mxu1  ;;  %v2180_v25 = vpack.c.bf16 %v2109_v36, %v2108_v46 }
 0x280   :  { %v2042_v38 = vadd.f32 %v9886_v15, %v1963_v19  ;;  %v1964_v45 = vmax.f32 %v11423_v31, %v7448_v63  ;;  %v1689_v17 = vpop.f32.mrb[207].mxu1 }
 0x281   :  { %v2040_v33 = vadd.f32 %v9886_v15, %v1961_v34  ;;  %v1962_v23 = vmax.f32 %v11424_v53, %v1689_v17  ;;  %7529 = vmatprep.mubr.bf16.mxu0 %v2180_v25  ;;  %v11425_v17 = vld [vmem:[#allocation83_spill] sm:$0xff]  ;;  %v11426_v34 = vld [vmem:[#allocation84_spill] sm:$0xff] }
 0x282   :  { %v2043_v59 = vadd.f32 %v9886_v15, %v1964_v45  ;;  %7530 = vmatmul.mubr.bf16.vlgmr.msra.gmra.mrb[16].mxu0 %v9896_v16  ;;  %v2114_v7 = vmax.f32 %v2042_v38, 0.0  ;;  %v11427_v38 = vld [vmem:[#allocation85_spill] sm:$0xff] }
 0x283   :  { %v2041_v1 = vadd.f32 %v9886_v15, %v1962_v23  ;;  %7562 = vmatpush3.bf16.msra.mxu0 %v9664_v43  ;;  %v2112_v49 = vmax.f32 %v2040_v33, 0.0  ;;  %v8301_v33 = vld [vmem:[%s10995_s3 + $0x58] sm:$0xff]  }
 0x284   :  { %v2115_v63 = vmax.f32 %v2043_v59, 0.0  ;;  %7563 = vmatprep.subr.bf16.mxu0 %v8299_v47 }
 0x285   :  { %v2113_v46 = vmax.f32 %v2041_v1, 0.0  ;;  %v7451_v36 = vpop.f32.mrb[208].mxu1  ;;  %v11428_v1 = vld [vmem:[#allocation86_spill] sm:$0xff] }
 0x286   :  { %v1967_v27 = vmax.f32 %v11425_v17, %v7451_v36  ;;  %v1702_v19 = vpop.f32.mrb[209].mxu1  ;;  %v9915_v10 = vpack.c.bf16 %v2115_v63, %v2114_v7  ;;  %v8302_v36 = vld [vmem:[%s10995_s3 + $0x60] sm:$0xff]  }
 0x287   :  { %v1965_v25 = vmax.f32 %v11426_v34, %v1702_v19  ;;  %v7452_v31 = vpop.f32.mrb[210].mxu1  ;;  %v9918_v45 = vpack.c.bf16 %v2113_v46, %v2112_v49  ;;  %7564 = vmatpush3.bf16.msra.mxu0 %v8299_v47  ;;  %v11429_v34 = vld [vmem:[#allocation87_spill] sm:$0xff] }
 0x288   :  { %v2046_v43 = vadd.f32 %v9886_v15, %v1967_v27  ;;  %v1968_v53 = vmax.f32 %v11427_v38, %v7452_v31  ;;  %v1705_v23 = vpop.f32.mrb[211].mxu1  ;;  %7565 = vmatprep.subr.bf16.mxu0 %v8300_v54 }
 0x289   :  { %v2044_v59 = vadd.f32 %v9886_v15, %v1965_v25  ;;  %v1966_v7 = vmax.f32 %v11428_v1, %v1705_v23  ;;  %7533 = vmatprep.mubr.bf16.mxu0 %v9918_v45 }
 0x28a   :  { %v2047_v63 = vadd.f32 %v9886_v15, %v1968_v53  ;;  %7534 = vmatmul.mubr.bf16.gmra.mrb[20].mxu0 %v9915_v10  ;;  %v2118_v49 = vmax.f32 %v2046_v43, 0.0  ;;  %v11430_v53 = vld [vmem:[#allocation88_spill] sm:$0xff] }
 0x28b   :  { %v2045_v47 = vadd.f32 %v9886_v15, %v1966_v7  ;;  %7566 = vmatpush3.bf16.msra.mxu0 %v8300_v54  ;;  %v2116_v17 = vmax.f32 %v2044_v59, 0.0  ;;  %v11431_v7 = vld [vmem:[#allocation89_spill] sm:$0xff]  ;;  %v8303_v59 = vld [vmem:[%s10995_s3 + $0x68] sm:$0xff]  }
 0x28c   :  { %v2119_v46 = vmax.f32 %v2047_v63, 0.0  ;;  %7567 = vmatprep.subr.bf16.mxu0 %v8301_v33 }
 0x28d   :  { %v2117_v27 = vmax.f32 %v2045_v47, 0.0  ;;  %v7455_v19 = vpop.f32.mrb[212].mxu1 }
 0x28e   :  { %v1971_v25 = vmax.f32 %v11429_v34, %v7455_v19  ;;  %v1718_v31 = vpop.f32.mrb[213].mxu1  ;;  %v9935_v38 = vpack.c.bf16 %v2119_v46, %v2118_v49  ;;  %v11432_v49 = vld [vmem:[#allocation90_spill] sm:$0xff]  ;;  %v8304_v34 = vld [vmem:[%s10995_s3 + $0x70] sm:$0xff]  }
 0x28f   :  { %v1969_v23 = vmax.f32 %v11430_v53, %v1718_v31  ;;  %v7456_v1 = vpop.f32.mrb[214].mxu1  ;;  %7568 = vmatpush3.bf16.msra.mxu0 %v8301_v33  ;;  %v9938_v54 = vpack.c.bf16 %v2117_v27, %v2116_v17 }
 0x290   :  { %v2050_v43 = vadd.f32 %v9886_v15, %v1971_v25  ;;  %v1972_v63 = vmax.f32 %v11431_v7, %v7456_v1  ;;  %v1721_v11 = vpop.f32.mrb[215].mxu1  ;;  %7569 = vmatprep.subr.bf16.mxu0 %v8302_v36 }
 0x291   :  { %v2048_v47 = vadd.f32 %v9886_v15, %v1969_v23  ;;  %v1970_v46 = vmax.f32 %v11432_v49, %v1721_v11 }
 0x292   :  { %v2051_v19 = vadd.f32 %v9886_v15, %v1972_v63  ;;  %v2122_v17 = vmax.f32 %v2050_v43, 0.0 }
 0x293   :  { %v2049_v33 = vadd.f32 %v9886_v15, %v1970_v46  ;;  %7570 = vmatpush3.bf16.msra.mxu0 %v8302_v36  ;;  %v2120_v25 = vmax.f32 %v2048_v47, 0.0  ;;  %v8305_v47 = vld [vmem:[%s10995_s3 + $0x78] sm:$0xff]  }
 0x294   :  { %v2123_v27 = vmax.f32 %v2051_v19, 0.0  ;;  %7571 = vmatprep.subr.bf16.mxu0 %v8303_v59 }
 0x295   :  { %v2121_v31 = vmax.f32 %v2049_v33, 0.0  ;;  %v7459_v53 = vpop.f32.mrb[216].mxu1 }
 0x296   :  { %v9952_v1 = vpack.c.bf16 %v2123_v27, %v2122_v17  ;;  %v1975_v23 = vmax.f32 %v9582_v57, %v7459_v53  ;;  %v1734_v11 = vpop.f32.mrb[217].mxu1  ;;  %v9972_v17 = vld [vmem:[%s10995_s3 + $0x80] sm:$0xff]  }
 0x297   :  { %v1973_v7 = vmax.f32 %v9587_v24, %v1734_v11  ;;  %v7460_v63 = vpop.f32.mrb[218].mxu1  ;;  %v9956_v49 = vpack.c.bf16 %v2121_v31, %v2120_v25  ;;  %7572 = vmatpush3.bf16.msra.mxu0 %v8303_v59 }
 0x298   :  { %v2054_v36 = vadd.f32 %v9886_v15, %v1975_v23  ;;  %v1976_v43 = vmax.f32 %v9592_v48, %v7460_v63  ;;  %v1737_v46 = vpop.f32.mrb[219].mxu1  ;;  %7573 = vmatprep.subr.bf16.mxu0 %v8304_v34 }
 0x299   :  { %v2052_v19 = vadd.f32 %v9886_v15, %v1973_v7  ;;  %v1974_v57 = vmax.f32 %v9597_v37, %v1737_v46  ;;  %7537 = vmatprep.mubr.bf16.mxu0 %v9956_v49 }
 0x29a   :  { %v2055_v24 = vadd.f32 %v9886_v15, %v1976_v43  ;;  %7538 = vmatmul.mubr.bf16.gmra.mrb[24].mxu0 %v9952_v1  ;;  %v2126_v48 = vmax.f32 %v2054_v36, 0.0 }
 0x29b   :  { %v2053_v59 = vadd.f32 %v9886_v15, %v1974_v57  ;;  %7574 = vmatpush3.bf16.msra.mxu0 %v8304_v34  ;;  %v2124_v27 = vmax.f32 %v2052_v19, 0.0 }
 0x29c   :  { %v2127_v33 = vmax.f32 %v2055_v24, 0.0  ;;  %7575 = vmatprep.subr.bf16.mxu0 %v8305_v47 }
 0x29d   :  { %v2125_v25 = vmax.f32 %v2053_v59, 0.0  ;;  %v7463_v37 = vpop.f32.mrb[220].mxu1 }
 0x29e   :  { %v9974_v31 = vpack.c.bf16 %v2127_v33, %v2126_v48  ;;  %v1979_v53 = vmax.f32 %v9606_v51, %v7463_v37  ;;  %v1750_v23 = vpop.f32.mrb[221].mxu1 }
 0x29f   :  { %v9977_v11 = vpack.c.bf16 %v2125_v25, %v2124_v27  ;;  %v1977_v34 = vmax.f32 %v9611_v52, %v1750_v23  ;;  %v7464_v7 = vpop.f32.mrb[222].mxu1  ;;  %7576 = vmatpush3.bf16.msra.mxu0 %v8305_v47 }
 0x2a0   :  { %v2058_v63 = vadd.f32 %v9886_v15, %v1979_v53  ;;  %v1980_v36 = vmax.f32 %v9616_v39, %v7464_v7  ;;  %v1753_v43 = vpop.f32.mrb[223].mxu1  ;;  %7609 = vmatprep.subr.bf16.mxu0 %v9972_v17 }
 0x2a1   :  { %v2056_v46 = vadd.f32 %v9886_v15, %v1977_v34  ;;  %v1978_v19 = vmax.f32 %v9621_v62, %v1753_v43  ;;  %7541 = vmatprep.mubr.bf16.mxu0 %v9977_v11 }
 0x2a2   :  { %v2059_v51 = vadd.f32 %v9886_v15, %v1980_v36  ;;  %7542 = vmatmul.mubr.bf16.gmra.mrb[28].mxu0 %v9974_v31  ;;  %v2130_v47 = vmax.f32 %v2058_v63, 0.0 }
 0x2a3   :  { %v2057_v52 = vadd.f32 %v9886_v15, %v1978_v19  ;;  %v2128_v24 = vmax.f32 %v2056_v46, 0.0 }
 0x2a4   :  { %v2131_v57 = vmax.f32 %v2059_v51, 0.0 }
 0x2a5   :  { %v2129_v59 = vmax.f32 %v2057_v52, 0.0  ;;  %v7467_v39 = vpop.f32.mrb[224].mxu1 }
 0x2a6   :  { %v1983_v48 = vmax.f32 %v9630_v22, %v7467_v39  ;;  %v1766_v33 = vpop.f32.mrb[225].mxu1  ;;  %v9990_v27 = vpack.c.bf16 %v2131_v57, %v2130_v47 }
 0x2a7   :  { %v9992_v25 = vpack.c.bf16 %v2129_v59, %v2128_v24  ;;  %v1981_v62 = vmax.f32 %v9635_v60, %v1766_v33  ;;  %v7468_v37 = vpop.f32.mrb[226].mxu1 }
 0x2a8   :  { %v2062_v53 = vadd.f32 %v9886_v15, %v1983_v48  ;;  %v1984_v23 = vmax.f32 %v9640_v41, %v7468_v37  ;;  %v1769_v34 = vpop.f32.mrb[227].mxu1 }
 0x2a9   :  { %v2060_v7 = vadd.f32 %v9886_v15, %v1981_v62  ;;  %v1982_v63 = vmax.f32 %v9645_v28, %v1769_v34 }
 0x2aa   :  { %v2063_v36 = vadd.f32 %v9886_v15, %v1984_v23  ;;  %v2134_v43 = vmax.f32 %v2062_v53, 0.0 }
 0x2ab   :  { %v2061_v22 = vadd.f32 %v9886_v15, %v1982_v63  ;;  %v2132_v19 = vmax.f32 %v2060_v7, 0.0 }
 0x2ac   :  { %v2135_v46 = vmax.f32 %v2063_v36, 0.0 }
 0x2ad   :  { %v2133_v51 = vmax.f32 %v2061_v22, 0.0  ;;  %v7471_v52 = vpop.f32.mrb[228].mxu1 }
 0x2ae   :  { %v10001_v60 = vpack.c.bf16 %v2135_v46, %v2134_v43  ;;  %v1987_v47 = vmax.f32 %v9654_v6, %v7471_v52  ;;  %v1782_v57 = vpop.f32.mrb[229].mxu1 }
 0x2af   :  { %v1985_v41 = vmax.f32 %v9659_v56, %v1782_v57  ;;  %v7472_v24 = vpop.f32.mrb[230].mxu1  ;;  %v10005_v59 = vpack.c.bf16 %v2133_v51, %v2132_v19 }
 0x2b0   :  { %v2066_v28 = vadd.f32 %v9886_v15, %v1987_v47  ;;  %v1988_v39 = vmax.f32 %v9669_v50, %v7472_v24  ;;  %v1785_v48 = vpop.f32.mrb[231].mxu1 }
 0x2b1   :  { %v2064_v33 = vadd.f32 %v9886_v15, %v1985_v41  ;;  %v1986_v62 = vmax.f32 %v9674_v26, %v1785_v48  ;;  %7545 = vmatprep.mubr.bf16.mxu0 %v10005_v59 }
 0x2b2   :  { %v2067_v37 = vadd.f32 %v9886_v15, %v1988_v39  ;;  %7546 = vmatmul.mubr.bf16.gmra.mrb[32].mxu0 %v10001_v60  ;;  %v2138_v56 = vmax.f32 %v2066_v28, 0.0 }
 0x2b3   :  { %v2065_v6 = vadd.f32 %v9886_v15, %v1986_v62  ;;  %v2136_v23 = vmax.f32 %v2064_v33, 0.0 }
 0x2b4   :  { %v2139_v53 = vmax.f32 %v2067_v37, 0.0 }
 0x2b5   :  { %v2137_v34 = vmax.f32 %v2065_v6, 0.0  ;;  %v7475_v7 = vpop.f32.mrb[232].mxu1 }
 0x2b6   :  { %v10015_v63 = vpack.c.bf16 %v2139_v53, %v2138_v56  ;;  %v1991_v50 = vmax.f32 %v9684_v5, %v7475_v7  ;;  %v1798_v36 = vpop.f32.mrb[233].mxu1 }
 0x2b7   :  { %v10018_v22 = vpack.c.bf16 %v2137_v34, %v2136_v23  ;;  %v1989_v26 = vmax.f32 %v9689_v8, %v1798_v36  ;;  %v7476_v43 = vpop.f32.mrb[234].mxu1 }
 0x2b8   :  { %v2070_v46 = vadd.f32 %v9886_v15, %v1991_v50  ;;  %v1992_v19 = vmax.f32 %v9694_v13, %v7476_v43  ;;  %v1801_v51 = vpop.f32.mrb[235].mxu1 }
 0x2b9   :  { %v2068_v52 = vadd.f32 %v9886_v15, %v1989_v26  ;;  %v1990_v47 = vmax.f32 %v9699_v21, %v1801_v51  ;;  %7549 = vmatprep.mubr.bf16.mxu0 %v10018_v22 }
 0x2ba   :  { %v2071_v57 = vadd.f32 %v9886_v15, %v1992_v19  ;;  %7550 = vmatmul.mubr.bf16.gmra.mrb[36].mxu0 %v10015_v63  ;;  %v2142_v41 = vmax.f32 %v2070_v46, 0.0 }
 0x2bb   :  { %v2069_v5 = vadd.f32 %v9886_v15, %v1990_v47  ;;  %v2140_v24 = vmax.f32 %v2068_v52, 0.0 }
 0x2bc   :  { %v2143_v8 = vmax.f32 %v2071_v57, 0.0 }
 0x2bd   :  { %v2141_v28 = vmax.f32 %v2069_v5, 0.0  ;;  %v7479_v39 = vpop.f32.mrb[236].mxu1 }
 0x2be   :  { %v1995_v13 = vmax.f32 %v9706_v0, %v7479_v39  ;;  %v1814_v48 = vpop.f32.mrb[237].mxu1  ;;  %v10030_v33 = vpack.c.bf16 %v2143_v8, %v2142_v41 }
 0x2bf   :  { %v10032_v62 = vpack.c.bf16 %v2141_v28, %v2140_v24  ;;  %v1993_v21 = vmax.f32 %v9711_v61, %v1814_v48  ;;  %v7480_v37 = vpop.f32.mrb[238].mxu1 }
 0x2c0   :  { %v2074_v6 = vadd.f32 %v9886_v15, %v1995_v13  ;;  %v1996_v56 = vmax.f32 %v9716_v14, %v7480_v37  ;;  %v1817_v53 = vpop.f32.mrb[239].mxu1 }
 0x2c1   :  { %v2072_v23 = vadd.f32 %v9886_v15, %v1993_v21  ;;  %v1994_v34 = vmax.f32 %v9721_v29, %v1817_v53 }
 0x2c2   :  { %v2075_v7 = vadd.f32 %v9886_v15, %v1996_v56  ;;  %v2146_v50 = vmax.f32 %v2074_v6, 0.0 }
 0x2c3   :  { %v2073_v0 = vadd.f32 %v9886_v15, %v1994_v34  ;;  %v2144_v26 = vmax.f32 %v2072_v23, 0.0 }
 0x2c4   :  { %v2147_v36 = vmax.f32 %v2075_v7, 0.0 }
 0x2c5   :  { %v2145_v43 = vmax.f32 %v2073_v0, 0.0  ;;  %v7483_v46 = vpop.f32.mrb[240].mxu1 }
 0x2c6   :  { %v10041_v61 = vpack.c.bf16 %v2147_v36, %v2146_v50  ;;  %v1999_v19 = vmax.f32 %v9726_v2, %v7483_v46  ;;  %v1830_v51 = vpop.f32.mrb[241].mxu1 }
 0x2c7   :  { %v1997_v14 = vmax.f32 %v9731_v40, %v1830_v51  ;;  %v7484_v52 = vpop.f32.mrb[242].mxu1  ;;  %v10045_v47 = vpack.c.bf16 %v2145_v43, %v2144_v26 }
 0x2c8   :  { %v2078_v29 = vadd.f32 %v9886_v15, %v1999_v19  ;;  %v2000_v57 = vmax.f32 %v9736_v35, %v7484_v52  ;;  %v1833_v5 = vpop.f32.mrb[243].mxu1 }
 0x2c9   :  { %v2076_v41 = vadd.f32 %v9886_v15, %v1997_v14  ;;  %v1998_v8 = vmax.f32 %v9741_v4, %v1833_v5  ;;  %7553 = vmatprep.mubr.bf16.mxu0 %v10045_v47  ;;  %v8307_v5 = vld [vmem:[%s10995_s3 + $0x88] sm:$0xff]  }
 0x2ca   :  { %v2079_v24 = vadd.f32 %v9886_v15, %v2000_v57  ;;  %7554 = vmatmul.mubr.bf16.gmra.mrb[40].mxu0 %v10041_v61  ;;  %v2150_v40 = vmax.f32 %v2078_v29, 0.0 }
 0x2cb   :  { %v2077_v2 = vadd.f32 %v9886_v15, %v1998_v8  ;;  %v2148_v39 = vmax.f32 %v2076_v41, 0.0 }
 0x2cc   :  { %v2151_v28 = vmax.f32 %v2079_v24, 0.0 }
 0x2cd   :  { %v2149_v13 = vmax.f32 %v2077_v2, 0.0  ;;  %v7487_v48 = vpop.f32.mrb[244].mxu1  ;;  %v8308_v2 = vld [vmem:[%s10995_s3 + $0x90] sm:$0xff]  }
 0x2ce   :  { %v10055_v21 = vpack.c.bf16 %v2151_v28, %v2150_v40  ;;  %v2003_v35 = vmax.f32 %v9746_v44, %v7487_v48  ;;  %v1846_v37 = vpop.f32.mrb[245].mxu1 }
 0x2cf   :  { %v10058_v6 = vpack.c.bf16 %v2149_v13, %v2148_v39  ;;  %v2001_v4 = vmax.f32 %v9751_v18, %v1846_v37  ;;  %v7488_v56 = vpop.f32.mrb[246].mxu1 }
 0x2d0   :  { %v2082_v53 = vadd.f32 %v9886_v15, %v2003_v35  ;;  %v2004_v23 = vmax.f32 %v9756_v32, %v7488_v56  ;;  %v1849_v34 = vpop.f32.mrb[247].mxu1 }
 0x2d1   :  { %v2080_v7 = vadd.f32 %v9886_v15, %v2001_v4  ;;  %v2002_v0 = vmax.f32 %v9761_v12, %v1849_v34  ;;  %7557 = vmatprep.mubr.bf16.mxu0 %v10058_v6 }
 0x2d2   :  { %v2083_v50 = vadd.f32 %v9886_v15, %v2004_v23  ;;  %7558 = vmatmul.mubr.bf16.gmra.mrb[44].mxu0 %v10055_v21  ;;  %v2154_v18 = vmax.f32 %v2082_v53, 0.0  ;;  %v8309_v23 = vld [vmem:[%s10995_s3 + $0x98] sm:$0xff]  }
 0x2d3   :  { %v2081_v44 = vadd.f32 %v9886_v15, %v2002_v0  ;;  %7577 = vmatprep.mubr.bf16.mxu0 %v9896_v16  ;;  %v2152_v26 = vmax.f32 %v2080_v7, 0.0 }
 0x2d4   :  { %v2155_v36 = vmax.f32 %v2083_v50, 0.0 }
 0x2d5   :  { %v2153_v43 = vmax.f32 %v2081_v44, 0.0  ;;  %v7491_v32 = vpop.f32.mrb[248].mxu1  ;;  %v8310_v44 = vld [vmem:[%s10995_s3 + $0xa0] sm:$0xff]  }
 0x2d6   :  { %v2007_v46 = vmax.f32 %v9766_v58, %v7491_v32  ;;  %v1862_v19 = vpop.f32.mrb[249].mxu1  ;;  %v10071_v51 = vpack.c.bf16 %v2155_v36, %v2154_v18  ;;  %v11434_v32 = vld [vmem:[#allocation20_spill] sm:$0xff] }
 0x2d7   :  { %v10073_v12 = vpack.c.bf16 %v2153_v43, %v2152_v26  ;;  %v2005_v14 = vmax.f32 %v9771_v20, %v1862_v19  ;;  %v7492_v52 = vpop.f32.mrb[250].mxu1 }
 0x2d8   :  { %v2086_v29 = vadd.f32 %v9886_v15, %v2007_v46  ;;  %v2008_v57 = vmax.f32 %v9776_v30, %v7492_v52  ;;  %v1865_v16 = vpop.f32.mrb[251].mxu1  ;;  %v11435_v52 = vld [vmem:[#allocation24_spill] sm:$0xff] }
 0x2d9   :  { %v2084_v41 = vadd.f32 %v9886_v15, %v2005_v14  ;;  %v2006_v58 = vmax.f32 %v9781_v3, %v1865_v16 }
 0x2da   :  { %v2087_v8 = vadd.f32 %v9886_v15, %v2008_v57  ;;  %7578 = vmatmul.mubr.bf16.vlgmr.msra.gmra.mrb[16].mxu0 %v9918_v45  ;;  %v2158_v30 = vmax.f32 %v2086_v29, 0.0 }
 0x2db   :  { %v2085_v20 = vadd.f32 %v9886_v15, %v2006_v58  ;;  %7581 = vmatprep.mubr.bf16.mxu0 %v9915_v10  ;;  %7610 = vmatpush3.bf16.msra.mxu0 %v9972_v17  ;;  %v2156_v40 = vmax.f32 %v2084_v41, 0.0 }
 0x2dc   :  { %v2159_v24 = vmax.f32 %v2087_v8, 0.0  ;;  %7611 = vmatprep.subr.bf16.mxu0 %v8307_v5  ;;  %v8311_v8 = vld [vmem:[%s10995_s3 + $0xa8] sm:$0xff]  }
 0x2dd   :  { %v2157_v28 = vmax.f32 %v2085_v20, 0.0  ;;  %v7495_v3 = vpop.f32.mrb[252].mxu1 }
 0x2de   :  { %v10091_v39 = vpack.c.bf16 %v2159_v24, %v2158_v30  ;;  %v2011_v13 = vmax.f32 %v9786_v9, %v7495_v3  ;;  %v1878_v48 = vpop.f32.mrb[253].mxu1  ;;  %v11433_v9 = vld [vmem:[#allocation19_spill] sm:$0xff]  ;;  %v11437_v30 = vld [vmem:[#allocation22_spill] sm:$0xff] }
 0x2df   :  { %v2009_v35 = vmax.f32 %v9791_v55, %v1878_v48  ;;  %v7496_v37 = vpop.f32.mrb[254].mxu1  ;;  %7612 = vmatpush3.bf16.msra.mxu0 %v8307_v5  ;;  %v10095_v17 = vpack.c.bf16 %v2157_v28, %v2156_v40  ;;  %v11436_v5 = vld [vmem:[#allocation21_spill] sm:$0xff] }
 0x2e0   :  { %v2090_v4 = vadd.f32 %v9886_v15, %v2011_v13  ;;  %v2012_v56 = vmax.f32 %v9796_v42, %v7496_v37  ;;  %v1881_v53 = vpop.f32.mrb[255].mxu1  ;;  %7613 = vmatprep.subr.bf16.mxu0 %v8308_v2  ;;  %v8312_v13 = vld [vmem:[%s10995_s3 + $0xb0] sm:$0xff]  }
 0x2e1   :  { %v2088_v34 = vadd.f32 %v9886_v15, %v2009_v35  ;;  %v2010_v7 = vmax.f32 %v11433_v9, %v1881_v53  ;;  %v11439_v9 = vld [vmem:[#allocation25_spill] sm:$0xff] }
 0x2e2   :  { %v2091_v55 = vadd.f32 %v9886_v15, %v2012_v56  ;;  %7582 = vmatmul.mubr.bf16.gmra.mrb[20].mxu0 %v9938_v54  ;;  %v2162_v42 = vmax.f32 %v2090_v4, 0.0  ;;  %v11438_v4 = vld [vmem:[#allocation40_spill] sm:$0xff] }
 0x2e3   :  { %v2089_v0 = vadd.f32 %v9886_v15, %v2010_v7  ;;  %7585 = vmatprep.mubr.bf16.mxu0 %v9952_v1  ;;  %7614 = vmatpush3.bf16.msra.mxu0 %v8308_v2  ;;  %v2160_v18 = vmax.f32 %v2088_v34, 0.0 }
 0x2e4   :  { %v2163_v50 = vmax.f32 %v2091_v55, 0.0  ;;  %7615 = vmatprep.subr.bf16.mxu0 %v8309_v23 }
 0x2e5   :  { %v2161_v36 = vmax.f32 %v2089_v0, 0.0  ;;  %v7499_v26 = vpop.f32.mrb[0].mxu1 }
 0x2e6   :  { %v10111_v43 = vpack.c.bf16 %v2163_v50, %v2162_v42  ;;  %v2015_v46 = vmax.f32 %v11434_v32, %v7499_v26  ;;  %v1894_v19 = vpop.f32.mrb[1].mxu1  ;;  %v11440_v42 = vld [vmem:[#allocation41_spill] sm:$0xff]  ;;  %v11441_v26 = vld [vmem:[#allocation26_spill] sm:$0xff] }
 0x2e7   :  { %v10114_v14 = vpack.c.bf16 %v2161_v36, %v2160_v18  ;;  %v2013_v29 = vmax.f32 %v11435_v52, %v1894_v19  ;;  %v7500_v57 = vpop.f32.mrb[2].mxu1  ;;  %7616 = vmatpush3.bf16.msra.mxu0 %v8309_v23  ;;  %v8313_v18 = vld [vmem:[%s10995_s3 + $0xb8] sm:$0xff]  }
 0x2e8   :  { %v2094_v16 = vadd.f32 %v9886_v15, %v2015_v46  ;;  %v2016_v41 = vmax.f32 %v11436_v5, %v7500_v57  ;;  %v1897_v58 = vpop.f32.mrb[3].mxu1  ;;  %7617 = vmatprep.subr.bf16.mxu0 %v8310_v44  ;;  %v8314_v57 = vld [vmem:[%s10995_s3 + $0xc0] sm:$0xff]  }
 0x2e9   :  { %v2092_v20 = vadd.f32 %v9886_v15, %v2013_v29  ;;  %v2014_v24 = vmax.f32 %v11437_v30, %v1897_v58  ;;  %v11442_v58 = vld [vmem:[#allocation42_spill] sm:$0xff] }
 0x2ea   :  { %v2095_v2 = vadd.f32 %v9886_v15, %v2016_v41  ;;  %7586 = vmatmul.mubr.bf16.gmra.mrb[24].mxu0 %v9977_v11  ;;  %v2166_v28 = vmax.f32 %v2094_v16, 0.0 }
 0x2eb   :  { %v2093_v40 = vadd.f32 %v9886_v15, %v2014_v24  ;;  %7589 = vmatprep.mubr.bf16.mxu0 %v9974_v31  ;;  %7618 = vmatpush3.bf16.msra.mxu0 %v8310_v44  ;;  %v2164_v48 = vmax.f32 %v2092_v20, 0.0  ;;  %v11443_v24 = vld [vmem:[#allocation27_spill] sm:$0xff] }
 0x2ec   :  { %v2167_v3 = vmax.f32 %v2095_v2, 0.0  ;;  %7619 = vmatprep.subr.bf16.mxu0 %v8311_v8 }
 0x2ed   :  { %v2165_v35 = vmax.f32 %v2093_v40, 0.0  ;;  %v7503_v37 = vpop.f32.mrb[4].mxu1 }
 0x2ee   :  { %v2019_v56 = vmax.f32 %v11438_v4, %v7503_v37  ;;  %v1910_v53 = vpop.f32.mrb[5].mxu1  ;;  %v10132_v23 = vpack.c.bf16 %v2167_v3, %v2166_v28  ;;  %v11445_v4 = vld [vmem:[#allocation28_spill] sm:$0xff] }
 0x2ef   :  { %v10134_v34 = vpack.c.bf16 %v2165_v35, %v2164_v48  ;;  %v2017_v7 = vmax.f32 %v11439_v9, %v1910_v53  ;;  %v7504_v55 = vpop.f32.mrb[6].mxu1  ;;  %7620 = vmatpush3.bf16.msra.mxu0 %v8311_v8 }
 0x2f0   :  { %v2098_v0 = vadd.f32 %v9886_v15, %v2019_v56  ;;  %v2020_v50 = vmax.f32 %v11440_v42, %v7504_v55  ;;  %v1913_v44 = vpop.f32.mrb[7].mxu1  ;;  %7621 = vmatprep.subr.bf16.mxu0 %v8312_v13 }
 0x2f1   :  { %v2096_v36 = vadd.f32 %v9886_v15, %v2017_v7  ;;  %v2018_v32 = vmax.f32 %v11441_v26, %v1913_v44  ;;  %v11446_v44 = vld [vmem:[#allocation23_spill] sm:$0xff] }
 0x2f2   :  { %v2099_v46 = vadd.f32 %v9886_v15, %v2020_v50  ;;  %7590 = vmatmul.mubr.bf16.gmra.mrb[28].mxu0 %v9992_v25  ;;  %v2170_v52 = vmax.f32 %v2098_v0, 0.0 }
 0x2f3   :  { %v2097_v19 = vadd.f32 %v9886_v15, %v2018_v32  ;;  %7593 = vmatprep.mubr.bf16.mxu0 %v10001_v60  ;;  %7622 = vmatpush3.bf16.msra.mxu0 %v8312_v13  ;;  %v2168_v16 = vmax.f32 %v2096_v36, 0.0  ;;  %v11444_v13 = vld [vmem:[#allocation43_spill] sm:$0xff]  ;;  %v11447_v32 = vld [vmem:[#allocation29_spill] sm:$0xff] }
 0x2f4   :  { %v2171_v29 = vmax.f32 %v2099_v46, 0.0  ;;  %7623 = vmatprep.subr.bf16.mxu0 %v8313_v18 }
 0x2f5   :  { %v2169_v5 = vmax.f32 %v2097_v19, 0.0  ;;  %v7507_v41 = vpop.f32.mrb[8].mxu1 }
 0x2f6   :  { %v2023_v8 = vmax.f32 %v11442_v58, %v7507_v41  ;;  %v1926_v20 = vpop.f32.mrb[9].mxu1  ;;  %v10152_v30 = vpack.c.bf16 %v2171_v29, %v2170_v52 }
 0x2f7   :  { %v2021_v2 = vmax.f32 %v11443_v24, %v1926_v20  ;;  %v7508_v40 = vpop.f32.mrb[10].mxu1  ;;  %7624 = vmatpush3.bf16.msra.mxu0 %v8313_v18  ;;  %v10155_v28 = vpack.c.bf16 %v2169_v5, %v2168_v16  ;;  %v11448_v16 = vld [vmem:[#allocation46_spill] sm:$0xff] }
 0x2f8   :  { %v2102_v3 = vadd.f32 %v9886_v15, %v2023_v8  ;;  %v2024_v48 = vmax.f32 %v11444_v13, %v7508_v40  ;;  %v1929_v35 = vpop.f32.mrb[11].mxu1  ;;  %7657 = vmatprep.subr.bf16.mxu0 %v8314_v57  ;;  %v11449_v8 = vld [vmem:[#allocation30_spill] sm:$0xff] }
 0x2f9   :  { %v2100_v37 = vadd.f32 %v9886_v15, %v2021_v2  ;;  %v2022_v56 = vmax.f32 %v11445_v4, %v1929_v35  ;;  %v8316_v4 = vld [vmem:[%s10995_s3 + $0xd0] sm:$0xff]  }
 0x2fa   :  { %v2103_v53 = vadd.f32 %v9886_v15, %v2024_v48  ;;  %7594 = vmatmul.mubr.bf16.gmra.mrb[32].mxu0 %v10018_v22  ;;  %v2174_v7 = vmax.f32 %v2102_v3, 0.0 }
 0x2fb   :  { %v2101_v9 = vadd.f32 %v9886_v15, %v2022_v56  ;;  %7597 = vmatprep.mubr.bf16.mxu0 %v10015_v63  ;;  %v2172_v0 = vmax.f32 %v2100_v37, 0.0  ;;  %v8322_v56 = vld [vmem:[%s10995_s3 + $0x100] sm:$0xff]  }
 0x2fc   :  { %v2175_v55 = vmax.f32 %v2103_v53, 0.0  ;;  %v8323_v53 = vld [vmem:[%s10995_s3 + $0x108] sm:$0xff]  }
 0x2fd   :  { %v2173_v42 = vmax.f32 %v2101_v9, 0.0  ;;  %v7511_v50 = vpop.f32.mrb[12].mxu1  ;;  %v8324_v9 = vld [vmem:[%s10995_s3 + $0x110] sm:$0xff]  }
 0x2fe   :  { %v2027_v18 = vmax.f32 %v11446_v44, %v7511_v50  ;;  %v1942_v36 = vpop.f32.mrb[13].mxu1  ;;  %v10166_v26 = vpack.c.bf16 %v2175_v55, %v2174_v7  ;;  %v8326_v7 = vld [vmem:[%s10995_s3 + $0x120] sm:$0xff]   ;;  %v8327_v55 = vld [vmem:[%s10995_s3 + $0x128] sm:$0xff]  }
 0x2ff   :  { %v2025_v46 = vmax.f32 %v11447_v32, %v1942_v36  ;;  %v7512_v19 = vpop.f32.mrb[14].mxu1  ;;  %v10169_v52 = vpack.c.bf16 %v2173_v42, %v2172_v0  ;;  %v8328_v0 = vld [vmem:[%s10995_s3 + $0x130] sm:$0xff]   ;;  %v8329_v42 = vld [vmem:[%s10995_s3 + $0x138] sm:$0xff]   ;;  %v8330_v50 = vld [vmem:[%s10995_s3 + $0x140] sm:$0xff]  }
 0x300   :  { %v2106_v29 = vadd.f32 %v9886_v15, %v2027_v18  ;;  %v2028_v5 = vmax.f32 %v11448_v16, %v7512_v19  ;;  %v1945_v41 = vpop.f32.mrb[15].mxu1  ;;  %v8331_v44 = vld [vmem:[%s10995_s3 + $0x148] sm:$0xff]   ;;  %v8332_v18 = vld [vmem:[%s10995_s3 + $0x150] sm:$0xff]   ;;  %v8334_v36 = vld [vmem:[%s10995_s3 + $0x160] sm:$0xff]  }
 0x301   :  { %v2104_v58 = vadd.f32 %v9886_v15, %v2025_v46  ;;  %v2026_v20 = vmax.f32 %v11449_v8, %v1945_v41  ;;  %v8335_v32 = vld [vmem:[%s10995_s3 + $0x168] sm:$0xff]   ;;  %v8336_v46 = vld [vmem:[%s10995_s3 + $0x170] sm:$0xff]   ;;  %v8337_v19 = vld [vmem:[%s10995_s3 + $0x178] sm:$0xff]  }
 0x302   :  { %v2107_v24 = vadd.f32 %v9886_v15, %v2028_v5  ;;  %7598 = vmatmul.mubr.bf16.gmra.mrb[36].mxu0 %v10032_v62  ;;  %v2178_v40 = vmax.f32 %v2106_v29, 0.0  ;;  %v8338_v29 = vld [vmem:[%s10995_s3 + $0x180] sm:$0xff]   ;;  %v8339_v16 = vld [vmem:[%s10995_s3 + $0x188] sm:$0xff]   ;;  %v8340_v5 = vld [vmem:[%s10995_s3 + $0x190] sm:$0xff]  }
 0x303   :  { %v2105_v2 = vadd.f32 %v9886_v15, %v2026_v20  ;;  %7601 = vmatprep.mubr.bf16.mxu0 %v10041_v61  ;;  %v2176_v13 = vmax.f32 %v2104_v58, 0.0  ;;  %v8315_v15 = vld [vmem:[%s10995_s3 + $0xc8] sm:$0xff]   ;;  %v8345_v41 = vld [vmem:[%s10995_s3 + $0x1b8] sm:$0xff]   ;;  %v8346_v58 = vld [vmem:[%s10995_s3 + $0x1c0] sm:$0xff]  }
 0x304   :  { %v2179_v3 = vmax.f32 %v2107_v24, 0.0  ;;  %v8347_v8 = vld [vmem:[%s10995_s3 + $0x1c8] sm:$0xff]   ;;  %v8348_v20 = vld [vmem:[%s10995_s3 + $0x1d0] sm:$0xff]   ;;  %v8350_v24 = vld [vmem:[%s10995_s3 + $0x1e0] sm:$0xff]  }
 0x305   :  { %v2177_v48 = vmax.f32 %v2105_v2, 0.0  ;;  %v8351_v2 = vld [vmem:[%s10995_s3 + $0x1e8] sm:$0xff]  }
 0x306   :  { %v10179_v35 = vpack.c.bf16 %v2179_v3, %v2178_v40  ;;  %v8353_v40 = vld [vmem:[%s10995_s3 + $0x1f8] sm:$0xff]   ;;  %v8354_v3 = vld [vmem:[%s10995_s3 + $0x200] sm:$0xff]  }
 0x307   :  { %v10181_v37 = vpack.c.bf16 %v2177_v48, %v2176_v13  ;;  %v8358_v13 = vld [vmem:[%s10995_s3 + $0x220] sm:$0xff]   ;;  %v8359_v48 = vld [vmem:[%s10995_s3 + $0x228] sm:$0xff]  }
 0x30a   :  { %7602 = vmatmul.mubr.bf16.gmra.mrb[40].mxu0 %v10058_v6 }
 0x30b   :  { %7605 = vmatprep.mubr.bf16.mxu0 %v10055_v21 }
 0x312   :  { %7606 = vmatmul.mubr.bf16.gmra.mrb[44].mxu0 %v10073_v12 }
 0x313   :  { %7625 = vmatprep.mubr.bf16.mxu0 %v9918_v45  ;;  %v8317_v45 = vld [vmem:[%s10995_s3 + $0xd8] sm:$0xff]  }
 0x31a   :  { %7626 = vmatmul.mubr.bf16.vlgmr.msra.gmra.mrb[16].mxu0 %v9915_v10  ;;  %v8318_v10 = vld [vmem:[%s10995_s3 + $0xe0] sm:$0xff]  }
 0x31b   :  { %7629 = vmatprep.mubr.bf16.mxu0 %v9938_v54  ;;  %7658 = vmatpush3.bf16.msra.mxu0 %v8314_v57  ;;  %v8319_v54 = vld [vmem:[%s10995_s3 + $0xe8] sm:$0xff]   ;;  %v8321_v57 = vld [vmem:[%s10995_s3 + $0xf8] sm:$0xff]  }
 0x31c   :  { %7659 = vmatprep.subr.bf16.mxu0 %v8315_v15 }
 0x31f   :  { %7660 = vmatpush3.bf16.msra.mxu0 %v8315_v15  ;;  %v8361_v15 = vld [vmem:[%s10995_s3 + $0x238] sm:$0xff]  }
 0x320   :  { %7661 = vmatprep.subr.bf16.mxu0 %v8316_v4 }
 0x322   :  { %7630 = vmatmul.mubr.bf16.gmra.mrb[20].mxu0 %v9935_v38  ;;  %v8320_v38 = vld [vmem:[%s10995_s3 + $0xf0] sm:$0xff]  }
 0x323   :  { %7633 = vmatprep.mubr.bf16.mxu0 %v9977_v11  ;;  %7662 = vmatpush3.bf16.msra.mxu0 %v8316_v4 }
 0x324   :  { %7663 = vmatprep.subr.bf16.mxu0 %v8317_v45 }
 0x327   :  { %7664 = vmatpush3.bf16.msra.mxu0 %v8317_v45 }
 0x328   :  { %7665 = vmatprep.subr.bf16.mxu0 %v8318_v10 }
 0x32a   :  { %7634 = vmatmul.mubr.bf16.gmra.mrb[24].mxu0 %v9974_v31 }
 0x32b   :  { %7637 = vmatprep.mubr.bf16.mxu0 %v9992_v25  ;;  %7666 = vmatpush3.bf16.msra.mxu0 %v8318_v10 }
 0x32c   :  { %7667 = vmatprep.subr.bf16.mxu0 %v8319_v54 }
 0x32f   :  { %7668 = vmatpush3.bf16.msra.mxu0 %v8319_v54 }
 0x330   :  { %7669 = vmatprep.subr.bf16.mxu0 %v8320_v38 }
 0x332   :  { %7638 = vmatmul.mubr.bf16.gmra.mrb[28].mxu0 %v9990_v27 }
 0x333   :  { %7641 = vmatprep.mubr.bf16.mxu0 %v10018_v22  ;;  %7670 = vmatpush3.bf16.msra.mxu0 %v8320_v38 }
 0x334   :  { %7671 = vmatprep.subr.bf16.mxu0 %v8321_v57 }
 0x337   :  { %7672 = vmatpush3.bf16.msra.mxu0 %v8321_v57 }
 0x338   :  { %7705 = vmatprep.subr.bf16.mxu0 %v8322_v56 }
 0x33a   :  { %7642 = vmatmul.mubr.bf16.gmra.mrb[32].mxu0 %v10015_v63 }
 0x33b   :  { %7645 = vmatprep.mubr.bf16.mxu0 %v10032_v62 }
 0x342   :  { %7646 = vmatmul.mubr.bf16.gmra.mrb[36].mxu0 %v10030_v33 }
 0x343   :  { %7649 = vmatprep.mubr.bf16.mxu0 %v10058_v6 }
 0x34a   :  { %7650 = vmatmul.mubr.bf16.gmra.mrb[40].mxu0 %v10055_v21 }
 0x34b   :  { %7653 = vmatprep.mubr.bf16.mxu0 %v10073_v12 }
 0x352   :  { %7654 = vmatmul.mubr.bf16.gmra.mrb[44].mxu0 %v10071_v51 }
 0x353   :  { %7673 = vmatprep.mubr.bf16.mxu0 %v9956_v49  ;;  %v8325_v49 = vld [vmem:[%s10995_s3 + $0x118] sm:$0xff]  }
 0x35a   :  { %7674 = vmatmul.mubr.bf16.vlgmr.msra.gmra.mrb[16].mxu0 %v9952_v1 }
 0x35b   :  { %7677 = vmatprep.mubr.bf16.mxu0 %v9977_v11  ;;  %7706 = vmatpush3.bf16.msra.mxu0 %v8322_v56 }
 0x35c   :  { %7707 = vmatprep.subr.bf16.mxu0 %v8323_v53 }
 0x35f   :  { %7708 = vmatpush3.bf16.msra.mxu0 %v8323_v53 }
 0x360   :  { %7709 = vmatprep.subr.bf16.mxu0 %v8324_v9 }
 0x362   :  { %7678 = vmatmul.mubr.bf16.gmra.mrb[20].mxu0 %v9974_v31 }
 0x363   :  { %7681 = vmatprep.mubr.bf16.mxu0 %v10005_v59  ;;  %7710 = vmatpush3.bf16.msra.mxu0 %v8324_v9 }
 0x364   :  { %7711 = vmatprep.subr.bf16.mxu0 %v8325_v49 }
 0x367   :  { %7712 = vmatpush3.bf16.msra.mxu0 %v8325_v49 }
 0x368   :  { %7713 = vmatprep.subr.bf16.mxu0 %v8326_v7 }
 0x36a   :  { %7682 = vmatmul.mubr.bf16.gmra.mrb[24].mxu0 %v10001_v60 }
 0x36b   :  { %7685 = vmatprep.mubr.bf16.mxu0 %v10018_v22  ;;  %7714 = vmatpush3.bf16.msra.mxu0 %v8326_v7 }
 0x36c   :  { %7715 = vmatprep.subr.bf16.mxu0 %v8327_v55 }
 0x36f   :  { %7716 = vmatpush3.bf16.msra.mxu0 %v8327_v55 }
 0x370   :  { %7717 = vmatprep.subr.bf16.mxu0 %v8328_v0 }
 0x372   :  { %7686 = vmatmul.mubr.bf16.gmra.mrb[28].mxu0 %v10015_v63 }
 0x373   :  { %7689 = vmatprep.mubr.bf16.mxu0 %v10045_v47  ;;  %7718 = vmatpush3.bf16.msra.mxu0 %v8328_v0 }
 0x374   :  { %7719 = vmatprep.subr.bf16.mxu0 %v8329_v42 }
 0x377   :  { %7720 = vmatpush3.bf16.msra.mxu0 %v8329_v42 }
 0x378   :  { %7753 = vmatprep.subr.bf16.mxu0 %v8330_v50 }
 0x37a   :  { %7690 = vmatmul.mubr.bf16.gmra.mrb[32].mxu0 %v10041_v61 }
 0x37b   :  { %7693 = vmatprep.mubr.bf16.mxu0 %v10058_v6 }
 0x382   :  { %7694 = vmatmul.mubr.bf16.gmra.mrb[36].mxu0 %v10055_v21 }
 0x383   :  { %7697 = vmatprep.mubr.bf16.mxu0 %v10095_v17 }
 0x38a   :  { %7698 = vmatmul.mubr.bf16.gmra.mrb[40].mxu0 %v10091_v39 }
 0x38b   :  { %7701 = vmatprep.mubr.bf16.mxu0 %v10114_v14 }
 0x392   :  { %7702 = vmatmul.mubr.bf16.gmra.mrb[44].mxu0 %v10111_v43 }
 0x393   :  { %7721 = vmatprep.mubr.bf16.mxu0 %v9952_v1  ;;  %v8333_v1 = vld [vmem:[%s10995_s3 + $0x158] sm:$0xff]  }
 0x39a   :  { %7722 = vmatmul.mubr.bf16.vlgmr.msra.gmra.mrb[16].mxu0 %v9977_v11 }
 0x39b   :  { %7725 = vmatprep.mubr.bf16.mxu0 %v9974_v31  ;;  %7754 = vmatpush3.bf16.msra.mxu0 %v8330_v50 }
 0x39c   :  { %7755 = vmatprep.subr.bf16.mxu0 %v8331_v44 }
 0x39f   :  { %7756 = vmatpush3.bf16.msra.mxu0 %v8331_v44 }
 0x3a0   :  { %7757 = vmatprep.subr.bf16.mxu0 %v8332_v18 }
 0x3a2   :  { %7726 = vmatmul.mubr.bf16.gmra.mrb[20].mxu0 %v9992_v25 }
 0x3a3   :  { %7729 = vmatprep.mubr.bf16.mxu0 %v10001_v60  ;;  %7758 = vmatpush3.bf16.msra.mxu0 %v8332_v18 }
 0x3a4   :  { %7759 = vmatprep.subr.bf16.mxu0 %v8333_v1 }
 0x3a7   :  { %7760 = vmatpush3.bf16.msra.mxu0 %v8333_v1 }
 0x3a8   :  { %7761 = vmatprep.subr.bf16.mxu0 %v8334_v36 }
 0x3aa   :  { %7730 = vmatmul.mubr.bf16.gmra.mrb[24].mxu0 %v10018_v22 }
 0x3ab   :  { %7733 = vmatprep.mubr.bf16.mxu0 %v10015_v63  ;;  %7762 = vmatpush3.bf16.msra.mxu0 %v8334_v36 }
 0x3ac   :  { %7763 = vmatprep.subr.bf16.mxu0 %v8335_v32 }
 0x3af   :  { %7764 = vmatpush3.bf16.msra.mxu0 %v8335_v32 }
 0x3b0   :  { %7765 = vmatprep.subr.bf16.mxu0 %v8336_v46 }
 0x3b2   :  { %7734 = vmatmul.mubr.bf16.gmra.mrb[28].mxu0 %v10032_v62 }
 0x3b3   :  { %7737 = vmatprep.mubr.bf16.mxu0 %v10041_v61  ;;  %7766 = vmatpush3.bf16.msra.mxu0 %v8336_v46 }
 0x3b4   :  { %7767 = vmatprep.subr.bf16.mxu0 %v8337_v19 }
 0x3b7   :  { %7768 = vmatpush3.bf16.msra.mxu0 %v8337_v19 }
 0x3b8   :  { %7801 = vmatprep.subr.bf16.mxu0 %v8338_v29 }
 0x3ba   :  { %7738 = vmatmul.mubr.bf16.gmra.mrb[32].mxu0 %v10058_v6 }
 0x3bb   :  { %7741 = vmatprep.mubr.bf16.mxu0 %v10055_v21 }
 0x3c2   :  { %7742 = vmatmul.mubr.bf16.gmra.mrb[36].mxu0 %v10073_v12 }
 0x3c3   :  { %7745 = vmatprep.mubr.bf16.mxu0 %v10091_v39 }
 0x3ca   :  { %7746 = vmatmul.mubr.bf16.gmra.mrb[40].mxu0 %v10114_v14 }
 0x3cb   :  { %7749 = vmatprep.mubr.bf16.mxu0 %v10111_v43 }
 0x3d2   :  { %7750 = vmatmul.mubr.bf16.gmra.mrb[44].mxu0 %v10134_v34 }
 0x3d3   :  { %7769 = vmatprep.mubr.bf16.mxu0 %v9977_v11  ;;  %v8341_v11 = vld [vmem:[%s10995_s3 + $0x198] sm:$0xff]  }
 0x3da   :  { %7770 = vmatmul.mubr.bf16.vlgmr.msra.gmra.mrb[16].mxu0 %v9974_v31  ;;  %v8342_v31 = vld [vmem:[%s10995_s3 + $0x1a0] sm:$0xff]  }
 0x3db   :  { %7773 = vmatprep.mubr.bf16.mxu0 %v9992_v25  ;;  %7802 = vmatpush3.bf16.msra.mxu0 %v8338_v29  ;;  %v8343_v25 = vld [vmem:[%s10995_s3 + $0x1a8] sm:$0xff]   ;;  %v8362_v29 = vld [vmem:[%s10997_s5 + $0x40] sm:$0xff]  }
 0x3dc   :  { %7803 = vmatprep.subr.bf16.mxu0 %v8339_v16  ;;  %7140 = vmatprep.subr.bf16.mxu1 %v8362_v29 }
 0x3df   :  { %7804 = vmatpush3.bf16.msra.mxu0 %v8339_v16  ;;  %v8363_v16 = vld [vmem:[%s10997_s5] sm:$0xff]  }
 0x3e0   :  { %7805 = vmatprep.subr.bf16.mxu0 %v8340_v5  ;;  %7141 = vmatpush3.bf16.msra.mxu1 %v8363_v16 }
 0x3e2   :  { %7774 = vmatmul.mubr.bf16.gmra.mrb[20].mxu0 %v9990_v27  ;;  %v8344_v27 = vld [vmem:[%s10995_s3 + $0x1b0] sm:$0xff]  }
 0x3e3   :  { %7777 = vmatprep.mubr.bf16.mxu0 %v10018_v22  ;;  %7806 = vmatpush3.bf16.msra.mxu0 %v8340_v5 }
 0x3e4   :  { %7807 = vmatprep.subr.bf16.mxu0 %v8341_v11 }
 0x3e7   :  { %7808 = vmatpush3.bf16.msra.mxu0 %v8341_v11 }
 0x3e8   :  { %7809 = vmatprep.subr.bf16.mxu0 %v8342_v31 }
 0x3ea   :  { %7778 = vmatmul.mubr.bf16.gmra.mrb[24].mxu0 %v10015_v63 }
 0x3eb   :  { %7781 = vmatprep.mubr.bf16.mxu0 %v10032_v62  ;;  %7810 = vmatpush3.bf16.msra.mxu0 %v8342_v31 }
 0x3ec   :  { %7811 = vmatprep.subr.bf16.mxu0 %v8343_v25 }
 0x3ef   :  { %7812 = vmatpush3.bf16.msra.mxu0 %v8343_v25 }
 0x3f0   :  { %7813 = vmatprep.subr.bf16.mxu0 %v8344_v27 }
 0x3f2   :  { %7782 = vmatmul.mubr.bf16.gmra.mrb[28].mxu0 %v10030_v33 }
 0x3f3   :  { %7785 = vmatprep.mubr.bf16.mxu0 %v10058_v6  ;;  %7814 = vmatpush3.bf16.msra.mxu0 %v8344_v27 }
 0x3f4   :  { %7815 = vmatprep.subr.bf16.mxu0 %v8345_v41 }
 0x3f7   :  { %7816 = vmatpush3.bf16.msra.mxu0 %v8345_v41 }
 0x3f8   :  { %7849 = vmatprep.subr.bf16.mxu0 %v8346_v58 }
 0x3fa   :  { %7786 = vmatmul.mubr.bf16.gmra.mrb[32].mxu0 %v10055_v21 }
 0x3fb   :  { %7789 = vmatprep.mubr.bf16.mxu0 %v10073_v12 }
 0x402   :  { %7790 = vmatmul.mubr.bf16.gmra.mrb[36].mxu0 %v10071_v51 }
 0x403   :  { %7793 = vmatprep.mubr.bf16.mxu0 %v10114_v14 }
 0x40a   :  { %7794 = vmatmul.mubr.bf16.gmra.mrb[40].mxu0 %v10111_v43 }
 0x40b   :  { %7797 = vmatprep.mubr.bf16.mxu0 %v10134_v34 }
 0x412   :  { %7798 = vmatmul.mubr.bf16.gmra.mrb[44].mxu0 %v10132_v23 }
 0x413   :  { %7817 = vmatprep.mubr.bf16.mxu0 %v10005_v59  ;;  %v8349_v59 = vld [vmem:[%s10995_s3 + $0x1d8] sm:$0xff]  }
 0x41a   :  { %7818 = vmatmul.mubr.bf16.vlgmr.msra.gmra.mrb[16].mxu0 %v10001_v60 }
 0x41b   :  { %7821 = vmatprep.mubr.bf16.mxu0 %v10018_v22  ;;  %7850 = vmatpush3.bf16.msra.mxu0 %v8346_v58 }
 0x41c   :  { %7851 = vmatprep.subr.bf16.mxu0 %v8347_v8 }
 0x41f   :  { %7852 = vmatpush3.bf16.msra.mxu0 %v8347_v8 }
 0x420   :  { %7853 = vmatprep.subr.bf16.mxu0 %v8348_v20 }
 0x422   :  { %7822 = vmatmul.mubr.bf16.gmra.mrb[20].mxu0 %v10015_v63 }
 0x423   :  { %7825 = vmatprep.mubr.bf16.mxu0 %v10045_v47  ;;  %7854 = vmatpush3.bf16.msra.mxu0 %v8348_v20  ;;  %v8352_v47 = vld [vmem:[%s10995_s3 + $0x1f0] sm:$0xff]  }
 0x424   :  { %7855 = vmatprep.subr.bf16.mxu0 %v8349_v59 }
 0x427   :  { %7856 = vmatpush3.bf16.msra.mxu0 %v8349_v59 }
 0x428   :  { %7857 = vmatprep.subr.bf16.mxu0 %v8350_v24 }
 0x42a   :  { %7826 = vmatmul.mubr.bf16.gmra.mrb[24].mxu0 %v10041_v61 }
 0x42b   :  { %7829 = vmatprep.mubr.bf16.mxu0 %v10058_v6  ;;  %7858 = vmatpush3.bf16.msra.mxu0 %v8350_v24 }
 0x42c   :  { %7859 = vmatprep.subr.bf16.mxu0 %v8351_v2 }
 0x42f   :  { %7860 = vmatpush3.bf16.msra.mxu0 %v8351_v2  ;;  %v8364_v2 = vld [vmem:[%s10997_s5 + $0x48] sm:$0xff]  }
 0x430   :  { %7861 = vmatprep.subr.bf16.mxu0 %v8352_v47  ;;  %7142 = vmatprep.subr.bf16.mxu1 %v8364_v2  ;;  %v8374_v2 = vld [vmem:[%s10997_s5 + $0x70] sm:$0xff]  }
 0x432   :  { %7830 = vmatmul.mubr.bf16.gmra.mrb[28].mxu0 %v10055_v21 }
 0x433   :  { %7833 = vmatprep.mubr.bf16.mxu0 %v10095_v17  ;;  %7862 = vmatpush3.bf16.msra.mxu0 %v8352_v47  ;;  %v8355_v17 = vld [vmem:[%s10995_s3 + $0x208] sm:$0xff]  }
 0x434   :  { %7863 = vmatprep.subr.bf16.mxu0 %v8353_v40  ;;  %v8365_v47 = vld [vmem:[%s10997_s5 + $0x8] sm:$0xff]  }
 0x435   :  { %7143 = vmatpush3.bf16.msra.mxu1 %v8365_v47  ;;  %v8375_v47 = vld [vmem:[%s10997_s5 + $0x30] sm:$0xff]  }
 0x437   :  { %7864 = vmatpush3.bf16.msra.mxu0 %v8353_v40 }
 0x438   :  { %7897 = vmatprep.subr.bf16.mxu0 %v8354_v3 }
 0x43a   :  { %7834 = vmatmul.mubr.bf16.gmra.mrb[32].mxu0 %v10091_v39 }
 0x43b   :  { %7837 = vmatprep.mubr.bf16.mxu0 %v10114_v14 }
 0x442   :  { %7838 = vmatmul.mubr.bf16.gmra.mrb[36].mxu0 %v10111_v43 }
 0x443   :  { %7841 = vmatprep.mubr.bf16.mxu0 %v10155_v28  ;;  %v8356_v28 = vld [vmem:[%s10995_s3 + $0x210] sm:$0xff]  }
 0x44a   :  { %7842 = vmatmul.mubr.bf16.gmra.mrb[40].mxu0 %v10152_v30 }
 0x44b   :  { %7845 = vmatprep.mubr.bf16.mxu0 %v10169_v52 }
 0x452   :  { %7846 = vmatmul.mubr.bf16.gmra.mrb[44].mxu0 %v10166_v26 }
 0x453   :  { %7865 = vmatprep.mubr.bf16.mxu0 %v10001_v60  ;;  %v8357_v60 = vld [vmem:[%s10995_s3 + $0x218] sm:$0xff]  }
 0x45a   :  { %7866 = vmatmul.mubr.bf16.vlgmr.msra.gmra.mrb[16].mxu0 %v10018_v22 }
 0x45b   :  { %7869 = vmatprep.mubr.bf16.mxu0 %v10015_v63  ;;  %7898 = vmatpush3.bf16.msra.mxu0 %v8354_v3 }
 0x45c   :  { %7899 = vmatprep.subr.bf16.mxu0 %v8355_v17 }
 0x45f   :  { %7900 = vmatpush3.bf16.msra.mxu0 %v8355_v17 }
 0x460   :  { %7901 = vmatprep.subr.bf16.mxu0 %v8356_v28 }
 0x462   :  { %7870 = vmatmul.mubr.bf16.gmra.mrb[20].mxu0 %v10032_v62 }
 0x463   :  { %7873 = vmatprep.mubr.bf16.mxu0 %v10041_v61  ;;  %7902 = vmatpush3.bf16.msra.mxu0 %v8356_v28  ;;  %v8360_v61 = vld [vmem:[%s10995_s3 + $0x230] sm:$0xff]   ;;  %s8467_s3 = smov 96  }
 0x464   :  { %7903 = vmatprep.subr.bf16.mxu0 %v8357_v60 }
 0x467   :  { %7904 = vmatpush3.bf16.msra.mxu0 %v8357_v60 }
 0x468   :  { %7905 = vmatprep.subr.bf16.mxu0 %v8358_v13 }
 0x46a   :  { %7874 = vmatmul.mubr.bf16.gmra.mrb[24].mxu0 %v10058_v6 }
 0x46b   :  { %7877 = vmatprep.mubr.bf16.mxu0 %v10055_v21  ;;  %7906 = vmatpush3.bf16.msra.mxu0 %v8358_v13 }
 0x46c   :  { %7907 = vmatprep.subr.bf16.mxu0 %v8359_v48 }
 0x46f   :  { %7908 = vmatpush3.bf16.msra.mxu0 %v8359_v48 }
 0x470   :  { %7909 = vmatprep.subr.bf16.mxu0 %v8360_v61 }
 0x472   :  { %7878 = vmatmul.mubr.bf16.gmra.mrb[28].mxu0 %v10073_v12 }
 0x473   :  { %7881 = vmatprep.mubr.bf16.mxu0 %v10091_v39  ;;  %7910 = vmatpush3.bf16.msra.mxu0 %v8360_v61 }
 0x474   :  { %7911 = vmatprep.subr.bf16.mxu0 %v8361_v15 }
 0x477   :  { %7912 = vmatpush3.bf16.msra.mxu0 %v8361_v15 }
 0x47a   :  { %7882 = vmatmul.mubr.bf16.gmra.mrb[32].mxu0 %v10114_v14 }
 0x47b   :  { %7885 = vmatprep.mubr.bf16.mxu0 %v10111_v43 }
 0x482   :  { %7886 = vmatmul.mubr.bf16.gmra.mrb[36].mxu0 %v10134_v34 }
 0x483   :  { %7889 = vmatprep.mubr.bf16.mxu0 %v10152_v30 }
 0x48a   :  { %7890 = vmatmul.mubr.bf16.gmra.mrb[40].mxu0 %v10169_v52 }
 0x48b   :  { %7893 = vmatprep.mubr.bf16.mxu0 %v10166_v26 }
 0x492   :  { %7894 = vmatmul.mubr.bf16.gmra.mrb[44].mxu0 %v10181_v37 }
 0x493   :  { %7913 = vmatprep.mubr.bf16.mxu0 %v10018_v22 }
 0x49a   :  { %7914 = vmatmul.mubr.bf16.vlgmr.msra.gmra.mrb[16].mxu0 %v10015_v63 }
 0x49b   :  { %7917 = vmatprep.mubr.bf16.mxu0 %v10032_v62 }
 0x4a2   :  { %7918 = vmatmul.mubr.bf16.gmra.mrb[20].mxu0 %v10030_v33 }
 0x4a3   :  { %7921 = vmatprep.mubr.bf16.mxu0 %v10058_v6 }
 0x4aa   :  { %7922 = vmatmul.mubr.bf16.gmra.mrb[24].mxu0 %v10055_v21 }
 0x4ab   :  { %7925 = vmatprep.mubr.bf16.mxu0 %v10073_v12 }
 0x4b2   :  { %7926 = vmatmul.mubr.bf16.gmra.mrb[28].mxu0 %v10071_v51 }
 0x4b3   :  { %7929 = vmatprep.mubr.bf16.mxu0 %v10114_v14 }
 0x4ba   :  { %7930 = vmatmul.mubr.bf16.gmra.mrb[32].mxu0 %v10111_v43 }
 0x4bb   :  { %7933 = vmatprep.mubr.bf16.mxu0 %v10134_v34 }
 0x4c2   :  { %7934 = vmatmul.mubr.bf16.gmra.mrb[36].mxu0 %v10132_v23 }
 0x4c3   :  { %7937 = vmatprep.mubr.bf16.mxu0 %v10169_v52 }
 0x4ca   :  { %7938 = vmatmul.mubr.bf16.gmra.mrb[40].mxu0 %v10166_v26 }
 0x4cb   :  { %7941 = vmatprep.mubr.bf16.mxu0 %v10181_v37 }
 0x4d2   :  { %7942 = vmatmul.mubr.bf16.gmra.mrb[44].mxu0 %v10179_v35 }
 0x56d   :  { %v7915_v63 = vpop.f32.mrb[16].mxu0 }
 0x56e   :  { %5305 = vrot.lane.b32.xlu1 %v7915_v63, %s8467_s3  ;;  %v10440_v22 = vpop.f32.mrb[17].mxu0 }
 0x56f   :  { %v7916_v33 = vpop.f32.mrb[18].mxu0 }
 0x570   :  { %v10442_v62 = vpop.f32.mrb[19].mxu0 }
 0x572   :  { %5307 = vrot.lane.b32.xlu1 %v7916_v33, %s8467_s3 }
 0x575   :  { %v10445_v21 = vpop.f32.mrb[20].mxu0 }
 0x576   :  { %v5030_v6 = vpop.f32.mrb[21].mxu0 }
 0x577   :  { %5309 = vrot.lane.b32.xlu0 %v5030_v6, %s8467_s3  ;;  %v10448_v51 = vpop.f32.mrb[22].mxu0 }
 0x578   :  { %v5033_v12 = vpop.f32.mrb[23].mxu0 }
 0x579   :  { %5311 = vrot.lane.b32.xlu1 %v5033_v12, %s8467_s3 }
 0x57d   :  { %v10451_v39 = vpop.f32.mrb[24].mxu0 }
 0x57e   :  { %5321 = vrot.lane.b32.xlu0 %v10451_v39, %s8467_s3  ;;  %v10455_v43 = vpop.f32.mrb[25].mxu0 }
 0x57f   :  { %v10457_v14 = vpop.f32.mrb[26].mxu0 }
 0x580   :  { %v10459_v23 = vpop.f32.mrb[27].mxu0 }
 0x582   :  { %5323 = vrot.lane.b32.xlu0 %v10457_v14, %s8467_s3 }
 0x585   :  { %v10463_v34 = vpop.f32.mrb[28].mxu0 }
 0x586   :  { %5329 = vrot.lane.b32.xlu0 %v10463_v34, %s8467_s3  ;;  %v10467_v30 = vpop.f32.mrb[29].mxu0 }
 0x587   :  { %v10469_v26 = vpop.f32.mrb[30].mxu0 }
 0x588   :  { %5331 = vrot.lane.b32.xlu1 %v10469_v26, %s8467_s3  ;;  %v10473_v52 = vpop.f32.mrb[31].mxu0 }
 0x58a   :  { %5325 = vrot.lane.b32.xlu0 %v10467_v30, %s8467_s3 }
 0x58c   :  { %5327 = vrot.lane.b32.xlu1 %v10473_v52, %s8467_s3 }
 0x58d   :  { %v10479_v35 = vpop.f32.mrb[32].mxu0 }
 0x58e   :  { %5313 = vrot.lane.b32.xlu0 %v10445_v21, %s8467_s3  ;;  %v10483_v37 = vpop.f32.mrb[33].mxu0 }
 0x58f   :  { %v10485_v4 = vpop.f32.mrb[34].mxu0 }
 0x590   :  { %5315 = vrot.lane.b32.xlu1 %v10448_v51, %s8467_s3  ;;  %v10489_v45 = vpop.f32.mrb[35].mxu0 }
 0x592   :  { %5337 = vrot.lane.b32.xlu0 %v10479_v35, %s8467_s3 }
 0x594   :  { %5339 = vrot.lane.b32.xlu1 %v10485_v4, %s8467_s3 }
 0x595   :  { %v10495_v10 = vpop.f32.mrb[36].mxu0 }
 0x596   :  { %5345 = vrot.lane.b32.xlu0 %v10495_v10, %s8467_s3  ;;  %v10499_v54 = vpop.f32.mrb[37].mxu0 }
 0x597   :  { %v10501_v38 = vpop.f32.mrb[38].mxu0 }
 0x598   :  { %5347 = vrot.lane.b32.xlu1 %v10501_v38, %s8467_s3  ;;  %v10505_v57 = vpop.f32.mrb[39].mxu0 }
 0x59a   :  { %5341 = vrot.lane.b32.xlu0 %v10499_v54, %s8467_s3 }
 0x59c   :  { %5343 = vrot.lane.b32.xlu1 %v10505_v57, %s8467_s3 }
 0x59d   :  { %v10511_v56 = vpop.f32.mrb[40].mxu0 }
 0x59e   :  { %5353 = vrot.lane.b32.xlu0 %v10511_v56, %s8467_s3  ;;  %v10515_v53 = vpop.f32.mrb[41].mxu0 }
 0x59f   :  { %v10517_v9 = vpop.f32.mrb[42].mxu0 }
 0x5a0   :  { %5355 = vrot.lane.b32.xlu1 %v10517_v9, %s8467_s3  ;;  %v10521_v49 = vpop.f32.mrb[43].mxu0 }
 0x5a5   :  { %v10523_v7 = vpop.f32.mrb[44].mxu0 }
 0x5a6   :  { %5361 = vrot.lane.b32.xlu0 %v10523_v7, %s8467_s3  ;;  %v10527_v55 = vpop.f32.mrb[45].mxu0 }
 0x5a7   :  { %v10529_v0 = vpop.f32.mrb[46].mxu0 }
 0x5a8   :  { %5363 = vrot.lane.b32.xlu1 %v10529_v0, %s8467_s3  ;;  %v10533_v42 = vpop.f32.mrb[47].mxu0 }
 0x5aa   :  { %5357 = vrot.lane.b32.xlu0 %v10527_v55, %s8467_s3 }
 0x5ac   :  { %5359 = vrot.lane.b32.xlu1 %v10533_v42, %s8467_s3 }
 0x5ae   :  { %5317 = vrot.lane.b32.xlu0 %v10455_v43, %s8467_s3 }
 0x5b0   :  { %5319 = vrot.lane.b32.xlu1 %v10459_v23, %s8467_s3 }
 0x5b2   :  { %5301 = vrot.lane.b32.xlu0 %v10440_v22, %s8467_s3 }
 0x5b4   :  { %5303 = vrot.lane.b32.xlu1 %v10442_v62, %s8467_s3 }
 0x5e0   :  { %v5306_v50 = vpop.permute.xlu1 %5305 }
 0x5e1   :  { %v10547_v44 = vmax.f32 %v7915_v63, %v5306_v50 }
 0x5e3   :  { %5465 = vrot.lane.b32.xlu0 %v10547_v44, %s8468_s16 }
 0x5e4   :  { %v5308_v18 = vpop.permute.xlu1 %5307 }
 0x5e5   :  { %v10551_v1 = vmax.f32 %v7916_v33, %v5308_v18 }
 0x5e7   :  { %5467 = vrot.lane.b32.xlu1 %v10551_v1, %s8468_s16 }
 0x5e9   :  { %v5310_v36 = vpop.permute.xlu0 %5309 }
 0x5ea   :  { %v10555_v32 = vmax.f32 %v5030_v6, %v5310_v36 }
 0x5eb   :  { %v5312_v46 = vpop.permute.xlu1 %5311 }
 0x5ec   :  { %v10557_v19 = vmax.f32 %v5033_v12, %v5312_v46  ;;  %5469 = vrot.lane.b32.xlu0 %v10555_v32, %s8468_s16  ;;  %v8369_v46 = vld [vmem:[%s10997_s5 + $0x18] sm:$0xff]  }
 0x5ee   :  { %5471 = vrot.lane.b32.xlu1 %v10557_v19, %s8468_s16 }
 0x5f0   :  { %v5322_v5 = vpop.permute.xlu0 %5321 }
 0x5f1   :  { %v10570_v11 = vmax.f32 %v10451_v39, %v5322_v5  ;;  %v8371_v5 = vld [vmem:[%s10997_s5 + $0x20] sm:$0xff]  }
 0x5f3   :  { %5481 = vrot.lane.b32.xlu0 %v10570_v11, %s8468_s16 }
 0x5f4   :  { %v5324_v31 = vpop.permute.xlu0 %5323 }
 0x5f5   :  { %v10575_v25 = vmax.f32 %v10457_v14, %v5324_v31 }
 0x5f7   :  { %5483 = vrot.lane.b32.xlu1 %v10575_v25, %s8468_s16 }
 0x5f8   :  { %v5330_v27 = vpop.permute.xlu0 %5329 }
 0x5f9   :  { %v10580_v41 = vmax.f32 %v10463_v34, %v5330_v27  ;;  %v8366_v34 = vld [vmem:[%s10997_s5 + $0x50] sm:$0xff]  }
 0x5fa   :  { %v5332_v58 = vpop.permute.xlu1 %5331  ;;  %7144 = vmatprep.subr.bf16.mxu1 %v8366_v34 }
 0x5fb   :  { %v10583_v8 = vmax.f32 %v10469_v26, %v5332_v58  ;;  %5489 = vrot.lane.b32.xlu0 %v10580_v41, %s8468_s16  ;;  %v8373_v58 = vld [vmem:[%s10997_s5 + $0x28] sm:$0xff]  }
 0x5fc   :  { %v5326_v20 = vpop.permute.xlu0 %5325 }
 0x5fd   :  { %v10588_v59 = vmax.f32 %v10467_v30, %v5326_v20  ;;  %5491 = vrot.lane.b32.xlu1 %v10583_v8, %s8468_s16  ;;  %v8367_v30 = vld [vmem:[%s10997_s5 + $0x10] sm:$0xff]  }
 0x5fe   :  { %v5328_v24 = vpop.permute.xlu1 %5327  ;;  %7145 = vmatpush3.bf16.msra.mxu1 %v8367_v30 }
 0x5ff   :  { %v10599_v40 = vmax.f32 %v10473_v52, %v5328_v24  ;;  %5485 = vrot.lane.b32.xlu0 %v10588_v59, %s8468_s16 }
 0x600   :  { %v5314_v3 = vpop.permute.xlu0 %5313 }
 0x601   :  { %v10604_v17 = vmax.f32 %v10445_v21, %v5314_v3  ;;  %5487 = vrot.lane.b32.xlu1 %v10599_v40, %s8468_s16 }
 0x602   :  { %v5316_v28 = vpop.permute.xlu1 %5315 }
 0x603   :  { %v10609_v60 = vmax.f32 %v10448_v51, %v5316_v28  ;;  %5473 = vrot.lane.b32.xlu0 %v10604_v17, %s8468_s16 }
 0x604   :  { %v5338_v13 = vpop.permute.xlu0 %5337 }
 0x605   :  { %5475 = vrot.lane.b32.xlu1 %v10609_v60, %s8468_s16  ;;  %v10622_v33 = vmax.f32 %v10479_v35, %v5338_v13 }
 0x606   :  { %v5340_v48 = vpop.permute.xlu1 %5339 }
 0x607   :  { %5349 = vrot.lane.b32.xlu0 %v10515_v53, %s8467_s3  ;;  %v10627_v6 = vmax.f32 %v10485_v4, %v5340_v48 }
 0x608   :  { %v5346_v61 = vpop.permute.xlu0 %5345 }
 0x609   :  { %5351 = vrot.lane.b32.xlu1 %v10521_v49, %s8467_s3 }
 0x60a   :  { %v5348_v15 = vpop.permute.xlu1 %5347 }
 0x60b   :  { %5333 = vrot.lane.b32.xlu0 %v10483_v37, %s8467_s3 }
 0x60c   :  { %v5342_v63 = vpop.permute.xlu0 %5341 }
 0x60d   :  { %5335 = vrot.lane.b32.xlu1 %v10489_v45, %s8467_s3  ;;  %v10632_v51 = vmax.f32 %v10499_v54, %v5342_v63 }
 0x60e   :  { %v5344_v21 = vpop.permute.xlu1 %5343 }
 0x60f   :  { %5497 = vrot.lane.b32.xlu0 %v10622_v33, %s8468_s16  ;;  %v10637_v39 = vmax.f32 %v10505_v57, %v5344_v21 }
 0x610   :  { %v5354_v12 = vpop.permute.xlu0 %5353 }
 0x611   :  { %5499 = vrot.lane.b32.xlu1 %v10627_v6, %s8468_s16  ;;  %v10648_v26 = vmax.f32 %v10511_v56, %v5354_v12 }
 0x612   :  { %v5356_v14 = vpop.permute.xlu1 %5355 }
 0x613   :  { %5501 = vrot.lane.b32.xlu0 %v10632_v51, %s8468_s16  ;;  %v10653_v52 = vmax.f32 %v10517_v9, %v5356_v14 }
 0x615   :  { %5503 = vrot.lane.b32.xlu1 %v10637_v39, %s8468_s16 }
 0x617   :  { %5513 = vrot.lane.b32.xlu0 %v10648_v26, %s8468_s16 }
 0x618   :  { %v5362_v35 = vpop.permute.xlu0 %5361 }
 0x619   :  { %v10658_v4 = vmax.f32 %v10523_v7, %v5362_v35  ;;  %5515 = vrot.lane.b32.xlu1 %v10653_v52, %s8468_s16 }
 0x61a   :  { %v5364_v54 = vpop.permute.xlu1 %5363 }
 0x61b   :  { %v10663_v57 = vmax.f32 %v10529_v0, %v5364_v54  ;;  %5521 = vrot.lane.b32.xlu0 %v10658_v4, %s8468_s16  ;;  %v10678_v0 = vmax.f32 %v10495_v10, %v5346_v61  ;;  %v8370_v10 = vld [vmem:[%s10997_s5 + $0x60] sm:$0xff]   ;;  %v8376_v54 = vld [vmem:[%s10997_s5 + $0x78] sm:$0xff]  }
 0x61c   :  { %v5358_v56 = vpop.permute.xlu0 %5357 }
 0x61d   :  { %v10668_v9 = vmax.f32 %v10527_v55, %v5358_v56  ;;  %5523 = vrot.lane.b32.xlu1 %v10663_v57, %s8468_s16  ;;  %v10683_v55 = vmax.f32 %v10501_v38, %v5348_v15 }
 0x61e   :  { %v5360_v50 = vpop.permute.xlu1 %5359 }
 0x61f   :  { %v10673_v7 = vmax.f32 %v10533_v42, %v5360_v50  ;;  %5517 = vrot.lane.b32.xlu0 %v10668_v9, %s8468_s16  ;;  %v8368_v42 = vld [vmem:[%s10997_s5 + $0x58] sm:$0xff]  }
 0x620   :  { %v5318_v18 = vpop.permute.xlu0 %5317  ;;  %7146 = vmatprep.subr.bf16.mxu1 %v8368_v42 }
 0x621   :  { %5519 = vrot.lane.b32.xlu1 %v10673_v7, %s8468_s16  ;;  %v10697_v29 = vmax.f32 %v10455_v43, %v5318_v18  ;;  %7147 = vmatpush3.bf16.msra.mxu1 %v8369_v46  ;;  %v8372_v43 = vld [vmem:[%s10997_s5 + $0x68] sm:$0xff]  }
 0x622   :  { %v5320_v36 = vpop.permute.xlu1 %5319  ;;  %7148 = vmatprep.subr.bf16.mxu1 %v8370_v10 }
 0x623   :  { %5505 = vrot.lane.b32.xlu0 %v10678_v0, %s8468_s16  ;;  %v10702_v16 = vmax.f32 %v10459_v23, %v5320_v36 }
 0x624   :  { %v5302_v38 = vpop.permute.xlu0 %5301 }
 0x625   :  { %5507 = vrot.lane.b32.xlu1 %v10683_v55, %s8468_s16  ;;  %v10713_v27 = vmax.f32 %v10440_v22, %v5302_v38  ;;  %7149 = vmatpush3.bf16.msra.mxu1 %v8371_v5  ;;  %v10730_v22 = vld [vmem:[%s10996_s4] ss:$0 sm:$0xff]  ;;  %s8469_s4 = smov 32  }
 0x626   :  { %v5304_v31 = vpop.permute.xlu1 %5303  ;;  %7150 = vmatprep.subr.bf16.mxu1 %v8372_v43 }
 0x627   :  { %5477 = vrot.lane.b32.xlu0 %v10697_v29, %s8468_s16  ;;  %v10718_v23 = vmax.f32 %v10442_v62, %v5304_v31 }
 0x629   :  { %5479 = vrot.lane.b32.xlu1 %v10702_v16, %s8468_s16  ;;  %7151 = vmatpush3.bf16.msra.mxu1 %v8373_v58 }
 0x62a   :  { %7152 = vmatprep.subr.bf16.mxu1 %v8374_v2 }
 0x62b   :  { %5461 = vrot.lane.b32.xlu0 %v10713_v27, %s8468_s16 }
 0x62d   :  { %5463 = vrot.lane.b32.xlu1 %v10718_v23, %s8468_s16  ;;  %7153 = vmatpush3.bf16.msra.mxu1 %v8375_v47 }
 0x62e   :  { %7154 = vmatprep.subr.bf16.mxu1 %v8376_v54 }
 0x655   :  { %v5466_v62 = vpop.permute.xlu0 %5465 }
 0x656   :  { %v5559_v20 = vmax.f32 %v10547_v44, %v5466_v62 }
 0x658   :  { %v5598_v24 = vadd.f32 %v10730_v22, %v5559_v20 }
 0x659   :  { %v5468_v3 = vpop.permute.xlu1 %5467 }
 0x65a   :  { %v5630_v28 = vmax.f32 %v5598_v24, 0.0  ;;  %v5560_v13 = vmax.f32 %v10551_v1, %v5468_v3 }
 0x65c   :  { %v5599_v48 = vadd.f32 %v10730_v22, %v5560_v13  ;;  %5665 = vrot.lane.b32.xlu0 %v5630_v28, %s8469_s4 }
 0x65e   :  { %v5631_v44 = vmax.f32 %v5599_v48, 0.0  ;;  %v5470_v61 = vpop.permute.xlu0 %5469 }
 0x65f   :  { %v5561_v15 = vmax.f32 %v10555_v32, %v5470_v61 }
 0x660   :  { %5667 = vrot.lane.b32.xlu1 %v5631_v44, %s8469_s4  ;;  %v5472_v63 = vpop.permute.xlu1 %5471 }
 0x661   :  { %v5600_v21 = vadd.f32 %v10730_v22, %v5561_v15  ;;  %v5562_v12 = vmax.f32 %v10557_v19, %v5472_v63 }
 0x663   :  { %v5632_v14 = vmax.f32 %v5600_v21, 0.0  ;;  %v5601_v1 = vadd.f32 %v10730_v22, %v5562_v12 }
 0x665   :  { %v5633_v34 = vmax.f32 %v5601_v1, 0.0  ;;  %5676 = vrot.lane.b32.xlu0 %v5632_v14, %s8468_s16  ;;  %v5482_v30 = vpop.permute.xlu0 %5481 }
 0x666   :  { %v5567_v35 = vmax.f32 %v10570_v11, %v5482_v30  ;;  %v8377_v11 = vld [vmem:[%s10997_s5 + $0x38] sm:$0xff]  }
 0x667   :  { %5678 = vrot.lane.b32.xlu1 %v5633_v34, %s8468_s16  ;;  %7155 = vmatpush3.bf16.msra.mxu1 %v8377_v11 }
 0x668   :  { %v5606_v32 = vadd.f32 %v10730_v22, %v5567_v35 }
 0x669   :  { %v5484_v56 = vpop.permute.xlu1 %5483 }
 0x66a   :  { %v5638_v50 = vmax.f32 %v5606_v32, 0.0  ;;  %v5568_v19 = vmax.f32 %v10575_v25, %v5484_v56 }
 0x66c   :  { %v5607_v18 = vadd.f32 %v10730_v22, %v5568_v19  ;;  %5700 = vrot.lane.b32.xlu0 %v5638_v50, %s8469_s4 }
 0x66d   :  { %v5490_v36 = vpop.permute.xlu0 %5489 }
 0x66e   :  { %v5639_v42 = vmax.f32 %v5607_v18, 0.0  ;;  %v5571_v46 = vmax.f32 %v10580_v41, %v5490_v36 }
 0x66f   :  { %v5492_v10 = vpop.permute.xlu1 %5491 }
 0x670   :  { %v5610_v38 = vadd.f32 %v10730_v22, %v5571_v46  ;;  %v5572_v5 = vmax.f32 %v10583_v8, %v5492_v10  ;;  %5702 = vrot.lane.b32.xlu1 %v5639_v42, %s8469_s4 }
 0x671   :  { %v5486_v25 = vpop.permute.xlu0 %5485 }
 0x672   :  { %v5642_v31 = vmax.f32 %v5610_v38, 0.0  ;;  %v5611_v43 = vadd.f32 %v10730_v22, %v5572_v5  ;;  %v5569_v58 = vmax.f32 %v10588_v59, %v5486_v25 }
 0x673   :  { %v5488_v62 = vpop.permute.xlu1 %5487 }
 0x674   :  { %v5643_v20 = vmax.f32 %v5611_v43, 0.0  ;;  %v5608_v24 = vadd.f32 %v10730_v22, %v5569_v58  ;;  %v5570_v41 = vmax.f32 %v10599_v40, %v5488_v62  ;;  %5720 = vrot.lane.b32.xlu0 %v5642_v31, %s8467_s3  ;;  %v8378_v40 = vld [vmem:[%s10997_s5 + $0xc0] sm:$0xff]  }
 0x675   :  { %v5474_v2 = vpop.permute.xlu0 %5473  ;;  %7162 = vmatprep.subr.bf16.mxu1 %v8378_v40 }
 0x676   :  { %v5640_v47 = vmax.f32 %v5608_v24, 0.0  ;;  %v5609_v8 = vadd.f32 %v10730_v22, %v5570_v41  ;;  %v5563_v3 = vmax.f32 %v10604_v17, %v5474_v2  ;;  %5722 = vrot.lane.b32.xlu1 %v5643_v20, %s8467_s3 }
 0x677   :  { %v5476_v28 = vpop.permute.xlu1 %5475 }
 0x678   :  { %v5641_v13 = vmax.f32 %v5609_v8, 0.0  ;;  %v5602_v59 = vadd.f32 %v10730_v22, %v5563_v3  ;;  %v5564_v48 = vmax.f32 %v10609_v60, %v5476_v28  ;;  %5710 = vrot.lane.b32.xlu0 %v5640_v47, %s8468_s16 }
 0x679   :  { %v5350_v44 = vpop.permute.xlu0 %5349 }
 0x67a   :  { %v5634_v61 = vmax.f32 %v5602_v59, 0.0  ;;  %v5603_v15 = vadd.f32 %v10730_v22, %v5564_v48  ;;  %5712 = vrot.lane.b32.xlu1 %v5641_v13, %s8468_s16  ;;  %v10783_v60 = vmax.f32 %v10515_v53, %v5350_v44 }
 0x67b   :  { %v5352_v17 = vpop.permute.xlu1 %5351 }
 0x67c   :  { %v5635_v63 = vmax.f32 %v5603_v15, 0.0  ;;  %5687 = vrot.lane.b32.xlu0 %v5634_v61, %s8467_s3  ;;  %v10787_v14 = vmax.f32 %v10521_v49, %v5352_v17 }
 0x67d   :  { %v5334_v21 = vpop.permute.xlu0 %5333 }
 0x67e   :  { %5689 = vrot.lane.b32.xlu1 %v5635_v63, %s8467_s3  ;;  %v10792_v34 = vmax.f32 %v10483_v37, %v5334_v21 }
 0x67f   :  { %v5336_v12 = vpop.permute.xlu1 %5335 }
 0x680   :  { %5509 = vrot.lane.b32.xlu0 %v10783_v60, %s8468_s16  ;;  %v10798_v35 = vmax.f32 %v10489_v45, %v5336_v12 }
 0x681   :  { %v5498_v1 = vpop.permute.xlu0 %5497 }
 0x682   :  { %v5575_v30 = vmax.f32 %v10622_v33, %v5498_v1  ;;  %5511 = vrot.lane.b32.xlu1 %v10787_v14, %s8468_s16 }
 0x683   :  { %v5500_v53 = vpop.permute.xlu1 %5499 }
 0x684   :  { %v5614_v32 = vadd.f32 %v10730_v22, %v5575_v30  ;;  %v5576_v49 = vmax.f32 %v10627_v6, %v5500_v53  ;;  %5493 = vrot.lane.b32.xlu0 %v10792_v34, %s8468_s16 }
 0x685   :  { %v5502_v54 = vpop.permute.xlu0 %5501 }
 0x686   :  { %v5646_v56 = vmax.f32 %v5614_v32, 0.0  ;;  %v5615_v37 = vadd.f32 %v10730_v22, %v5576_v49  ;;  %v5577_v33 = vmax.f32 %v10632_v51, %v5502_v54  ;;  %5495 = vrot.lane.b32.xlu1 %v10798_v35, %s8468_s16 }
 0x687   :  { %v5504_v50 = vpop.permute.xlu1 %5503 }
 0x688   :  { %v5647_v19 = vmax.f32 %v5615_v37, 0.0  ;;  %v5616_v45 = vadd.f32 %v10730_v22, %v5577_v33  ;;  %v5578_v18 = vmax.f32 %v10637_v39, %v5504_v50  ;;  %5732 = vrot.lane.b32.xlu0 %v5646_v56, %s8469_s4 }
 0x689   :  { %v5514_v6 = vpop.permute.xlu0 %5513 }
 0x68a   :  { %v5648_v11 = vmax.f32 %v5616_v45, 0.0  ;;  %v5617_v36 = vadd.f32 %v10730_v22, %v5578_v18  ;;  %v5583_v42 = vmax.f32 %v10648_v26, %v5514_v6  ;;  %5734 = vrot.lane.b32.xlu1 %v5647_v19, %s8469_s4 }
 0x68b   :  { %v5516_v51 = vpop.permute.xlu1 %5515 }
 0x68c   :  { %v5649_v46 = vmax.f32 %v5617_v36, 0.0  ;;  %v5622_v10 = vadd.f32 %v10730_v22, %v5583_v42  ;;  %v5584_v38 = vmax.f32 %v10653_v52, %v5516_v51  ;;  %5742 = vrot.lane.b32.xlu0 %v5648_v11, %s8468_s16 }
 0x68d   :  { %v5522_v5 = vpop.permute.xlu0 %5521 }
 0x68e   :  { %v5654_v39 = vmax.f32 %v5622_v10, 0.0  ;;  %v5623_v25 = vadd.f32 %v10730_v22, %v5584_v38  ;;  %v5587_v31 = vmax.f32 %v10658_v4, %v5522_v5  ;;  %5744 = vrot.lane.b32.xlu1 %v5649_v46, %s8468_s16 }
 0x68f   :  { %v5524_v43 = vpop.permute.xlu1 %5523 }
 0x690   :  { %v5655_v26 = vmax.f32 %v5623_v25, 0.0  ;;  %v5626_v58 = vadd.f32 %v10730_v22, %v5587_v31  ;;  %v5588_v62 = vmax.f32 %v10663_v57, %v5524_v43  ;;  %5764 = vrot.lane.b32.xlu0 %v5654_v39, %s8469_s4 }
 0x691   :  { %v5518_v20 = vpop.permute.xlu0 %5517 }
 0x692   :  { %v5658_v52 = vmax.f32 %v5626_v58, 0.0  ;;  %v5627_v24 = vadd.f32 %v10730_v22, %v5588_v62  ;;  %v5585_v41 = vmax.f32 %v10668_v9, %v5518_v20  ;;  %5766 = vrot.lane.b32.xlu1 %v5655_v26, %s8469_s4 }
 0x693   :  { %v5520_v2 = vpop.permute.xlu1 %5519 }
 0x694   :  { %v5659_v4 = vmax.f32 %v5627_v24, 0.0  ;;  %v5624_v47 = vadd.f32 %v10730_v22, %v5585_v41  ;;  %v5586_v8 = vmax.f32 %v10673_v7, %v5520_v2  ;;  %5784 = vrot.lane.b32.xlu0 %v5658_v52, %s8467_s3 }
 0x695   :  { %v5506_v3 = vpop.permute.xlu0 %5505 }
 0x696   :  { %v5656_v57 = vmax.f32 %v5624_v47, 0.0  ;;  %v5625_v28 = vadd.f32 %v10730_v22, %v5586_v8  ;;  %v5579_v13 = vmax.f32 %v10678_v0, %v5506_v3  ;;  %5786 = vrot.lane.b32.xlu1 %v5659_v4, %s8467_s3 }
 0x697   :  { %v5508_v59 = vpop.permute.xlu1 %5507 }
 0x698   :  { %v5657_v9 = vmax.f32 %v5625_v28, 0.0  ;;  %v5618_v48 = vadd.f32 %v10730_v22, %v5579_v13  ;;  %v5580_v44 = vmax.f32 %v10683_v55, %v5508_v59  ;;  %5774 = vrot.lane.b32.xlu0 %v5656_v57, %s8468_s16  ;;  %v8381_v28 = vld [vmem:[%s10997_s5 + $0x88] sm:$0xff]   ;;  %v8382_v13 = vld [vmem:[%s10997_s5 + $0xd0] sm:$0xff]  }
 0x699   :  { %v5478_v40 = vpop.permute.xlu0 %5477 }
 0x69a   :  { %v5650_v7 = vmax.f32 %v5618_v48, 0.0  ;;  %v5619_v61 = vadd.f32 %v10730_v22, %v5580_v44  ;;  %v5565_v15 = vmax.f32 %v10697_v29, %v5478_v40  ;;  %5776 = vrot.lane.b32.xlu1 %v5657_v9, %s8468_s16  ;;  %v8383_v9 = vld [vmem:[%s10997_s5 + $0x90] sm:$0xff]   ;;  %v8384_v48 = vld [vmem:[%s10997_s5 + $0xd8] sm:$0xff]  }
 0x69b   :  { %v5480_v17 = vpop.permute.xlu1 %5479 }
 0x69c   :  { %v5651_v0 = vmax.f32 %v5619_v61, 0.0  ;;  %v5604_v63 = vadd.f32 %v10730_v22, %v5565_v15  ;;  %v5566_v21 = vmax.f32 %v10702_v16, %v5480_v17  ;;  %5752 = vrot.lane.b32.xlu0 %v5650_v7, %s8467_s3  ;;  %v8385_v7 = vld [vmem:[%s10997_s5 + $0x98] sm:$0xff]   ;;  %v8386_v61 = vld [vmem:[%s10997_s5 + $0xe0] sm:$0xff]  }
 0x69d   :  { %v5462_v12 = vpop.permute.xlu0 %5461 }
 0x69e   :  { %v5636_v55 = vmax.f32 %v5604_v63, 0.0  ;;  %v5605_v1 = vadd.f32 %v10730_v22, %v5566_v21  ;;  %v5557_v30 = vmax.f32 %v10713_v27, %v5462_v12  ;;  %5754 = vrot.lane.b32.xlu1 %v5651_v0, %s8467_s3  ;;  %v8387_v0 = vld [vmem:[%s10997_s5 + $0xa0] sm:$0xff]   ;;  %v8388_v63 = vld [vmem:[%s10997_s5 + $0xe8] sm:$0xff]  }
 0x69f   :  { %v5464_v29 = vpop.permute.xlu1 %5463 }
 0x6a0   :  { %v5637_v53 = vmax.f32 %v5605_v1, 0.0  ;;  %v5596_v32 = vadd.f32 %v10730_v22, %v5557_v30  ;;  %v5558_v49 = vmax.f32 %v10718_v23, %v5464_v29  ;;  %5696 = vst.msk [vmem:[#allocation4 + $0x8] sm:$0xff] %vm5660_vm1, %v5636_v55  ;;  %v8389_v55 = vld [vmem:[%s10997_s5 + $0xa8] sm:$0xff]   ;;  %v8390_v1 = vld [vmem:[%s10997_s5 + $0xf0] sm:$0xff]  }
 0x6a2   :  { %v5628_v16 = vmax.f32 %v5596_v32, 0.0  ;;  %v5597_v54 = vadd.f32 %v10730_v22, %v5558_v49  ;;  %5697 = vst.msk [vmem:[#allocation4 + $0x28] sm:$0xff] %vm5660_vm1, %v5637_v53  ;;  %v8391_v53 = vld [vmem:[%s10997_s5 + $0xb0] sm:$0xff]   ;;  %v8392_v32 = vld [vmem:[%s10997_s5 + $0xf8] sm:$0xff]  }
 0x6a3   :  { %v8393_v49 = vld [vmem:[%s10997_s5 + $0xb8] sm:$0xff]  }
 0x6a4   :  { %v5629_v56 = vmax.f32 %v5597_v54, 0.0  ;;  %5661 = vst.msk [vmem:[#allocation4] sm:$0xff] %vm5660_vm1, %v5628_v16 }
 0x6a6   :  { %5662 = vst.msk [vmem:[#allocation4 + $0x20] sm:$0xff] %vm5660_vm1, %v5629_v56 }
 0x6ce   :  { %v5666_v27 = vpop.permute.xlu0 %5665 }
 0x6cf   :  { %5672 = vst.msk [vmem:[#allocation4] sm:$0xff] %vm5671_vm2, %v5666_v27 }
 0x6d2   :  { %v5668_v37 = vpop.permute.xlu1 %5667 }
 0x6d3   :  { %5673 = vst.msk [vmem:[#allocation4 + $0x20] sm:$0xff] %vm5671_vm2, %v5668_v37 }
 0x6d7   :  { %v5677_v23 = vpop.permute.xlu0 %5676 }
 0x6d8   :  { %5683 = vst.msk [vmem:[#allocation4] sm:$0xff] %vm5682_vm3, %v5677_v23 }
 0x6d9   :  { %v5679_v33 = vpop.permute.xlu1 %5678 }
 0x6da   :  { %5684 = vst.msk [vmem:[#allocation4 + $0x20] sm:$0xff] %vm5682_vm3, %v5679_v33  ;;  %v8394_v33 = vld [vmem:[%s10999_s7] sm:$0xff]  }
 0x6de   :  { %v5701_v50 = vpop.permute.xlu0 %5700 }
 0x6df   :  { %5706 = vst.msk [vmem:[#allocation4 + $0x8] sm:$0xff] %vm5671_vm2, %v5701_v50  ;;  %v8470_v50 = vmov 0.0  }
 0x6e2   :  { %v5703_v19 = vpop.permute.xlu1 %5702 }
 0x6e3   :  { %5707 = vst.msk [vmem:[#allocation4 + $0x28] sm:$0xff] %vm5671_vm2, %v5703_v19  ;;  %v8395_v19 = vld [vmem:[%s10999_s7 + $0x8] sm:$0xff]  }
 0x6e6   :  { %v5721_v45 = vpop.permute.xlu0 %5720 }
 0x6e8   :  { %v5723_v18 = vpop.permute.xlu1 %5722 }
 0x6ea   :  { %v5711_v6 = vpop.permute.xlu0 %5710 }
 0x6eb   :  { %5716 = vst.msk [vmem:[#allocation4 + $0x8] sm:$0xff] %vm5682_vm3, %v5711_v6  ;;  %v8398_v6 = vld [vmem:[%s10999_s7 + $0x20] sm:$0xff]  }
 0x6ec   :  { %5726 = vst.msk [vmem:[#allocation4 + $0x8] sm:$0xff] %vm5693_vm4, %v5721_v45  ;;  %v5713_v11 = vpop.permute.xlu1 %5712  ;;  %v8396_v45 = vld [vmem:[%s10999_s7 + $0x10] sm:$0xff]  }
 0x6ed   :  { %5717 = vst.msk [vmem:[#allocation4 + $0x28] sm:$0xff] %vm5682_vm3, %v5713_v11  ;;  %v8399_v11 = vld [vmem:[%s10999_s7 + $0x28] sm:$0xff]  }
 0x6ee   :  { %5727 = vst.msk [vmem:[#allocation4 + $0x28] sm:$0xff] %vm5693_vm4, %v5723_v18  ;;  %v5688_v36 = vpop.permute.xlu0 %5687  ;;  %v8397_v18 = vld [vmem:[%s10999_s7 + $0x18] sm:$0xff]  }
 0x6ef   :  { %5694 = vst.msk [vmem:[#allocation4] sm:$0xff] %vm5693_vm4, %v5688_v36  ;;  %v8400_v36 = vld [vmem:[%s10999_s7 + $0x30] sm:$0xff]  }
 0x6f0   :  { %v5690_v42 = vpop.permute.xlu1 %5689 }
 0x6f1   :  { %5695 = vst.msk [vmem:[#allocation4 + $0x20] sm:$0xff] %vm5693_vm4, %v5690_v42  ;;  %v8401_v42 = vld [vmem:[%s10999_s7 + $0x38] sm:$0xff]   ;;  %s8472_s7 = smov [#allocation7]  }
 0x6f2   :  { %v5510_v51 = vpop.permute.xlu0 %5509  ;;  %s6285_s2 = sshll.u32 %s8472_s7, 4  ;;  %s6286_s2 = int_to_ptr.vmem [resolvable:$true] %s6285_s2 }
 0x6f3   :  { %v5581_v46 = vmax.f32 %v10783_v60, %v5510_v51  ;;  %v5793_v39 = vld [vmem:[#allocation4 + $0x8] sm:$0xff]  ;;  %v8379_v60 = vld [vmem:[%s10997_s5 + $0x80] sm:$0xff]   ;;  %p8424_p1 = scmp.lt.s32.totalorder %s6286_s2, %s6286_s2 }
 0x6f4   :  { %v5512_v10 = vpop.permute.xlu1 %5511 }
 0x6f5   :  { %v5620_v38 = vadd.f32 %v10730_v22, %v5581_v46  ;;  %v5582_v5 = vmax.f32 %v10787_v14, %v5512_v10  ;;  %v5797_v25 = vld [vmem:[#allocation4 + $0x28] sm:$0xff] }
 0x6f6   :  { %v5494_v31 = vpop.permute.xlu0 %5493  ;;  %v5801_v43 = vpack.c.bf16 %v5797_v25, %v5793_v39  ;;  %v5792_v20 = vld [vmem:[#allocation4] sm:$0xff] }
 0x6f7   :  { %v5652_v26 = vmax.f32 %v5620_v38, 0.0  ;;  %v5621_v58 = vadd.f32 %v10730_v22, %v5582_v5  ;;  %v5573_v62 = vmax.f32 %v10792_v34, %v5494_v31  ;;  %v8380_v34 = vld [vmem:[%s10997_s5 + $0xc8] sm:$0xff]   ;;  %v6722_v25 = vld [vmem:[%s10998_s6] ss:$0 sm:$0xff]  ;;  %s8419_s6 = scalar_lea.vmem %s6286_s2, 256 }
 0x6f8   :  { %v5796_v52 = vld [vmem:[#allocation4 + $0x20] sm:$0xff]  ;;  %6099 = vmatprep.mubr.bf16.mxu1 %v5801_v43  ;;  %v5496_v24 = vpop.permute.xlu1 %5495  ;;  %p8420_p0 = scmp.ne.s32.totalorder %s6286_s2, %s8419_s6  ;;  %p8425_p2 = scmp.lt.s32.totalorder %s8419_s6, %s8419_s6 }
 0x6f9   :  { %v5800_v41 = vpack.c.bf16 %v5796_v52, %v5792_v20  ;;  %5760 = vst.msk [vmem:[#allocation4 + $0x18] sm:$0xff] %vm5660_vm1, %v5652_v26  ;;  %v5653_v14 = vmax.f32 %v5621_v58, 0.0  ;;  %v5612_v2 = vadd.f32 %v10730_v22, %v5573_v62  ;;  %v5574_v4 = vmax.f32 %v10798_v35, %v5496_v24 }
 0x6fa   :  { %v5733_v47 = vpop.permute.xlu0 %5732  ;;  %p8426_p3 = por %p8425_p2, %p8424_p1 }
 0x6fb   :  { %5761 = vst.msk [vmem:[#allocation4 + $0x38] sm:$0xff] %vm5660_vm1, %v5653_v14  ;;  %v5644_v8 = vmax.f32 %v5612_v2, 0.0  ;;  %v5613_v3 = vadd.f32 %v10730_v22, %v5574_v4  ;;  %6100 = vmatmul.mubr.bf16.vlgmr.msra.gmra.mrb[16].mxu1 %v5800_v41 }
 0x6fc   :  { %7163 = vmatpush3.bf16.msra.mxu1 %v8379_v60  ;;  %v5735_v57 = vpop.permute.xlu1 %5734  ;;  %p8427_p4 = pnand %p8426_p3, %p8420_p0 }
 0x6fd   :  { %5728 = vst.msk [vmem:[#allocation4 + $0x10] sm:$0xff] %vm5660_vm1, %v5644_v8  ;;  %v5645_v35 = vmax.f32 %v5613_v3, 0.0  ;;  %7164 = vmatprep.subr.bf16.mxu1 %v8380_v34 }
 0x6fe   :  { %5738 = vst.msk [vmem:[#allocation4 + $0x10] sm:$0xff] %vm5671_vm2, %v5733_v47  ;;  %v5743_v59 = vpop.permute.xlu0 %5742 }
 0x6ff   :  { %5729 = vst.msk [vmem:[#allocation4 + $0x30] sm:$0xff] %vm5660_vm1, %v5645_v35 }
 0x700   :  { %5748 = vst.msk [vmem:[#allocation4 + $0x10] sm:$0xff] %vm5682_vm3, %v5743_v59  ;;  %7165 = vmatpush3.bf16.msra.mxu1 %v8381_v28  ;;  %v5745_v22 = vpop.permute.xlu1 %5744 }
 0x701   :  { %5739 = vst.msk [vmem:[#allocation4 + $0x30] sm:$0xff] %vm5671_vm2, %v5735_v57  ;;  %7166 = vmatprep.subr.bf16.mxu1 %v8382_v13 }
 0x702   :  { %5749 = vst.msk [vmem:[#allocation4 + $0x30] sm:$0xff] %vm5682_vm3, %v5745_v22  ;;  %v5765_v44 = vpop.permute.xlu0 %5764 }
 0x703   :  { %5770 = vst.msk [vmem:[#allocation4 + $0x18] sm:$0xff] %vm5671_vm2, %v5765_v44 }
 0x704   :  { %7167 = vmatpush3.bf16.msra.mxu1 %v8383_v9  ;;  %v5767_v40 = vpop.permute.xlu1 %5766 }
 0x705   :  { %5771 = vst.msk [vmem:[#allocation4 + $0x38] sm:$0xff] %vm5671_vm2, %v5767_v40  ;;  %7168 = vmatprep.subr.bf16.mxu1 %v8384_v48 }
 0x706   :  { %v5785_v15 = vpop.permute.xlu0 %5784 }
 0x708   :  { %7169 = vmatpush3.bf16.msra.mxu1 %v8385_v7  ;;  %v5787_v17 = vpop.permute.xlu1 %5786 }
 0x709   :  { %7170 = vmatprep.subr.bf16.mxu1 %v8386_v61 }
 0x70a   :  { %v5775_v21 = vpop.permute.xlu0 %5774 }
 0x70b   :  { %5780 = vst.msk [vmem:[#allocation4 + $0x18] sm:$0xff] %vm5682_vm3, %v5775_v21 }
 0x70c   :  { %5790 = vst.msk [vmem:[#allocation4 + $0x18] sm:$0xff] %vm5693_vm4, %v5785_v15  ;;  %7171 = vmatpush3.bf16.msra.mxu1 %v8387_v0  ;;  %v5777_v12 = vpop.permute.xlu1 %5776 }
 0x70d   :  { %5781 = vst.msk [vmem:[#allocation4 + $0x38] sm:$0xff] %vm5682_vm3, %v5777_v12  ;;  %7172 = vmatprep.subr.bf16.mxu1 %v8388_v63 }
 0x70e   :  { %5791 = vst.msk [vmem:[#allocation4 + $0x38] sm:$0xff] %vm5693_vm4, %v5787_v17  ;;  %v5753_v30 = vpop.permute.xlu0 %5752 }
 0x70f   :  { %5758 = vst.msk [vmem:[#allocation4 + $0x10] sm:$0xff] %vm5693_vm4, %v5753_v30 }
 0x710   :  { %7173 = vmatpush3.bf16.msra.mxu1 %v8389_v55  ;;  %v5755_v29 = vpop.permute.xlu1 %5754 }
 0x711   :  { %5759 = vst.msk [vmem:[#allocation4 + $0x30] sm:$0xff] %vm5693_vm4, %v5755_v29  ;;  %7174 = vmatprep.subr.bf16.mxu1 %v8390_v1 }
 0x713   :  { %v5795_v16 = vld [vmem:[#allocation4 + $0x18] sm:$0xff] }
 0x714   :  { %7175 = vmatpush3.bf16.msra.mxu1 %v8391_v53 }
 0x715   :  { %7176 = vmatprep.subr.bf16.mxu1 %v8392_v32  ;;  %v5799_v54 = vld [vmem:[#allocation4 + $0x38] sm:$0xff] }
 0x716   :  { %v5803_v56 = vpack.c.bf16 %v5799_v54, %v5795_v16  ;;  %v5794_v27 = vld [vmem:[#allocation4 + $0x10] sm:$0xff] }
 0x718   :  { %7177 = vmatpush3.bf16.msra.mxu1 %v8393_v49  ;;  %6140 = vmatprep.mubr.bf16.mxu1 %v5803_v56  ;;  %v5798_v37 = vld [vmem:[#allocation4 + $0x30] sm:$0xff] }
 0x719   :  { %v5802_v23 = vpack.c.bf16 %v5798_v37, %v5794_v27  ;;  %7945 = vmatprep.subr.bf16.mxu1 %v8470_v50 }
 0x71b   :  { %6141 = vmatmul.mubr.bf16.vlgmr.msra.gmra.mrb[20].mxu1 %v5802_v23 }
 0x71c   :  { %7946 = vmatpush3.bf16.msra.mxu1 %v8394_v33  ;;  %7961 = vmatprep.mubr.msk.bf16.mxu1 %vm8471_vm5, %v8470_v50 }
 0x71d   :  { %7947 = vmatprep.subr.bf16.mxu1 %v8470_v50 }
 0x720   :  { %7948 = vmatpush3.bf16.msra.mxu1 %v8395_v19 }
 0x721   :  { %7949 = vmatprep.subr.bf16.mxu1 %v8470_v50 }
 0x724   :  { %7950 = vmatpush3.bf16.msra.mxu1 %v8396_v45 }
 0x725   :  { %7951 = vmatprep.subr.bf16.mxu1 %v8470_v50 }
 0x728   :  { %7952 = vmatpush3.bf16.msra.mxu1 %v8397_v18 }
 0x729   :  { %7953 = vmatprep.subr.bf16.mxu1 %v8470_v50 }
 0x72c   :  { %7954 = vmatpush3.bf16.msra.mxu1 %v8398_v6 }
 0x72d   :  { %7955 = vmatprep.subr.bf16.mxu1 %v8470_v50 }
 0x730   :  { %7956 = vmatpush3.bf16.msra.mxu1 %v8399_v11 }
 0x731   :  { %7957 = vmatprep.subr.bf16.mxu1 %v8470_v50 }
 0x734   :  { %7958 = vmatpush3.bf16.msra.mxu1 %v8400_v36 }
 0x735   :  { %7959 = vmatprep.subr.bf16.mxu1 %v8470_v50 }
 0x738   :  { %7960 = vmatpush3.bf16.msra.mxu1 %v8401_v42 }
 0x7ce   :  { %v7156_v51 = vpop.f32.mrb[16].mxu1 }
 0x7cf   :  { %v7157_v46 = vpop.f32.mrb[17].mxu1 }
 0x7d0   :  { %v7158_v10 = vadd.f32 %v7157_v46, %v7156_v51  ;;  %v7159_v38 = vpop.f32.mrb[18].mxu1 }
 0x7d1   :  { %v7160_v5 = vpop.f32.mrb[19].mxu1 }
 0x7d2   :  { %v7161_v39 = vadd.f32 %v7160_v5, %v7159_v38  ;;  %v6102_v26 = vadd.f32 %v7158_v10, %v6722_v25 }
 0x7d4   :  { %v6105_v52 = vadd.f32 %v7161_v39, %v6722_v25 }
 0x7ee   :  { %v7178_v31 = vpop.f32.mrb[20].mxu1 }
 0x7ef   :  { %v7179_v43 = vpop.f32.mrb[21].mxu1 }
 0x7f0   :  { %v7180_v58 = vadd.f32 %v7179_v43, %v7178_v31  ;;  %v7181_v62 = vpop.f32.mrb[22].mxu1 }
 0x7f1   :  { %v7182_v20 = vpop.f32.mrb[23].mxu1 }
 0x7f2   :  { %v6143_v24 = vadd.f32 %v7180_v58, %v6102_v26  ;;  %v7183_v60 = vadd.f32 %v7182_v20, %v7181_v62 }
 0x7f4   :  { %v6149_v41 = vmax.f32 %v6143_v24, 0.0  ;;  %v6146_v14 = vadd.f32 %v7183_v60, %v6105_v52 }
 0x7f6   :  { %6151 = vst [vmem:[#allocation7] sm:$0xff] %v6149_v41  ;;  %v6150_v2 = vmax.f32 %v6146_v14, 0.0 }
 0x7f8   :  { %6152 = vst [vmem:[#allocation7 + $0x8] sm:$0xff] %v6150_v2  ;;  %v6153_v4 = vpack.c.bf16 %v6150_v2, %v6149_v41 }
 0x7fa   :  { %7962 = vmatmul.mubr.bf16.vlgmr.msra.gmra.mrb[24].mxu1 %v6153_v4 }
 0x7fb   :  { %8430 = shalt.err (!%p8427_p4)
}
 0x7fc   :  { %s8431_s3 = scalar_lea.hbm %s11002_s10, 256 }
 0x7fd   :  { %p8432_p5 = scmp.ne.s32.totalorder %s11002_s10, %s8431_s3  ;;  %p8435_p6 = scmp.lt.u32.totalorder %s8431_s3, %s11002_s10 }
 0x7ff   :  { %p8437_p7 = pnand %p8435_p6, %p8432_p5 }
 0x801   :  { %8440 = shalt.err (!%p8437_p7)
}
 0x802   :  { %s8473_s11 = smov 128   ;;  %s8474_s12 = smov 8   ;;  %v6755_v34 = vld [vmem:[%s11000_s8] ss:$0 sm:$0xff] }
 0x803   :  { %6291 = dma.vmem_to_hbm [thread:$0]  %s6286_s2, 256, %s11002_s10, [#allocation8], %s8473_s11, %s8473_s11, %s8474_s12  }
 0x804   :  { %s8475_s1 = smov [#allocation5]  }
 0x805   :  { %s6273_s17 = sshll.u32 %s8475_s1, 4  ;;  %s6274_s17 = int_to_ptr.vmem [resolvable:$true] %s6273_s17 }
 0x806   :  { %s8441_s18 = scalar_lea.vmem %s6274_s17, 256  ;;  %p8446_p9 = scmp.lt.s32.totalorder %s6274_s17, %s6274_s17 }
 0x807   :  { %p8442_p8 = scmp.ne.s32.totalorder %s6274_s17, %s8441_s18  ;;  %p8447_p10 = scmp.lt.s32.totalorder %s8441_s18, %s8441_s18 }
 0x809   :  { %p8448_p11 = por %p8447_p10, %p8446_p9 }
 0x80b   :  { %p8449_p12 = pnand %p8448_p11, %p8442_p8 }
 0x8cd   :  { %v6259_v47 = vpop.f32.mrb[24].mxu1 }
 0x8ce   :  { %v6260_v8 = vadd.f32 %v6755_v34, %v6259_v47  ;;  %v7963_v3 = vpop.f32.mrb[25].mxu1 }
 0x8cf   :  { %v6262_v57 = vpop.f32.mrb[26].mxu1 }
 0x8d0   :  { %6266 = vst [vmem:[#allocation5] sm:$0xff] %v6260_v8  ;;  %v6263_v28 = vadd.f32 %v6755_v34, %v6262_v57  ;;  %v7964_v35 = vpop.f32.mrb[27].mxu1 }
 0x8d2   :  { %6267 = vst [vmem:[#allocation5 + $0x8] sm:$0xff] %v6263_v28 }
 0x8d3   :  { %8452 = shalt.err (!%p8449_p12)
}
 0x8d4   :  { %s8453_s19 = scalar_lea.hbm %s11001_s9, 256 }
 0x8d5   :  { %p8454_p13 = scmp.ne.s32.totalorder %s11001_s9, %s8453_s19  ;;  %p8457_p0 = scmp.lt.u32.totalorder %s8453_s19, %s11001_s9 }
 0x8d7   :  { %p8459_p1 = pnand %p8457_p0, %p8454_p13 }
 0x8d9   :  { %8462 = shalt.err (!%p8459_p1)
}
 0x8da   :  { %6279 = dma.vmem_to_hbm [thread:$0]  %s6274_s17, 256, %s11001_s9, [#allocation6], %s8473_s11, %s8473_s11, %s8474_s12  }
 0x8db   :  { %8463 = dma.done.wait [#allocation6], 256  }
 0x8dc   :  { %8464 = vsyncadd [#allocation6], 4294967040 }
 0x8dd   :  { %8465 = dma.done.wait [#allocation8], 256  }
 0x8de   :  { %8466 = vsyncadd [#allocation8], 4294967040 }
 0x8df   :  { %6298 = vsyncpa [#allocation6], 1 }
 0x8e0   :  { %6299 = vsyncpa [#allocation8], 1 }

</bundles_post_ra>
